<compile_context>
chip_gen: v6e
topology: v6e:2x2x1
jax: 0.10.0
libtpu: 0.0.40
codegen_flags: <defaults>
</compile_context>

<pallas_src>
import functools

import jax
import jax.numpy as jnp
from jax.experimental import pallas as pl
from jax.experimental.pallas import tpu as pltpu

BN_EPS = 1e-5


def _round_up(a, b):
    return (a + b - 1) // b * b


@functools.lru_cache(maxsize=None)
def _vmem_limit_bytes():
    # Generation-aware VMEM budget: half the physical VMEM, capped at 64 MiB
    # (v5e/v6e: 128 MiB physical -> 64 MiB limit; v7x: 64 MiB -> 32 MiB).
    cap = 128 * 1024 * 1024
    try:
        info = pltpu.get_tpu_info()
        cap = int(getattr(info, "vmem_capacity_bytes", cap)) or cap
    except Exception:
        pass
    return min(cap // 2, 64 * 1024 * 1024)


def _pick_tm(hw, row_bytes, default_tm=1024):
    # Large row tiles amortize the ~0.35us per-grid-step overhead; cap so the
    # double-buffered resident blocks stay well inside the VMEM budget.
    budget = _vmem_limit_bytes() // 6
    cap = max(64, (budget // max(row_bytes, 1)) // 16 * 16)
    return max(16, min(default_tm, cap, _round_up(hw, 16)))


# ----------------------------------------------------------------------------
# Pass A: conv-as-matmul (im2col LHS) -> bf16 pre-BN output + BN partial stats
# ----------------------------------------------------------------------------
def _conv_stats_kernel(lhs_ref, w_ref, y_ref, stats_ref, *, hw_true, need_mask):
    # lhs_ref  : (1, tm, K)        bf16 im2col rows for one image tile
    # w_ref    : (K, Cout)         bf16
    # y_ref    : (1, tm, Cout)     bf16 pre-BN conv output
    # stats_ref: (1, 1, 1, 2*Cout) f32  lane-dense [sum | sum_sq] per tile
    lhs = lhs_ref[0]                                            # (tm, K)
    acc = jnp.dot(lhs, w_ref[...], preferred_element_type=jnp.float32)
    y_ref[...] = acc.astype(y_ref.dtype)[None]                  # bf16 intermediate

    if need_mask:                                               # static branch
        tm = lhs_ref.shape[1]
        rows = jax.lax.broadcasted_iota(jnp.int32, (tm, 1), 0) + pl.program_id(1) * tm
        acc = jnp.where(rows < hw_true, acc, 0.0)
    s1 = jnp.sum(acc, axis=0, keepdims=True)                    # (1, Cout)
    s2 = jnp.sum(acc * acc, axis=0, keepdims=True)              # (1, Cout)
    stats_ref[...] = jnp.concatenate([s1, s2], axis=-1)[None, None]


# ----------------------------------------------------------------------------
# Pass B: BN affine (global batch stats) + ReLU, fused per-image pool partials
# ----------------------------------------------------------------------------
def _bn_relu_pool_kernel(y_ref, scale_ref, shift_ref, o_ref, pool_ref, *,
                         hw_true, need_mask):
    # y_ref    : (1, tm, Cout)     bf16 pre-BN conv output
    # scale/shift: (1, Cout)       f32  (gamma*rsqrt(var+eps), beta-mean*scale)
    # o_ref    : (1, tm, Cout)     out dtype (bf16)
    # pool_ref : (1, 1, 1, Cout)   f32 per-(image,tile) partial sum of activation
    y = y_ref[0].astype(jnp.float32)                            # (tm, Cout)
    x = jnp.maximum(y * scale_ref[...] + shift_ref[...], 0.0)   # f32 VPU math
    o_ref[...] = x.astype(o_ref.dtype)[None]

    if need_mask:                                               # static branch
        tm = y_ref.shape[1]
        rows = jax.lax.broadcasted_iota(jnp.int32, (tm, 1), 0) + pl.program_id(1) * tm
        x = jnp.where(rows < hw_true, x, 0.0)
    pool_ref[...] = jnp.sum(x, axis=0, keepdims=True)[None, None]


# ----------------------------------------------------------------------------
# SCSE gating: x * (precomputed channel gate + in-kernel spatial gate)
# ----------------------------------------------------------------------------
def _scse_kernel(x_ref, chn_ref, wsp_ref, o_ref):
    # x_ref   : (1, tm, C) bf16 post conv2 BN+ReLU
    # chn_ref : (1, 1, C)  f32 per-image channel gate (MLP hoisted to wrapper)
    # wsp_ref : (1, C)     f32 spatial 1x1-conv weight (bias=False in reference)
    # o_ref   : (1, tm, C) f32
    x = x_ref[0].astype(jnp.float32)                            # (tm, C)
    spa = jax.nn.sigmoid(jnp.sum(x * wsp_ref[...], axis=-1, keepdims=True))  # (tm,1)
    o_ref[...] = (x * (chn_ref[0] + spa))[None]                 # x*chn + x*spa


# ----------------------------------------------------------------------------
# Wrappers
# ----------------------------------------------------------------------------
def _im2col_3x3(x):
    # x: (N, H, W, C) -> (N, H*W, 9*C) bf16 patch matrix (pad=1, 3x3, stride 1).
    # bf16-early cast halves the materialized intermediate.
    # TODO(synk): an in-kernel halo'd row-tile gather (manual DMA + 9 shifted
    #             matmuls) would avoid materializing the 9x patch matrix in HBM.
    N, H, W, C = x.shape
    xp = jnp.pad(x.astype(jnp.bfloat16), ((0, 0), (1, 1), (1, 1), (0, 0)))
    cols = [xp[:, ky:ky + H, kx:kx + W, :] for ky in range(3) for kx in range(3)]
    return jnp.concatenate(cols, axis=-1).reshape(N, H * W, 9 * C)


def conv3x3_bn_relu(x, w, gamma, beta, *, tm=1024, out_dtype=jnp.bfloat16):
    """3x3 conv (pad=1) + BatchNorm2d (training-mode batch stats) + ReLU.

    The conv bias is intentionally omitted: it cancels exactly in the BN mean
    subtraction.  Returns (activation NHWC in out_dtype, per-image channel mean
    of the activation -- used by the SCSE block after conv2).
    """
    N, H, W, Cin = x.shape
    Cout = w.shape[-1]
    HW = H * W
    K = 9 * Cin

    tm = _pick_tm(HW, 2 * K + 8 * Cout, default_tm=tm)
    hw_pad = _round_up(HW, tm)
    n_t = hw_pad // tm
    need_mask = hw_pad != HW

    lhs = _im2col_3x3(x)                                        # (N, HW, K) bf16
    if need_mask:
        lhs = jnp.pad(lhs, ((0, 0), (0, hw_pad - HW), (0, 0)))
    wm = w.reshape(K, Cout).astype(jnp.bfloat16)

    cparams = pltpu.CompilerParams(
        dimension_semantics=("parallel", "parallel"),
        vmem_limit_bytes=_vmem_limit_bytes())

    # TODO(synk): for large channel counts the constant (K, Cout) weight block
    #             could be single-buffered (pipeline_mode=pl.Buffered(1)) to
    #             free v7x VMEM; with this decoder's tiny weights it is left
    #             at the default double-buffering for robustness.
    conv_y, stats = pl.pallas_call(
        functools.partial(_conv_stats_kernel, hw_true=HW, need_mask=need_mask),
        out_shape=(jax.ShapeDtypeStruct((N, hw_pad, Cout), jnp.bfloat16),
                   jax.ShapeDtypeStruct((N, n_t, 1, 2 * Cout), jnp.float32)),
        grid=(N, n_t),
        in_specs=[
            pl.BlockSpec((1, tm, K), lambda bi, ti: (bi, ti, 0)),
            pl.BlockSpec((K, Cout), lambda bi, ti: (0, 0)),
        ],
        out_specs=(
            pl.BlockSpec((1, tm, Cout), lambda bi, ti: (bi, ti, 0)),
            pl.BlockSpec((1, 1, 1, 2 * Cout), lambda bi, ti: (bi, ti, 0, 0)),
        ),
        compiler_params=cparams,
    )(lhs, wm)

    # Global training-mode BN statistics over the FULL N*H*W (tiny wrapper sum).
    s = jnp.sum(stats, axis=(0, 1, 2))                          # (2*Cout,)
    cnt = float(N * HW)
    mean = s[:Cout] / cnt
    var = jnp.maximum(s[Cout:] / cnt - mean * mean, 0.0)
    scale = gamma * jax.lax.rsqrt(var + BN_EPS)
    shift = beta - mean * scale
    scale = scale.reshape(1, Cout).astype(jnp.float32)
    shift = shift.reshape(1, Cout).astype(jnp.float32)

    x_out, pool_part = pl.pallas_call(
        functools.partial(_bn_relu_pool_kernel, hw_true=HW, need_mask=need_mask),
        out_shape=(jax.ShapeDtypeStruct((N, hw_pad, Cout), out_dtype),
                   jax.ShapeDtypeStruct((N, n_t, 1, Cout), jnp.float32)),
        grid=(N, n_t),
        in_specs=[
            pl.BlockSpec((1, tm, Cout), lambda bi, ti: (bi, ti, 0)),
            pl.BlockSpec((1, Cout), lambda bi, ti: (0, 0)),
            pl.BlockSpec((1, Cout), lambda bi, ti: (0, 0)),
        ],
        out_specs=(
            pl.BlockSpec((1, tm, Cout), lambda bi, ti: (bi, ti, 0)),
            pl.BlockSpec((1, 1, 1, Cout), lambda bi, ti: (bi, ti, 0, 0)),
        ),
        compiler_params=cparams,
    )(conv_y, scale, shift)

    pool_mean = jnp.sum(pool_part, axis=(1, 2)) / float(HW)     # (N, Cout) f32
    x_nhwc = x_out[:, :HW, :].reshape(N, H, W, Cout)
    return x_nhwc, pool_mean


def scse_block(x, pool_mean, se_w1, se_b1, se_w2, se_b2, se_wsp, *, tm=1024):
    # x: (N, H, W, C) bf16 post conv2 BN+ReLU; pool_mean: (N, C) f32.
    N, H, W, C = x.shape
    HW = H * W

    # Channel-excitation MLP hoisted out of the kernel: it is identical for
    # every spatial tile of an image, so compute it once per image here.
    h = jnp.maximum(pool_mean @ se_w1 + se_b1[None, :], 0.0)    # (N, r)
    chn = jax.nn.sigmoid(h @ se_w2 + se_b2[None, :])            # (N, C)
    chn = chn.reshape(N, 1, C).astype(jnp.float32)

    tm = _pick_tm(HW, 2 * C + 4 * C, default_tm=tm)
    hw_pad = _round_up(HW, tm)
    n_t = hw_pad // tm

    xf = x.reshape(N, HW, C).astype(jnp.bfloat16)
    if hw_pad != HW:
        xf = jnp.pad(xf, ((0, 0), (0, hw_pad - HW), (0, 0)))

    out = pl.pallas_call(
        _scse_kernel,
        out_shape=jax.ShapeDtypeStruct((N, hw_pad, C), jnp.float32),
        grid=(N, n_t),
        in_specs=[
            pl.BlockSpec((1, tm, C), lambda bi, ti: (bi, ti, 0)),
            pl.BlockSpec((1, 1, C), lambda bi, ti: (bi, 0, 0)),
            pl.BlockSpec((1, C), lambda bi, ti: (0, 0)),
        ],
        out_specs=pl.BlockSpec((1, tm, C), lambda bi, ti: (bi, ti, 0)),
        compiler_params=pltpu.CompilerParams(
            dimension_semantics=("parallel", "parallel"),
            vmem_limit_bytes=_vmem_limit_bytes()),
    )(xf, chn, se_wsp.reshape(1, C).astype(jnp.float32))

    return out[:, :HW, :].reshape(N, H, W, C)


# ----------------------------------------------------------------------------
# Glue: bilinear x2 upsample (align_corners=True, matches F.upsample call).
# TODO(synk): kept in plain JAX (gather + lerp); align_corners weights are not
#             a fixed 2-tap stencil so a Pallas version needs an index-gather
#             kernel — the conv/BN/SE hot paths are in Pallas.
# ----------------------------------------------------------------------------
def upsample_x2_bilinear_align_corners(x):  # NHWC
    N, H, W, C = x.shape
    Ho, Wo = 2 * H, 2 * W

    def coords(n_in, n_out):
        if n_in == 1:
            src = jnp.zeros((n_out,), jnp.float32)
        else:
            src = jnp.arange(n_out, dtype=jnp.float32) * ((n_in - 1) / (n_out - 1))
        i0 = jnp.clip(jnp.floor(src).astype(jnp.int32), 0, n_in - 1)
        i1 = jnp.clip(i0 + 1, 0, n_in - 1)
        frac = src - i0.astype(jnp.float32)
        return i0, i1, frac

    y0, y1, wy = coords(H, Ho)
    x0, x1, wx = coords(W, Wo)

    rows = (x[:, y0, :, :] * (1.0 - wy)[None, :, None, None]
            + x[:, y1, :, :] * wy[None, :, None, None])
    out = (rows[:, :, x0, :] * (1.0 - wx)[None, None, :, None]
           + rows[:, :, x1, :] * wx[None, None, :, None])
    return out


# ----------------------------------------------------------------------------
# Parameters + full Decoder forward
# ----------------------------------------------------------------------------
def init_decoder_params(key, in_channels, channels, out_channels, reduction=64):
    r = int(out_channels // reduction)
    assert r >= 1, "out_channels must be >= reduction for SCSEBlock"
    ks = jax.random.split(key, 13)
    s = 0.1
    return {
        "w1": s * jax.random.normal(ks[0], (3, 3, in_channels, channels), jnp.float32),
        # Conv biases kept for parameter parity with nn.Conv2d, but unused:
        # they cancel exactly under training-mode BatchNorm.
        "b1": s * jax.random.normal(ks[1], (channels,), jnp.float32),
        "g1": 1.0 + s * jax.random.normal(ks[2], (channels,), jnp.float32),
        "be1": s * jax.random.normal(ks[3], (channels,), jnp.float32),
        "w2": s * jax.random.normal(ks[4], (3, 3, channels, out_channels), jnp.float32),
        "b2": s * jax.random.normal(ks[5], (out_channels,), jnp.float32),
        "g2": 1.0 + s * jax.random.normal(ks[6], (out_channels,), jnp.float32),
        "be2": s * jax.random.normal(ks[7], (out_channels,), jnp.float32),
        "se_w1": s * jax.random.normal(ks[8], (out_channels, r), jnp.float32),
        "se_b1": s * jax.random.normal(ks[9], (r,), jnp.float32),
        "se_w2": s * jax.random.normal(ks[10], (r, out_channels), jnp.float32),
        "se_b2": s * jax.random.normal(ks[11], (out_channels,), jnp.float32),
        "se_wsp": s * jax.random.normal(ks[12], (out_channels, 1), jnp.float32),
    }


def decoder_forward(params, x_nchw, e_nchw=None):
    # NCHW (PyTorch) -> NHWC (kernel layout)
    x = jnp.transpose(x_nchw, (0, 2, 3, 1)).astype(jnp.float32)
    x = upsample_x2_bilinear_align_corners(x)
    if e_nchw is not None:
        e = jnp.transpose(e_nchw, (0, 2, 3, 1)).astype(jnp.float32)
        x = jnp.concatenate([x, e], axis=-1)

    # conv1: bf16 activation (feeds conv2's bf16 MXU operands directly).
    x, _ = conv3x3_bn_relu(x, params["w1"], params["g1"], params["be1"],
                           out_dtype=jnp.bfloat16)
    # conv2: bf16 activation + fused per-image channel pool for SCSE.
    x, pool = conv3x3_bn_relu(x, params["w2"], params["g2"], params["be2"],
                              out_dtype=jnp.bfloat16)
    # SCSE: f32 output (module result precision).
    x = scse_block(x, pool, params["se_w1"], params["se_b1"],
                   params["se_w2"], params["se_b2"], params["se_wsp"])
    return jnp.transpose(x, (0, 3, 1, 2))  # back to NCHW


if __name__ == "__main__":
    key = jax.random.PRNGKey(0)
    k_x, k_e, k_p = jax.random.split(key, 3)

    # Decoder(in_channels=8, channels=16, out_channels=64)
    # x: (2, 4, 8, 8) NCHW; after x2 upsample -> (2, 4, 16, 16); concat with
    # e: (2, 4, 16, 16) -> 8 input channels for conv1.
    x = jax.random.normal(k_x, (2, 4, 8, 8), jnp.float32)
    e = jax.random.normal(k_e, (2, 4, 16, 16), jnp.float32)
    params = init_decoder_params(k_p, in_channels=8, channels=16, out_channels=64)

    fwd = jax.jit(decoder_forward)
    out = fwd(params, x, e)
    out = jax.block_until_ready(out)

    assert out.shape == (2, 64, 16, 16), out.shape
    assert bool(jnp.all(jnp.isfinite(out)))
    print("KERNEL_OK")
</pallas_src>

<mosaic_0001>
module attributes {stable_mosaic.version = 11 : i64} {
  func.func @_conv_stats_kernel(%arg0: i32, %arg1: i32, %arg2: memref<1x256x72xbf16, #tpu.memory_space<vmem>>, %arg3: memref<72x16xbf16, #tpu.memory_space<vmem>>, %arg4: memref<1x256x16xbf16, #tpu.memory_space<vmem>>, %arg5: memref<1x1x1x32xf32, #tpu.memory_space<vmem>>) attributes {dimension_semantics = [#tpu.dimension_semantics<parallel>, #tpu.dimension_semantics<parallel>], iteration_bounds = array<i64: 2, 1>, scalar_prefetch = 0 : i64, scratch_operands = 0 : i64, tpu.core_type = #tpu.core_type<tc>, window_params = [{transform_indices = @transform_0, window_bounds = array<i64: 1, 256, 72>}, {pipeline_mode = #tpu.pipeline_mode<synchronous>, transform_indices = @transform_1, window_bounds = array<i64: 72, 16>}, {transform_indices = @transform_2, window_bounds = array<i64: 1, 256, 16>}, {transform_indices = @transform_3, window_bounds = array<i64: 1, 1, 1, 32>}]} {
    %c0 = arith.constant 0 : index
    %c0_0 = arith.constant 0 : index
    %c0_1 = arith.constant 0 : index
    %0 = vector.load %arg2[%c0, %c0_0, %c0_1] : memref<1x256x72xbf16, #tpu.memory_space<vmem>>, vector<1x256x72xbf16>
    %1 = vector.shape_cast %0 : vector<1x256x72xbf16> to vector<256x72xbf16>
    %c0_2 = arith.constant 0 : index
    %c0_3 = arith.constant 0 : index
    %2 = vector.load %arg3[%c0_2, %c0_3] : memref<72x16xbf16, #tpu.memory_space<vmem>>, vector<72x16xbf16>
    %cst = arith.constant dense<0.000000e+00> : vector<256x16xf32>
    %3 = tpu.matmul %1, %2, %cst {dimension_numbers = #tpu.dot_dimension_numbers<[1], [0], [0], [1], [0, 0, 1, 1], [], []>} : vector<256x72xbf16>, vector<72x16xbf16>, vector<256x16xf32> -> vector<256x16xf32>
    %4 = arith.truncf %3 : vector<256x16xf32> to vector<256x16xbf16>
    %5 = vector.shape_cast %4 : vector<256x16xbf16> to vector<1x256x16xbf16>
    %c0_4 = arith.constant 0 : index
    %c0_5 = arith.constant 0 : index
    %c0_6 = arith.constant 0 : index
    %6 = vector.load %arg4[%c0_4, %c0_5, %c0_6] : memref<1x256x16xbf16, #tpu.memory_space<vmem>>, vector<1x256x16xbf16>
    tpu.vector_store %arg4[%c0_4, %c0_5, %c0_6], %5 {strides = array<i32>} : memref<1x256x16xbf16, #tpu.memory_space<vmem>>, vector<1x256x16xbf16>,
    %cst_7 = arith.constant dense<0.000000e+00> : vector<16xf32>
    %7 = vector.multi_reduction <add>, %3, %cst_7 [0] : vector<256x16xf32> to vector<16xf32>
    %8 = vector.shape_cast %7 : vector<16xf32> to vector<1x16xf32>
    %9 = arith.mulf %3, %3 : vector<256x16xf32>
    %cst_8 = arith.constant dense<0.000000e+00> : vector<16xf32>
    %10 = vector.multi_reduction <add>, %9, %cst_8 [0] : vector<256x16xf32> to vector<16xf32>
    %11 = vector.shape_cast %10 : vector<16xf32> to vector<1x16xf32>
    %12 = tpu.concatenate %8, %11 in 1 : vector<1x16xf32>, vector<1x16xf32> -> vector<1x32xf32>
    %13 = vector.shape_cast %12 : vector<1x32xf32> to vector<1x1x1x32xf32>
    %c0_9 = arith.constant 0 : index
    %c0_10 = arith.constant 0 : index
    %c0_11 = arith.constant 0 : index
    %c0_12 = arith.constant 0 : index
    %14 = vector.load %arg5[%c0_9, %c0_10, %c0_11, %c0_12] : memref<1x1x1x32xf32, #tpu.memory_space<vmem>>, vector<1x1x1x32xf32>
    tpu.vector_store %arg5[%c0_9, %c0_10, %c0_11, %c0_12], %13 {strides = array<i32>} : memref<1x1x1x32xf32, #tpu.memory_space<vmem>>, vector<1x1x1x32xf32>,
    return
  }
  func.func @transform_0(%arg0: i32, %arg1: i32) -> (i32, i32, i32) {
    %c0_i32 = arith.constant 0 : i32
    %c0_i32_0 = arith.constant 0 : i32
    return %arg0, %arg1, %c0_i32 : i32, i32, i32
  }
  func.func @transform_1(%arg0: i32, %arg1: i32) -> (i32, i32) {
    %c0_i32 = arith.constant 0 : i32
    %c0_i32_0 = arith.constant 0 : i32
    %c0_i32_1 = arith.constant 0 : i32
    return %c0_i32, %c0_i32_0 : i32, i32
  }
  func.func @transform_2(%arg0: i32, %arg1: i32) -> (i32, i32, i32) {
    %c0_i32 = arith.constant 0 : i32
    %c0_i32_0 = arith.constant 0 : i32
    return %arg0, %arg1, %c0_i32 : i32, i32, i32
  }
  func.func @transform_3(%arg0: i32, %arg1: i32) -> (i32, i32, i32, i32) {
    %c0_i32 = arith.constant 0 : i32
    %c0_i32_0 = arith.constant 0 : i32
    %c0_i32_1 = arith.constant 0 : i32
    return %arg0, %arg1, %c0_i32, %c0_i32_0 : i32, i32, i32, i32
  }
}

module attributes {stable_mosaic.version = 11 : i64} {
  func.func @_bn_relu_pool_kernel(%arg0: i32, %arg1: i32, %arg2: memref<1x256x16xbf16, #tpu.memory_space<vmem>>, %arg3: memref<1x16xf32, #tpu.memory_space<vmem>>, %arg4: memref<1x16xf32, #tpu.memory_space<vmem>>, %arg5: memref<1x256x16xbf16, #tpu.memory_space<vmem>>, %arg6: memref<1x1x1x16xf32, #tpu.memory_space<vmem>>) attributes {dimension_semantics = [#tpu.dimension_semantics<parallel>, #tpu.dimension_semantics<parallel>], iteration_bounds = array<i64: 2, 1>, scalar_prefetch = 0 : i64, scratch_operands = 0 : i64, tpu.core_type = #tpu.core_type<tc>, window_params = [{transform_indices = @transform_0, window_bounds = array<i64: 1, 256, 16>}, {pipeline_mode = #tpu.pipeline_mode<synchronous>, transform_indices = @transform_1, window_bounds = array<i64: 1, 16>}, {pipeline_mode = #tpu.pipeline_mode<synchronous>, transform_indices = @transform_2, window_bounds = array<i64: 1, 16>}, {transform_indices = @transform_3, window_bounds = array<i64: 1, 256, 16>}, {transform_indices = @transform_4, window_bounds = array<i64: 1, 1, 1, 16>}]} {
    %c0 = arith.constant 0 : index
    %c0_0 = arith.constant 0 : index
    %c0_1 = arith.constant 0 : index
    %0 = vector.load %arg2[%c0, %c0_0, %c0_1] : memref<1x256x16xbf16, #tpu.memory_space<vmem>>, vector<1x256x16xbf16>
    %1 = vector.shape_cast %0 : vector<1x256x16xbf16> to vector<256x16xbf16>
    %2 = arith.extf %1 : vector<256x16xbf16> to vector<256x16xf32>
    %c0_2 = arith.constant 0 : index
    %c0_3 = arith.constant 0 : index
    %3 = vector.load %arg3[%c0_2, %c0_3] : memref<1x16xf32, #tpu.memory_space<vmem>>, vector<1x16xf32>
    %4 = vector.broadcast %3 : vector<1x16xf32> to vector<256x16xf32>
    %5 = arith.mulf %2, %4 : vector<256x16xf32>
    %c0_4 = arith.constant 0 : index
    %c0_5 = arith.constant 0 : index
    %6 = vector.load %arg4[%c0_4, %c0_5] : memref<1x16xf32, #tpu.memory_space<vmem>>, vector<1x16xf32>
    %7 = vector.broadcast %6 : vector<1x16xf32> to vector<256x16xf32>
    %8 = arith.addf %5, %7 : vector<256x16xf32>
    %cst = arith.constant 0.000000e+00 : f32
    %9 = vector.broadcast %cst : f32 to vector<256x16xf32>
    %10 = arith.maximumf %8, %9 : vector<256x16xf32>
    %11 = arith.truncf %10 : vector<256x16xf32> to vector<256x16xbf16>
    %12 = vector.shape_cast %11 : vector<256x16xbf16> to vector<1x256x16xbf16>
    %c0_6 = arith.constant 0 : index
    %c0_7 = arith.constant 0 : index
    %c0_8 = arith.constant 0 : index
    %13 = vector.load %arg5[%c0_6, %c0_7, %c0_8] : memref<1x256x16xbf16, #tpu.memory_space<vmem>>, vector<1x256x16xbf16>
    tpu.vector_store %arg5[%c0_6, %c0_7, %c0_8], %12 {strides = array<i32>} : memref<1x256x16xbf16, #tpu.memory_space<vmem>>, vector<1x256x16xbf16>,
    %cst_9 = arith.constant dense<0.000000e+00> : vector<16xf32>
    %14 = vector.multi_reduction <add>, %10, %cst_9 [0] : vector<256x16xf32> to vector<16xf32>
    %15 = vector.shape_cast %14 : vector<16xf32> to vector<1x16xf32>
    %16 = vector.shape_cast %15 : vector<1x16xf32> to vector<1x1x1x16xf32>
    %c0_10 = arith.constant 0 : index
    %c0_11 = arith.constant 0 : index
    %c0_12 = arith.constant 0 : index
    %c0_13 = arith.constant 0 : index
    %17 = vector.load %arg6[%c0_10, %c0_11, %c0_12, %c0_13] : memref<1x1x1x16xf32, #tpu.memory_space<vmem>>, vector<1x1x1x16xf32>
    tpu.vector_store %arg6[%c0_10, %c0_11, %c0_12, %c0_13], %16 {strides = array<i32>} : memref<1x1x1x16xf32, #tpu.memory_space<vmem>>, vector<1x1x1x16xf32>,
    return
  }
  func.func @transform_0(%arg0: i32, %arg1: i32) -> (i32, i32, i32) {
    %c0_i32 = arith.constant 0 : i32
    %c0_i32_0 = arith.constant 0 : i32
    return %arg0, %arg1, %c0_i32 : i32, i32, i32
  }
  func.func @transform_1(%arg0: i32, %arg1: i32) -> (i32, i32) {
    %c0_i32 = arith.constant 0 : i32
    %c0_i32_0 = arith.constant 0 : i32
    %c0_i32_1 = arith.constant 0 : i32
    return %c0_i32, %c0_i32_0 : i32, i32
  }
  func.func @transform_2(%arg0: i32, %arg1: i32) -> (i32, i32) {
    %c0_i32 = arith.constant 0 : i32
    %c0_i32_0 = arith.constant 0 : i32
    %c0_i32_1 = arith.constant 0 : i32
    return %c0_i32, %c0_i32_0 : i32, i32
  }
  func.func @transform_3(%arg0: i32, %arg1: i32) -> (i32, i32, i32) {
    %c0_i32 = arith.constant 0 : i32
    %c0_i32_0 = arith.constant 0 : i32
    return %arg0, %arg1, %c0_i32 : i32, i32, i32
  }
  func.func @transform_4(%arg0: i32, %arg1: i32) -> (i32, i32, i32, i32) {
    %c0_i32 = arith.constant 0 : i32
    %c0_i32_0 = arith.constant 0 : i32
    %c0_i32_1 = arith.constant 0 : i32
    return %arg0, %arg1, %c0_i32, %c0_i32_0 : i32, i32, i32, i32
  }
}

module attributes {stable_mosaic.version = 11 : i64} {
  func.func @_bn_relu_pool_kernel(%arg0: i32, %arg1: i32, %arg2: memref<1x256x64xbf16, #tpu.memory_space<vmem>>, %arg3: memref<1x64xf32, #tpu.memory_space<vmem>>, %arg4: memref<1x64xf32, #tpu.memory_space<vmem>>, %arg5: memref<1x256x64xbf16, #tpu.memory_space<vmem>>, %arg6: memref<1x1x1x64xf32, #tpu.memory_space<vmem>>) attributes {dimension_semantics = [#tpu.dimension_semantics<parallel>, #tpu.dimension_semantics<parallel>], iteration_bounds = array<i64: 2, 1>, scalar_prefetch = 0 : i64, scratch_operands = 0 : i64, tpu.core_type = #tpu.core_type<tc>, window_params = [{transform_indices = @transform_0, window_bounds = array<i64: 1, 256, 64>}, {pipeline_mode = #tpu.pipeline_mode<synchronous>, transform_indices = @transform_1, window_bounds = array<i64: 1, 64>}, {pipeline_mode = #tpu.pipeline_mode<synchronous>, transform_indices = @transform_2, window_bounds = array<i64: 1, 64>}, {transform_indices = @transform_3, window_bounds = array<i64: 1, 256, 64>}, {transform_indices = @transform_4, window_bounds = array<i64: 1, 1, 1, 64>}]} {
    %c0 = arith.constant 0 : index
    %c0_0 = arith.constant 0 : index
    %c0_1 = arith.constant 0 : index
    %0 = vector.load %arg2[%c0, %c0_0, %c0_1] : memref<1x256x64xbf16, #tpu.memory_space<vmem>>, vector<1x256x64xbf16>
    %1 = vector.shape_cast %0 : vector<1x256x64xbf16> to vector<256x64xbf16>
    %2 = arith.extf %1 : vector<256x64xbf16> to vector<256x64xf32>
    %c0_2 = arith.constant 0 : index
    %c0_3 = arith.constant 0 : index
    %3 = vector.load %arg3[%c0_2, %c0_3] : memref<1x64xf32, #tpu.memory_space<vmem>>, vector<1x64xf32>
    %4 = vector.broadcast %3 : vector<1x64xf32> to vector<256x64xf32>
    %5 = arith.mulf %2, %4 : vector<256x64xf32>
    %c0_4 = arith.constant 0 : index
    %c0_5 = arith.constant 0 : index
    %6 = vector.load %arg4[%c0_4, %c0_5] : memref<1x64xf32, #tpu.memory_space<vmem>>, vector<1x64xf32>
    %7 = vector.broadcast %6 : vector<1x64xf32> to vector<256x64xf32>
    %8 = arith.addf %5, %7 : vector<256x64xf32>
    %cst = arith.constant 0.000000e+00 : f32
    %9 = vector.broadcast %cst : f32 to vector<256x64xf32>
    %10 = arith.maximumf %8, %9 : vector<256x64xf32>
    %11 = arith.truncf %10 : vector<256x64xf32> to vector<256x64xbf16>
    %12 = vector.shape_cast %11 : vector<256x64xbf16> to vector<1x256x64xbf16>
    %c0_6 = arith.constant 0 : index
    %c0_7 = arith.constant 0 : index
    %c0_8 = arith.constant 0 : index
    %13 = vector.load %arg5[%c0_6, %c0_7, %c0_8] : memref<1x256x64xbf16, #tpu.memory_space<vmem>>, vector<1x256x64xbf16>
    tpu.vector_store %arg5[%c0_6, %c0_7, %c0_8], %12 {strides = array<i32>} : memref<1x256x64xbf16, #tpu.memory_space<vmem>>, vector<1x256x64xbf16>,
    %cst_9 = arith.constant dense<0.000000e+00> : vector<64xf32>
    %14 = vector.multi_reduction <add>, %10, %cst_9 [0] : vector<256x64xf32> to vector<64xf32>
    %15 = vector.shape_cast %14 : vector<64xf32> to vector<1x64xf32>
    %16 = vector.shape_cast %15 : vector<1x64xf32> to vector<1x1x1x64xf32>
    %c0_10 = arith.constant 0 : index
    %c0_11 = arith.constant 0 : index
    %c0_12 = arith.constant 0 : index
    %c0_13 = arith.constant 0 : index
    %17 = vector.load %arg6[%c0_10, %c0_11, %c0_12, %c0_13] : memref<1x1x1x64xf32, #tpu.memory_space<vmem>>, vector<1x1x1x64xf32>
    tpu.vector_store %arg6[%c0_10, %c0_11, %c0_12, %c0_13], %16 {strides = array<i32>} : memref<1x1x1x64xf32, #tpu.memory_space<vmem>>, vector<1x1x1x64xf32>,
    return
  }
  func.func @transform_0(%arg0: i32, %arg1: i32) -> (i32, i32, i32) {
    %c0_i32 = arith.constant 0 : i32
    %c0_i32_0 = arith.constant 0 : i32
    return %arg0, %arg1, %c0_i32 : i32, i32, i32
  }
  func.func @transform_1(%arg0: i32, %arg1: i32) -> (i32, i32) {
    %c0_i32 = arith.constant 0 : i32
    %c0_i32_0 = arith.constant 0 : i32
    %c0_i32_1 = arith.constant 0 : i32
    return %c0_i32, %c0_i32_0 : i32, i32
  }
  func.func @transform_2(%arg0: i32, %arg1: i32) -> (i32, i32) {
    %c0_i32 = arith.constant 0 : i32
    %c0_i32_0 = arith.constant 0 : i32
    %c0_i32_1 = arith.constant 0 : i32
    return %c0_i32, %c0_i32_0 : i32, i32
  }
  func.func @transform_3(%arg0: i32, %arg1: i32) -> (i32, i32, i32) {
    %c0_i32 = arith.constant 0 : i32
    %c0_i32_0 = arith.constant 0 : i32
    return %arg0, %arg1, %c0_i32 : i32, i32, i32
  }
  func.func @transform_4(%arg0: i32, %arg1: i32) -> (i32, i32, i32, i32) {
    %c0_i32 = arith.constant 0 : i32
    %c0_i32_0 = arith.constant 0 : i32
    %c0_i32_1 = arith.constant 0 : i32
    return %arg0, %arg1, %c0_i32, %c0_i32_0 : i32, i32, i32, i32
  }
}

module attributes {stable_mosaic.version = 11 : i64} {
  func.func @_conv_stats_kernel(%arg0: i32, %arg1: i32, %arg2: memref<1x256x144xbf16, #tpu.memory_space<vmem>>, %arg3: memref<144x64xbf16, #tpu.memory_space<vmem>>, %arg4: memref<1x256x64xbf16, #tpu.memory_space<vmem>>, %arg5: memref<1x1x1x128xf32, #tpu.memory_space<vmem>>) attributes {dimension_semantics = [#tpu.dimension_semantics<parallel>, #tpu.dimension_semantics<parallel>], iteration_bounds = array<i64: 2, 1>, scalar_prefetch = 0 : i64, scratch_operands = 0 : i64, tpu.core_type = #tpu.core_type<tc>, window_params = [{transform_indices = @transform_0, window_bounds = array<i64: 1, 256, 144>}, {pipeline_mode = #tpu.pipeline_mode<synchronous>, transform_indices = @transform_1, window_bounds = array<i64: 144, 64>}, {transform_indices = @transform_2, window_bounds = array<i64: 1, 256, 64>}, {transform_indices = @transform_3, window_bounds = array<i64: 1, 1, 1, 128>}]} {
    %c0 = arith.constant 0 : index
    %c0_0 = arith.constant 0 : index
    %c0_1 = arith.constant 0 : index
    %0 = vector.load %arg2[%c0, %c0_0, %c0_1] : memref<1x256x144xbf16, #tpu.memory_space<vmem>>, vector<1x256x144xbf16>
    %1 = vector.shape_cast %0 : vector<1x256x144xbf16> to vector<256x144xbf16>
    %c0_2 = arith.constant 0 : index
    %c0_3 = arith.constant 0 : index
    %2 = vector.load %arg3[%c0_2, %c0_3] : memref<144x64xbf16, #tpu.memory_space<vmem>>, vector<144x64xbf16>
    %cst = arith.constant dense<0.000000e+00> : vector<256x64xf32>
    %3 = tpu.matmul %1, %2, %cst {dimension_numbers = #tpu.dot_dimension_numbers<[1], [0], [0], [1], [0, 0, 1, 1], [], []>} : vector<256x144xbf16>, vector<144x64xbf16>, vector<256x64xf32> -> vector<256x64xf32>
    %4 = arith.truncf %3 : vector<256x64xf32> to vector<256x64xbf16>
    %5 = vector.shape_cast %4 : vector<256x64xbf16> to vector<1x256x64xbf16>
    %c0_4 = arith.constant 0 : index
    %c0_5 = arith.constant 0 : index
    %c0_6 = arith.constant 0 : index
    %6 = vector.load %arg4[%c0_4, %c0_5, %c0_6] : memref<1x256x64xbf16, #tpu.memory_space<vmem>>, vector<1x256x64xbf16>
    tpu.vector_store %arg4[%c0_4, %c0_5, %c0_6], %5 {strides = array<i32>} : memref<1x256x64xbf16, #tpu.memory_space<vmem>>, vector<1x256x64xbf16>,
    %cst_7 = arith.constant dense<0.000000e+00> : vector<64xf32>
    %7 = vector.multi_reduction <add>, %3, %cst_7 [0] : vector<256x64xf32> to vector<64xf32>
    %8 = vector.shape_cast %7 : vector<64xf32> to vector<1x64xf32>
    %9 = arith.mulf %3, %3 : vector<256x64xf32>
    %cst_8 = arith.constant dense<0.000000e+00> : vector<64xf32>
    %10 = vector.multi_reduction <add>, %9, %cst_8 [0] : vector<256x64xf32> to vector<64xf32>
    %11 = vector.shape_cast %10 : vector<64xf32> to vector<1x64xf32>
    %12 = tpu.concatenate %8, %11 in 1 : vector<1x64xf32>, vector<1x64xf32> -> vector<1x128xf32>
    %13 = vector.shape_cast %12 : vector<1x128xf32> to vector<1x1x1x128xf32>
    %c0_9 = arith.constant 0 : index
    %c0_10 = arith.constant 0 : index
    %c0_11 = arith.constant 0 : index
    %c0_12 = arith.constant 0 : index
    %14 = vector.load %arg5[%c0_9, %c0_10, %c0_11, %c0_12] : memref<1x1x1x128xf32, #tpu.memory_space<vmem>>, vector<1x1x1x128xf32>
    tpu.vector_store %arg5[%c0_9, %c0_10, %c0_11, %c0_12], %13 {strides = array<i32>} : memref<1x1x1x128xf32, #tpu.memory_space<vmem>>, vector<1x1x1x128xf32>,
    return
  }
  func.func @transform_0(%arg0: i32, %arg1: i32) -> (i32, i32, i32) {
    %c0_i32 = arith.constant 0 : i32
    %c0_i32_0 = arith.constant 0 : i32
    return %arg0, %arg1, %c0_i32 : i32, i32, i32
  }
  func.func @transform_1(%arg0: i32, %arg1: i32) -> (i32, i32) {
    %c0_i32 = arith.constant 0 : i32
    %c0_i32_0 = arith.constant 0 : i32
    %c0_i32_1 = arith.constant 0 : i32
    return %c0_i32, %c0_i32_0 : i32, i32
  }
  func.func @transform_2(%arg0: i32, %arg1: i32) -> (i32, i32, i32) {
    %c0_i32 = arith.constant 0 : i32
    %c0_i32_0 = arith.constant 0 : i32
    return %arg0, %arg1, %c0_i32 : i32, i32, i32
  }
  func.func @transform_3(%arg0: i32, %arg1: i32) -> (i32, i32, i32, i32) {
    %c0_i32 = arith.constant 0 : i32
    %c0_i32_0 = arith.constant 0 : i32
    %c0_i32_1 = arith.constant 0 : i32
    return %arg0, %arg1, %c0_i32, %c0_i32_0 : i32, i32, i32, i32
  }
}

module attributes {stable_mosaic.version = 11 : i64} {
  func.func @_scse_kernel(%arg0: i32, %arg1: i32, %arg2: memref<1x256x64xbf16, #tpu.memory_space<vmem>>, %arg3: memref<1x1x64xf32, #tpu.memory_space<vmem>>, %arg4: memref<1x64xf32, #tpu.memory_space<vmem>>, %arg5: memref<1x256x64xf32, #tpu.memory_space<vmem>>) attributes {dimension_semantics = [#tpu.dimension_semantics<parallel>, #tpu.dimension_semantics<parallel>], iteration_bounds = array<i64: 2, 1>, scalar_prefetch = 0 : i64, scratch_operands = 0 : i64, tpu.core_type = #tpu.core_type<tc>, window_params = [{transform_indices = @transform_0, window_bounds = array<i64: 1, 256, 64>}, {transform_indices = @transform_1, window_bounds = array<i64: 1, 1, 64>}, {pipeline_mode = #tpu.pipeline_mode<synchronous>, transform_indices = @transform_2, window_bounds = array<i64: 1, 64>}, {transform_indices = @transform_3, window_bounds = array<i64: 1, 256, 64>}]} {
    %c0 = arith.constant 0 : index
    %c0_0 = arith.constant 0 : index
    %c0_1 = arith.constant 0 : index
    %0 = vector.load %arg2[%c0, %c0_0, %c0_1] : memref<1x256x64xbf16, #tpu.memory_space<vmem>>, vector<1x256x64xbf16>
    %1 = vector.shape_cast %0 : vector<1x256x64xbf16> to vector<256x64xbf16>
    %2 = arith.extf %1 : vector<256x64xbf16> to vector<256x64xf32>
    %c0_2 = arith.constant 0 : index
    %c0_3 = arith.constant 0 : index
    %3 = vector.load %arg4[%c0_2, %c0_3] : memref<1x64xf32, #tpu.memory_space<vmem>>, vector<1x64xf32>
    %4 = vector.broadcast %3 : vector<1x64xf32> to vector<256x64xf32>
    %5 = arith.mulf %2, %4 : vector<256x64xf32>
    %cst = arith.constant dense<0.000000e+00> : vector<256xf32>
    %6 = vector.multi_reduction <add>, %5, %cst [1] : vector<256x64xf32> to vector<256xf32>
    %7 = vector.shape_cast %6 : vector<256xf32> to vector<256x1xf32>
    %8 = arith.negf %7 : vector<256x1xf32>
    %9 = math.exp %8 : vector<256x1xf32>
    %cst_4 = arith.constant 1.000000e+00 : f32
    %10 = vector.broadcast %cst_4 : f32 to vector<256x1xf32>
    %11 = arith.addf %10, %9 : vector<256x1xf32>
    %12 = arith.divf %10, %11 : vector<256x1xf32>
    %c0_5 = arith.constant 0 : index
    %c0_6 = arith.constant 0 : index
    %c0_7 = arith.constant 0 : index
    %13 = vector.load %arg3[%c0_5, %c0_6, %c0_7] : memref<1x1x64xf32, #tpu.memory_space<vmem>>, vector<1x1x64xf32>
    %14 = vector.shape_cast %13 : vector<1x1x64xf32> to vector<1x64xf32>
    %15 = vector.broadcast %14 : vector<1x64xf32> to vector<256x64xf32>
    %16 = vector.broadcast %12 : vector<256x1xf32> to vector<256x64xf32>
    %17 = arith.addf %15, %16 : vector<256x64xf32>
    %18 = arith.mulf %2, %17 : vector<256x64xf32>
    %19 = vector.shape_cast %18 : vector<256x64xf32> to vector<1x256x64xf32>
    %c0_8 = arith.constant 0 : index
    %c0_9 = arith.constant 0 : index
    %c0_10 = arith.constant 0 : index
    %20 = vector.load %arg5[%c0_8, %c0_9, %c0_10] : memref<1x256x64xf32, #tpu.memory_space<vmem>>, vector<1x256x64xf32>
    tpu.vector_store %arg5[%c0_8, %c0_9, %c0_10], %19 {strides = array<i32>} : memref<1x256x64xf32, #tpu.memory_space<vmem>>, vector<1x256x64xf32>,
    return
  }
  func.func @transform_0(%arg0: i32, %arg1: i32) -> (i32, i32, i32) {
    %c0_i32 = arith.constant 0 : i32
    %c0_i32_0 = arith.constant 0 : i32
    return %arg0, %arg1, %c0_i32 : i32, i32, i32
  }
  func.func @transform_1(%arg0: i32, %arg1: i32) -> (i32, i32, i32) {
    %c0_i32 = arith.constant 0 : i32
    %c0_i32_0 = arith.constant 0 : i32
    %c0_i32_1 = arith.constant 0 : i32
    return %arg0, %c0_i32, %c0_i32_0 : i32, i32, i32
  }
  func.func @transform_2(%arg0: i32, %arg1: i32) -> (i32, i32) {
    %c0_i32 = arith.constant 0 : i32
    %c0_i32_0 = arith.constant 0 : i32
    %c0_i32_1 = arith.constant 0 : i32
    return %c0_i32, %c0_i32_0 : i32, i32
  }
  func.func @transform_3(%arg0: i32, %arg1: i32) -> (i32, i32, i32) {
    %c0_i32 = arith.constant 0 : i32
    %c0_i32_0 = arith.constant 0 : i32
    return %arg0, %arg1, %c0_i32 : i32, i32, i32
  }
}

</mosaic_0001>

<bundles_post_ra>
// kernel: decoder_forward.5
= control target key start
LH: loop header
LB: loop body
LE: loop exit
PB: predicated region body
PF: predicated region fallthrough
CT: control target
= control target key end

     0   :  { %s1331_s12 = smov 0   ;;  %s1333_s13 = smov 0   ;;  %s1667_s0 = inlined_call_operand.vmem [shape: bf16[2,256,72], index: 0, kind: input, shape index: {}]   ;;  %s1668_s1 = inlined_call_operand.vmem [shape: bf16[72,16], index: 1, kind: input, shape index: {}]   ;;  %s1669_s2 = inlined_call_operand.vmem [shape: bf16[2,256,16], index: 2, kind: output, shape index: {0}]   ;;  %s1670_s3 = inlined_call_operand.vmem [shape: f32[2,1,1,32], index: 3, kind: output, shape index: {1}]  }
   0x1   :  { %s1335_s14 = smov 0  }
   0x2 LB: > { %s26_s15 = sadd.s32 1, %s1304_s13  ;;  %p1055_p0 = scmp.ge.s32.totalorder %s1308_s14, 1  ;;  %s1308_s14 = sphi %s1335_s14, %s14_s14   ;;  %s1304_s13 = sphi %s1333_s13, %s1672_s13   ;;  %s1300_s12 = sphi %s1331_s12, %s1671_s12  }
   0x3   : > { %p28_p1 = scmp.ge.s32.totalorder %s26_s15, 2  ;;  %p163_p2 = scmp.lt.s32.totalorder %s1308_s14, 3 }
   0x5   : > { %s1674_s15 = smov (%p28_p1, %s26_s15), 0  ;;  %p164_p3 = pnand %p1055_p0, %p163_p2 }
   0x6   : > { %p202_p4 = scmp.lt.s32.totalorder (!%p164_p3), %s1300_s12, 1  ;;  %s1310_s6 = smov (!%p164_p3), 16  }
   0x7   : > { %167 = sbr.rel (%p164_p3) target bundleno = 426 (0x1aa), region = 28 }
   0xc   : > { %v1265_v0 = vld [vmem:[%s1668_s1 + $0x20] ss:$0 sps:$4 sm:$0xff]   ;;  %vm425_vm0 = vcmask 1043456   ;;  %v1266_v1 = vld [vmem:[%s1668_s1 + $0x18] sm:$0xff]   ;;  %v1267_v3 = vld [vmem:[%s1668_s1 + $0x10] sm:$0xff]   ;;  %s1676_s12 = smov (!%p202_p4, %s1300_s12), 1 }
   0xd   : > { %1238 = vmatprep.subr.msk.bf16.mxu0 %vm425_vm0, %v1265_v0  ;;  %v427_v2 = vsel %vm425_vm0, %v1265_v0, 0  ;;  %1239 = vmatprep.subr.msk.bf16.mxu1 %vm425_vm0, %v1265_v0  ;;  %s1131_s22 = sshll.u32 %s1676_s12, 7  ;;  %v1268_v4 = vld [vmem:[%s1668_s1 + $0x8] sm:$0xff]   ;;  %vm376_vm1 = vcmask 588800   ;;  %v1269_v6 = vld [vmem:[%s1668_s1] sm:$0xff]   ;;  %vm718_vm2 = vcmask 125952   ;;  %s226_s9 = scalar_lea.vmem %s1670_s3, %s1676_s12 }
   0xe   : > { %1187 = vmatpush3.bf16.msra.mxu0 %v427_v2  ;;  %1233 = vmatpush3.bf16.msra.mxu1 %v427_v2  ;;  %s1369_s27 = scalar_lea.vmem %s1667_s0, %s1131_s22  ;;  %s1411_s5 = scalar_lea.vmem %s1669_s2, %s1131_s22  ;;  %vm751_vm3 = vcmask 130048   ;;  %vm927_vm4 = vcmask 253952  }
   0xf   : > { %1188 = vmatprep.subr.bf16.mxu0 %v1266_v1  ;;  %1229 = vmatprep.subr.bf16.mxu1 %v1266_v1  ;;  %v1270_v5 = vld [vmem:[%s1369_s27] sm:$0xff]   ;;  %v1271_v7 = vld [vmem:[%s1369_s27 + $0x8] sm:$0xff]   ;;  %v1272_v9 = vld [vmem:[%s1369_s27 + $0x10] sm:$0xff]  }
  0x10   : > { %1196 = vmatprep.mubr.msk.bf16.mxu0 %vm376_vm1, %v1270_v5  ;;  %v1278_v8 = vld [vmem:[%s1369_s27 + $0x40] sm:$0xff]   ;;  %v1279_v10 = vld [vmem:[%s1369_s27 + $0x48] sm:$0xff]   ;;  %v1280_v11 = vld [vmem:[%s1369_s27 + $0x50] sm:$0xff]  }
  0x11   : > { %1212 = vmatprep.mubr.msk.bf16.mxu1 %vm376_vm1, %v1278_v8  ;;  %v1273_v12 = vld [vmem:[%s1369_s27 + $0x18] sm:$0xff]   ;;  %v1274_v13 = vld [vmem:[%s1369_s27 + $0x20] sm:$0xff]   ;;  %v1275_v16 = vld [vmem:[%s1369_s27 + $0x28] sm:$0xff]  }
  0x12   : > { %1189 = vmatpush3.bf16.msra.mxu0 %v1266_v1  ;;  %1234 = vmatpush3.bf16.msra.mxu1 %v1266_v1  ;;  %v1281_v14 = vld [vmem:[%s1369_s27 + $0x58] sm:$0xff]   ;;  %v1282_v15 = vld [vmem:[%s1369_s27 + $0x60] sm:$0xff]   ;;  %v1276_v17 = vld [vmem:[%s1369_s27 + $0x30] sm:$0xff]  }
  0x13   : > { %1190 = vmatprep.subr.bf16.mxu0 %v1267_v3  ;;  %1230 = vmatprep.subr.bf16.mxu1 %v1267_v3  ;;  %v1283_v18 = vld [vmem:[%s1369_s27 + $0x68] sm:$0xff]   ;;  %v1284_v19 = vld [vmem:[%s1369_s27 + $0x70] sm:$0xff]   ;;  %v1277_v20 = vld [vmem:[%s1369_s27 + $0x38] sm:$0xff]  }
  0x14   : > { %v1285_v21 = vld [vmem:[%s1369_s27 + $0x78] sm:$0xff]  }
  0x16   : > { %1191 = vmatpush3.bf16.msra.mxu0 %v1267_v3  ;;  %1235 = vmatpush3.bf16.msra.mxu1 %v1267_v3 }
  0x17   : > { %1192 = vmatprep.subr.bf16.mxu0 %v1268_v4  ;;  %1231 = vmatprep.subr.bf16.mxu1 %v1268_v4 }
  0x1a   : > { %1193 = vmatpush3.bf16.msra.mxu0 %v1268_v4  ;;  %1236 = vmatpush3.bf16.msra.mxu1 %v1268_v4 }
  0x1b   : > { %1194 = vmatprep.subr.bf16.mxu0 %v1269_v6  ;;  %1232 = vmatprep.subr.bf16.mxu1 %v1269_v6 }
  0x1e   : > { %1195 = vmatpush3.bf16.msra.mxu0 %v1269_v6  ;;  %1237 = vmatpush3.bf16.msra.mxu1 %v1269_v6 }
  0x21   : > { %1197 = vmatmul.mubr.msk.bf16.vlgmr.msra.gmra.mxu0 %vm376_vm1, %v1271_v7  ;;  %1213 = vmatmul.mubr.msk.bf16.vlgmr.msra.gmra.mxu1 %vm376_vm1, %v1279_v10 }
  0x22   : > { %1200 = vmatprep.mubr.msk.bf16.mxu0 %vm376_vm1, %v1272_v9  ;;  %1216 = vmatprep.mubr.msk.bf16.mxu1 %vm376_vm1, %v1280_v11 }
  0x29   : > { %1201 = vmatmul.mubr.msk.bf16.gmra.mxu0 %vm376_vm1, %v1273_v12  ;;  %1217 = vmatmul.mubr.msk.bf16.gmra.mxu1 %vm376_vm1, %v1281_v14 }
  0x2a   : > { %1204 = vmatprep.mubr.msk.bf16.mxu0 %vm376_vm1, %v1274_v13  ;;  %1220 = vmatprep.mubr.msk.bf16.mxu1 %vm376_vm1, %v1282_v15 }
  0x31   : > { %1205 = vmatmul.mubr.msk.bf16.gmra.mxu0 %vm376_vm1, %v1275_v16  ;;  %1221 = vmatmul.mubr.msk.bf16.gmra.mxu1 %vm376_vm1, %v1283_v18 }
  0x32   : > { %1208 = vmatprep.mubr.msk.bf16.mxu0 %vm376_vm1, %v1276_v17  ;;  %1224 = vmatprep.mubr.msk.bf16.mxu1 %vm376_vm1, %v1284_v19 }
  0x39   : > { %1209 = vmatmul.mubr.msk.bf16.gmra.mxu0 %vm376_vm1, %v1277_v20  ;;  %1225 = vmatmul.mubr.msk.bf16.gmra.mxu1 %vm376_vm1, %v1285_v21 }
  0xe1   : > { %v1198_v22 = vpop.f32.mrf.mxu0  ;;  %v1413_v24 = vpop.f32.mrf.mxu1 }
  0xe2   : > { %v1135_v23 = vpack.c.bf16 %v1198_v22, %v1198_v22  ;;  %v1151_v26 = vpack.c.bf16 %v1413_v24, %v1413_v24  ;;  %v823_v34 = vmul.f32 %v1198_v22, %v1198_v22  ;;  %v755_v42 = vsel %vm751_vm3, %v1198_v22, 0.0 }
  0xe3   : > { %v463_v25 = vpop.f32.mrf.mxu0  ;;  %v1419_v28 = vpop.f32.mrf.mxu1 }
  0xe4   : > { %721 = vst.msk [vmem:[%s1411_s5 + $0x8] sm:$0xf] %vm718_vm2, %v1135_v23  ;;  %v1133_v27 = vpack.c.bf16 %v463_v25, %v463_v25  ;;  %737 = vst.msk [vmem:[%s1411_s5 + $0x48] sm:$0xf] %vm718_vm2, %v1151_v26  ;;  %v1149_v30 = vpack.c.bf16 %v1419_v28, %v1419_v28  ;;  %v821_v31 = vmul.f32 %v463_v25, %v463_v25  ;;  %v752_v37 = vsel %vm751_vm3, %v463_v25, 0.0 }
  0xe5   : > { %v1199_v29 = vpop.f32.mrf.mxu0  ;;  %v1427_v33 = vpop.f32.mrf.mxu1  ;;  %v856_v55 = vsel %vm751_vm3, %v823_v34, 0.0 }
  0xe6   : > { %719 = vst.msk [vmem:[%s1411_s5] sm:$0xf] %vm718_vm2, %v1133_v27  ;;  %v1136_v32 = vpack.c.bf16 %v1199_v29, %v1199_v29  ;;  %735 = vst.msk [vmem:[%s1411_s5 + $0x40] sm:$0xf] %vm718_vm2, %v1149_v30  ;;  %v1152_v36 = vpack.c.bf16 %v1427_v33, %v1427_v33  ;;  %v853_v46 = vsel %vm751_vm3, %v821_v31, 0.0  ;;  %v824_v47 = vmul.f32 %v1199_v29, %v1199_v29 }
  0xe7   : > { %v466_v35 = vpop.f32.mrf.mxu0  ;;  %v1437_v41 = vpop.f32.mrf.mxu1  ;;  %v757_v56 = vsel %vm751_vm3, %v1199_v29, 0.0 }
  0xe8   : > { %722 = vst.msk [vmem:[%s1411_s5 + $0xc] sm:$0xf] %vm718_vm2, %v1136_v32  ;;  %v1134_v38 = vpack.c.bf16 %v466_v35, %v466_v35  ;;  %v753_v39 = vsel %vm751_vm3, %v466_v35, 0.0  ;;  %v822_v40 = vmul.f32 %v466_v35, %v466_v35  ;;  %738 = vst.msk [vmem:[%s1411_s5 + $0x4c] sm:$0xf] %vm718_vm2, %v1152_v36  ;;  %v1150_v45 = vpack.c.bf16 %v1437_v41, %v1437_v41 }
  0xe9   : > { %v754_v43 = vadd.f32 %v753_v39, %v752_v37  ;;  %v1202_v44 = vpop.f32.mrf.mxu0  ;;  %v1448_v50 = vpop.f32.mrf.mxu1  ;;  %v858_v63 = vsel %vm751_vm3, %v824_v47, 0.0 }
  0xea   : > { %720 = vst.msk [vmem:[%s1411_s5 + $0x4] sm:$0xf] %vm718_vm2, %v1134_v38  ;;  %v854_v48 = vsel %vm751_vm3, %v822_v40, 0.0  ;;  %v1139_v49 = vpack.c.bf16 %v1202_v44, %v1202_v44  ;;  %736 = vst.msk [vmem:[%s1411_s5 + $0x44] sm:$0xf] %vm718_vm2, %v1150_v45  ;;  %v1155_v54 = vpack.c.bf16 %v1448_v50, %v1448_v50  ;;  %v827_v3 = vmul.f32 %v1202_v44, %v1202_v44 }
  0xeb   : > { %v756_v51 = vadd.f32 %v755_v42, %v754_v43  ;;  %v855_v52 = vadd.f32 %v854_v48, %v853_v46  ;;  %v479_v53 = vpop.f32.mrf.mxu0  ;;  %v1458_v59 = vpop.f32.mrf.mxu1  ;;  %v763_v16 = vsel %vm751_vm3, %v1202_v44, 0.0 }
  0xec   : > { %725 = vst.msk [vmem:[%s1411_s5 + $0x18] sm:$0xf] %vm718_vm2, %v1139_v49  ;;  %v1137_v57 = vpack.c.bf16 %v479_v53, %v479_v53  ;;  %v825_v58 = vmul.f32 %v479_v53, %v479_v53  ;;  %741 = vst.msk [vmem:[%s1411_s5 + $0x58] sm:$0xf] %vm718_vm2, %v1155_v54  ;;  %v759_v0 = vsel %vm751_vm3, %v479_v53, 0.0  ;;  %v1153_v7 = vpack.c.bf16 %v1458_v59, %v1458_v59 }
  0xed   : > { %v857_v60 = vadd.f32 %v856_v55, %v855_v52  ;;  %v758_v61 = vadd.f32 %v757_v56, %v756_v51  ;;  %v1203_v62 = vpop.f32.mrf.mxu0  ;;  %v1466_v2 = vpop.f32.mrf.mxu1  ;;  %v864_v26 = vsel %vm751_vm3, %v827_v3, 0.0 }
  0xee   : > { %723 = vst.msk [vmem:[%s1411_s5 + $0x10] sm:$0xf] %vm718_vm2, %v1137_v57  ;;  %v1140_v1 = vpack.c.bf16 %v1203_v62, %v1203_v62  ;;  %v860_v8 = vsel %vm751_vm3, %v825_v58, 0.0  ;;  %739 = vst.msk [vmem:[%s1411_s5 + $0x50] sm:$0xf] %vm718_vm2, %v1153_v7  ;;  %v828_v17 = vmul.f32 %v1203_v62, %v1203_v62  ;;  %v1156_v25 = vpack.c.bf16 %v1466_v2, %v1466_v2 }
  0xef   : > { %v760_v4 = vadd.f32 %v759_v0, %v758_v61  ;;  %v859_v5 = vadd.f32 %v858_v63, %v857_v60  ;;  %v482_v6 = vpop.f32.mrf.mxu0  ;;  %v1474_v12 = vpop.f32.mrf.mxu1  ;;  %v765_v27 = vsel %vm751_vm3, %v1203_v62, 0.0 }
  0xf0   : > { %726 = vst.msk [vmem:[%s1411_s5 + $0x1c] sm:$0xf] %vm718_vm2, %v1140_v1  ;;  %v1138_v9 = vpack.c.bf16 %v482_v6, %v482_v6  ;;  %v761_v10 = vsel %vm751_vm3, %v482_v6, 0.0  ;;  %v826_v11 = vmul.f32 %v482_v6, %v482_v6  ;;  %742 = vst.msk [vmem:[%s1411_s5 + $0x5c] sm:$0xf] %vm718_vm2, %v1156_v25  ;;  %v866_v36 = vsel %vm751_vm3, %v828_v17, 0.0 }
  0xf1   : > { %v861_v13 = vadd.f32 %v860_v8, %v859_v5  ;;  %v762_v14 = vadd.f32 %v761_v10, %v760_v4  ;;  %v1206_v15 = vpop.f32.mrf.mxu0  ;;  %v1482_v20 = vpop.f32.mrf.mxu1  ;;  %v1154_v45 = vpack.c.bf16 %v1474_v12, %v1474_v12 }
  0xf2   : > { %724 = vst.msk [vmem:[%s1411_s5 + $0x14] sm:$0xf] %vm718_vm2, %v1138_v9  ;;  %v862_v18 = vsel %vm751_vm3, %v826_v11, 0.0  ;;  %v1143_v19 = vpack.c.bf16 %v1206_v15, %v1206_v15  ;;  %v831_v40 = vmul.f32 %v1206_v15, %v1206_v15  ;;  %v771_v55 = vsel %vm751_vm3, %v1206_v15, 0.0 }
  0xf3   : > { %v764_v21 = vadd.f32 %v763_v16, %v762_v14  ;;  %v863_v22 = vadd.f32 %v862_v18, %v861_v13  ;;  %v495_v23 = vpop.f32.mrf.mxu0  ;;  %v1490_v31 = vpop.f32.mrf.mxu1  ;;  %740 = vst.msk [vmem:[%s1411_s5 + $0x54] sm:$0xf] %vm718_vm2, %v1154_v45  ;;  %v1159_v0 = vpack.c.bf16 %v1482_v20, %v1482_v20 }
  0xf4   : > { %729 = vst.msk [vmem:[%s1411_s5 + $0x28] sm:$0xf] %vm718_vm2, %v1143_v19  ;;  %v1141_v29 = vpack.c.bf16 %v495_v23, %v495_v23  ;;  %v829_v30 = vmul.f32 %v495_v23, %v495_v23  ;;  %v767_v37 = vsel %vm751_vm3, %v495_v23, 0.0  ;;  %v872_v1 = vsel %vm751_vm3, %v831_v40, 0.0 }
  0xf5   : > { %v865_v32 = vadd.f32 %v864_v26, %v863_v22  ;;  %v766_v34 = vadd.f32 %v765_v27, %v764_v21  ;;  %v1207_v35 = vpop.f32.mrf.mxu0  ;;  %v1498_v39 = vpop.f32.mrf.mxu1  ;;  %745 = vst.msk [vmem:[%s1411_s5 + $0x68] sm:$0xf] %vm718_vm2, %v1159_v0  ;;  %v1157_v18 = vpack.c.bf16 %v1490_v31, %v1490_v31  ;;  %v840_v0 = vmul.f32 %v1427_v33, %v1427_v33 }
  0xf6   : > { %727 = vst.msk [vmem:[%s1411_s5 + $0x20] sm:$0xf] %vm718_vm2, %v1141_v29  ;;  %v1144_v38 = vpack.c.bf16 %v1207_v35, %v1207_v35  ;;  %v868_v46 = vsel %vm751_vm3, %v829_v30, 0.0  ;;  %v832_v56 = vmul.f32 %v1207_v35, %v1207_v35  ;;  %v773_v3 = vsel %vm751_vm3, %v1207_v35, 0.0 }
  0xf7   : > { %v768_v42 = vadd.f32 %v767_v37, %v766_v34  ;;  %v867_v43 = vadd.f32 %v866_v36, %v865_v32  ;;  %v498_v44 = vpop.f32.mrf.mxu0  ;;  %v1506_v51 = vpop.f32.mrf.mxu1  ;;  %743 = vst.msk [vmem:[%s1411_s5 + $0x60] sm:$0xf] %vm718_vm2, %v1157_v18  ;;  %v1160_v34 = vpack.c.bf16 %v1498_v39, %v1498_v39 }
  0xf8   : > { %730 = vst.msk [vmem:[%s1411_s5 + $0x2c] sm:$0xf] %vm718_vm2, %v1144_v38  ;;  %v1142_v47 = vpack.c.bf16 %v498_v44, %v498_v44  ;;  %v769_v48 = vsel %vm751_vm3, %v498_v44, 0.0  ;;  %v830_v49 = vmul.f32 %v498_v44, %v498_v44  ;;  %v874_v10 = vsel %vm751_vm3, %v832_v56, 0.0 }
  0xf9   : > { %v869_v52 = vadd.f32 %v868_v46, %v867_v43  ;;  %v770_v53 = vadd.f32 %v769_v48, %v768_v42  ;;  %v1210_v54 = vpop.f32.mrf.mxu0  ;;  %v1514_v60 = vpop.f32.mrf.mxu1  ;;  %v1158_v37 = vpack.c.bf16 %v1506_v51, %v1506_v51  ;;  %v837_v42 = vmul.f32 %v1419_v28, %v1419_v28  ;;  %746 = vst.msk [vmem:[%s1411_s5 + $0x6c] sm:$0xf] %vm718_vm2, %v1160_v34 }
  0xfa   : > { %728 = vst.msk [vmem:[%s1411_s5 + $0x24] sm:$0xf] %vm718_vm2, %v1142_v47  ;;  %v870_v57 = vsel %vm751_vm3, %v830_v49, 0.0  ;;  %v1147_v58 = vpack.c.bf16 %v1210_v54, %v1210_v54  ;;  %v835_v14 = vmul.f32 %v1210_v54, %v1210_v54  ;;  %v779_v29 = vsel %vm751_vm3, %v1210_v54, 0.0 }
  0xfb   : > { %v772_v61 = vadd.f32 %v771_v55, %v770_v53  ;;  %v871_v62 = vadd.f32 %v870_v57, %v869_v52  ;;  %v511_v63 = vpop.f32.mrf.mxu0  ;;  %v1524_v9 = vpop.f32.mrf.mxu1  ;;  %v1163_v43 = vpack.c.bf16 %v1514_v60, %v1514_v60  ;;  %744 = vst.msk [vmem:[%s1411_s5 + $0x64] sm:$0xf] %vm718_vm2, %v1158_v37  ;;  %v783_v48 = vsel %vm751_vm3, %v1419_v28, 0.0 }
  0xfc   : > { %733 = vst.msk [vmem:[%s1411_s5 + $0x38] sm:$0xf] %vm718_vm2, %v1147_v58  ;;  %v1145_v4 = vpack.c.bf16 %v511_v63, %v511_v63  ;;  %v833_v5 = vmul.f32 %v511_v63, %v511_v63  ;;  %v775_v11 = vsel %vm751_vm3, %v511_v63, 0.0  ;;  %v880_v38 = vsel %vm751_vm3, %v835_v14, 0.0 }
  0xfd   : > { %v873_v6 = vadd.f32 %v872_v1, %v871_v62  ;;  %v774_v7 = vadd.f32 %v773_v3, %v772_v61  ;;  %v1211_v8 = vpop.f32.mrf.mxu0  ;;  %v1538_v27 = vpop.f32.mrf.mxu1  ;;  %v838_v49 = vmul.f32 %v1437_v41, %v1437_v41  ;;  %749 = vst.msk [vmem:[%s1411_s5 + $0x78] sm:$0xf] %vm718_vm2, %v1163_v43  ;;  %v1161_v52 = vpack.c.bf16 %v1524_v9, %v1524_v9 }
  0xfe   : > { %731 = vst.msk [vmem:[%s1411_s5 + $0x30] sm:$0xf] %vm718_vm2, %v1145_v4  ;;  %v1148_v13 = vpack.c.bf16 %v1211_v8, %v1211_v8  ;;  %v876_v19 = vsel %vm751_vm3, %v833_v5, 0.0  ;;  %v836_v30 = vmul.f32 %v1211_v8, %v1211_v8  ;;  %v781_v40 = vsel %vm751_vm3, %v1211_v8, 0.0 }
  0xff   : > { %v776_v15 = vadd.f32 %v775_v11, %v774_v7  ;;  %v875_v16 = vadd.f32 %v874_v10, %v873_v6  ;;  %v514_v17 = vpop.f32.mrf.mxu0  ;;  %v1558_v46 = vpop.f32.mrf.mxu1  ;;  %v1164_v55 = vpack.c.bf16 %v1538_v27, %v1538_v27  ;;  %v839_v56 = vmul.f32 %v1413_v24, %v1413_v24  ;;  %747 = vst.msk [vmem:[%s1411_s5 + $0x70] sm:$0xf] %vm718_vm2, %v1161_v52 }
 0x100   : > { %734 = vst.msk [vmem:[%s1411_s5 + $0x3c] sm:$0xf] %vm718_vm2, %v1148_v13  ;;  %v1146_v21 = vpack.c.bf16 %v514_v17, %v514_v17  ;;  %v777_v22 = vsel %vm751_vm3, %v514_v17, 0.0  ;;  %v834_v23 = vmul.f32 %v514_v17, %v514_v17  ;;  %v882_v47 = vsel %vm751_vm3, %v836_v30, 0.0 }
 0x101   : > { %v877_v25 = vadd.f32 %v876_v19, %v875_v16  ;;  %v778_v26 = vadd.f32 %v777_v22, %v776_v15  ;;  %v884_v57 = vsel %vm751_vm3, %v837_v42, 0.0  ;;  %v785_v28 = vsel %vm751_vm3, %v1437_v41, 0.0  ;;  %750 = vst.msk [vmem:[%s1411_s5 + $0x7c] sm:$0xf] %vm718_vm2, %v1164_v55 }
 0x102   : > { %732 = vst.msk [vmem:[%s1411_s5 + $0x34] sm:$0xf] %vm718_vm2, %v1146_v21  ;;  %v878_v32 = vsel %vm751_vm3, %v834_v23, 0.0  ;;  %v1162_v58 = vpack.c.bf16 %v1558_v46, %v1558_v46  ;;  %v787_v63 = vsel %vm751_vm3, %v1413_v24, 0.0  ;;  %v886_v1 = vsel %vm751_vm3, %v838_v49, 0.0 }
 0x103   : > { %v780_v35 = vadd.f32 %v779_v29, %v778_v26  ;;  %v879_v36 = vadd.f32 %v878_v32, %v877_v25  ;;  %v888_v4 = vsel %vm751_vm3, %v839_v56, 0.0  ;;  %v789_v5 = vsel %vm751_vm3, %v1427_v33, 0.0 }
 0x104   : > { %748 = vst.msk [vmem:[%s1411_s5 + $0x74] sm:$0xf] %vm718_vm2, %v1162_v58  ;;  %v841_v6 = vmul.f32 %v1458_v59, %v1458_v59  ;;  %v890_v24 = vsel %vm751_vm3, %v840_v0, 0.0  ;;  %v791_v10 = vsel %vm751_vm3, %v1458_v59, 0.0  ;;  %v842_v11 = vmul.f32 %v1474_v12, %v1474_v12 }
 0x105   : > { %v782_v44 = vadd.f32 %v781_v40, %v780_v35  ;;  %v881_v45 = vadd.f32 %v880_v38, %v879_v36  ;;  %v843_v15 = vmul.f32 %v1448_v50, %v1448_v50  ;;  %v793_v16 = vsel %vm751_vm3, %v1474_v12, 0.0 }
 0x106   : > { %v892_v33 = vsel %vm751_vm3, %v841_v6, 0.0  ;;  %v795_v19 = vsel %vm751_vm3, %v1448_v50, 0.0  ;;  %v844_v59 = vmul.f32 %v1466_v2, %v1466_v2  ;;  %v894_v21 = vsel %vm751_vm3, %v842_v11, 0.0 }
 0x107   : > { %v883_v53 = vadd.f32 %v882_v47, %v881_v45  ;;  %v784_v54 = vadd.f32 %v783_v48, %v782_v44  ;;  %v896_v25 = vsel %vm751_vm3, %v843_v15, 0.0  ;;  %v797_v26 = vsel %vm751_vm3, %v1466_v2, 0.0 }
 0x108   : > { %v845_v12 = vmul.f32 %v1490_v31, %v1490_v31  ;;  %v898_v32 = vsel %vm751_vm3, %v844_v59, 0.0  ;;  %v799_v50 = vsel %vm751_vm3, %v1490_v31, 0.0  ;;  %v846_v34 = vmul.f32 %v1506_v51, %v1506_v51 }
 0x109   : > { %v786_v61 = vadd.f32 %v785_v28, %v784_v54  ;;  %v885_v62 = vadd.f32 %v884_v57, %v883_v53  ;;  %v847_v37 = vmul.f32 %v1482_v20, %v1482_v20  ;;  %v801_v38 = vsel %vm751_vm3, %v1506_v51, 0.0 }
 0x10a   : > { %v900_v2 = vsel %vm751_vm3, %v845_v12, 0.0  ;;  %v803_v43 = vsel %vm751_vm3, %v1482_v20, 0.0  ;;  %v848_v31 = vmul.f32 %v1498_v39, %v1498_v39  ;;  %v902_v44 = vsel %vm751_vm3, %v846_v34, 0.0 }
 0x10b   : > { %v788_v41 = vadd.f32 %v787_v63, %v786_v61  ;;  %v887_v3 = vadd.f32 %v886_v1, %v885_v62  ;;  %v904_v48 = vsel %vm751_vm3, %v847_v37, 0.0  ;;  %v805_v49 = vsel %vm751_vm3, %v1498_v39, 0.0 }
 0x10c   : > { %v849_v51 = vmul.f32 %v1524_v9, %v1524_v9  ;;  %v906_v54 = vsel %vm751_vm3, %v848_v31, 0.0  ;;  %v807_v20 = vsel %vm751_vm3, %v1524_v9, 0.0  ;;  %v850_v55 = vmul.f32 %v1558_v46, %v1558_v46 }
 0x10d   : > { %v889_v7 = vadd.f32 %v888_v4, %v887_v3  ;;  %v790_v8 = vadd.f32 %v789_v5, %v788_v41  ;;  %v851_v28 = vmul.f32 %v1514_v60, %v1514_v60  ;;  %v809_v58 = vsel %vm751_vm3, %v1558_v46, 0.0 }
 0x10e   : > { %v908_v39 = vsel %vm751_vm3, %v849_v51, 0.0  ;;  %v811_v63 = vsel %vm751_vm3, %v1514_v60, 0.0  ;;  %v852_v9 = vmul.f32 %v1538_v27, %v1538_v27  ;;  %v910_v0 = vsel %vm751_vm3, %v850_v55, 0.0 }
 0x10f   : > { %v792_v13 = vadd.f32 %v791_v10, %v790_v8  ;;  %v891_v14 = vadd.f32 %v890_v24, %v889_v7  ;;  %v912_v3 = vsel %vm751_vm3, %v851_v28, 0.0  ;;  %v813_v4 = vsel %vm751_vm3, %v1538_v27, 0.0 }
 0x110   : > { %v914_v46 = vsel %vm751_vm3, %v852_v9, 0.0 }
 0x111   : > { %v893_v17 = vadd.f32 %v892_v33, %v891_v14  ;;  %v794_v18 = vadd.f32 %v793_v16, %v792_v13 }
 0x113   : > { %v796_v22 = vadd.f32 %v795_v19, %v794_v18  ;;  %v895_v23 = vadd.f32 %v894_v21, %v893_v17 }
 0x115   : > { %v897_v29 = vadd.f32 %v896_v25, %v895_v23  ;;  %v798_v30 = vadd.f32 %v797_v26, %v796_v22 }
 0x117   : > { %v800_v35 = vadd.f32 %v799_v50, %v798_v30  ;;  %v899_v36 = vadd.f32 %v898_v32, %v897_v29 }
 0x119   : > { %v901_v40 = vadd.f32 %v900_v2, %v899_v36  ;;  %v802_v42 = vadd.f32 %v801_v38, %v800_v35 }
 0x11b   : > { %v804_v45 = vadd.f32 %v803_v43, %v802_v42  ;;  %v903_v47 = vadd.f32 %v902_v44, %v901_v40 }
 0x11d   : > { %v905_v52 = vadd.f32 %v904_v48, %v903_v47  ;;  %v806_v53 = vadd.f32 %v805_v49, %v804_v45 }
 0x11f   : > { %v808_v56 = vadd.f32 %v807_v20, %v806_v53  ;;  %v907_v57 = vadd.f32 %v906_v54, %v905_v52 }
 0x121   : > { %v909_v61 = vadd.f32 %v908_v39, %v907_v57  ;;  %v810_v62 = vadd.f32 %v809_v58, %v808_v56 }
 0x123   : > { %v812_v1 = vadd.f32 %v811_v63, %v810_v62  ;;  %v911_v41 = vadd.f32 %v910_v0, %v909_v61 }
 0x125   : > { %v814_v5 = vadd.f32 %v813_v4, %v812_v1  ;;  %v913_v6 = vadd.f32 %v912_v3, %v911_v41 }
 0x127   : > { %v915_v7 = vadd.f32 %v914_v46, %v913_v6  ;;  %v815_v14 = vrot.slane %v814_v5, 4 }
 0x129   : > { %v916_v8 = vrot.slane %v915_v7, 4  ;;  %v816_v15 = vadd.f32 %v815_v14, %v814_v5 }
 0x12b   : > { %v917_v60 = vadd.f32 %v916_v8, %v915_v7  ;;  %v817_v33 = vrot.slane %v816_v15, 2 }
 0x12d   : > { %v918_v24 = vrot.slane %v917_v60, 2  ;;  %v818_v16 = vadd.f32 %v817_v33, %v816_v15 }
 0x12f   : > { %v919_v10 = vadd.f32 %v918_v24, %v917_v60  ;;  %v819_v17 = vrot.slane %v818_v16, 1 }
 0x131   : > { %v920_v11 = vrot.slane %v919_v10, 1  ;;  %v820_v27 = vadd.f32 %v819_v17, %v818_v16 }
 0x133   : > { %v921_v13 = vadd.f32 %v920_v11, %v919_v10 }
 0x135   : > { %923 = vrot.lane.b32.xlu0 %v921_v13, %s1310_s6 }
 0x1a7   : > { %v924_v18 = vpop.permute.xlu0 %923 }
 0x1a8   : > { %v926_v19 = vsel %vm751_vm3, %v820_v27, %v924_v18 }
 0x1a9   : > { %928 = vst.msk [vmem:[%s226_s9] sm:$0x1] %vm927_vm4, %v926_v19 }
 0x1aa PF: > { %s14_s14 = sadd.s32 1, %s1308_s14   ;;  %s1671_s12 = smov %s1304_s13 }
 0x1ab   : > { %p11_p5 = scmp.ge.s32.totalorder %s14_s14, 4   ;;  %s1672_s13 = smov %s1674_s15 }
 0x1ad   :  { %13 = sbr.rel (!%p11_p5) target bundleno = 2 (0x2), region = 70 }

// kernel: decoder_forward.6
= control target key start
LH: loop header
LB: loop body
LE: loop exit
PB: predicated region body
PF: predicated region fallthrough
CT: control target
= control target key end

     0   :  { %10 = vsyncpa [#allocation3], 0  ;;  %s1482_s0 = inlined_call_operand.vmem [shape: bf16[2,256,16], index: 0, kind: input, shape index: {}]   ;;  %s1483_s1 = inlined_call_operand.vmem [shape: f32[1,16], index: 1, kind: input, shape index: {}]   ;;  %s1484_s2 = inlined_call_operand.vmem [shape: f32[1,16], index: 2, kind: input, shape index: {}]   ;;  %s1485_s3 = inlined_call_operand.vmem [shape: bf16[2,256,16], index: 3, kind: output, shape index: {0}]   ;;  %s1486_s4 = inlined_call_operand.hbm [shape: f32[2,1,1,16], index: 4, kind: output, shape index: {1}]  }
   0x1   :  { %12 = vsyncpa [#allocation3 + $0x1], 0  ;;  %s1108_s15 = smov 0   ;;  %s1110_s16 = smov 0  }
   0x2   :  { %s1112_s17 = smov 0   ;;  %s1114_s18 = smov 0  }
   0x3   :  { %s1116_s19 = smov 0   ;;  %s1118_s20 = smov 0  }
   0x4 LB: > { %s790_s21 = sadd.s32 4294967295, %s1080_s20   ;;  %s791_s22 = sadd.s32 4294967294, %s1080_s20   ;;  %s1080_s20 = sphi %s1118_s20, %s18_s20   ;;  %s1076_s19 = sphi %s1116_s19, %s1493_s19   ;;  %s1072_s18 = sphi %s1114_s18, %s1492_s18   ;;  %s1068_s17 = sphi %s1112_s17, %s1491_s17   ;;  %s1064_s16 = sphi %s1110_s16, %s1490_s16   ;;  %s1060_s15 = sphi %s1108_s15, %s1489_s15  }
   0x5   : > { %s30_s23 = sadd.s32 1, %s1076_s19  ;;  %s137_s24 = sadd.s32 1, %s1068_s17 }
   0x6   : > { %p32_p0 = scmp.ge.s32.totalorder %s30_s23, 2  ;;  %p147_p1 = scmp.ne.s32.totalorder %s1068_s17, %s1064_s16 }
   0x7   : > { %p148_p2 = scmp.eq.s32.totalorder %s790_s21, 1  ;;  %p153_p3 = scmp.ne.s32.totalorder %s1064_s16, %s1060_s15 }
   0x8   : > { %s1495_s23 = smov (%p32_p0, %s30_s23), 0  ;;  %p154_p5 = scmp.eq.s32.totalorder %s791_s22, 1 }
   0x9   : > { %p1148_p4 = por %p148_p2, %p147_p1  ;;  %s132_s26 = ssub.s32 %s1076_s19, %s1495_s23 }
   0xa   : > { %p794_p6 = scmp.ge.s32.totalorder %s1080_s20, 1  ;;  %p135_p7 = scmp.eq.s32.totalorder %s132_s26, 0 }
   0xb   : > { %p1155_p8 = por %p154_p5, %p153_p3  ;;  %p191_p9 = scmp.lt.s32.totalorder %s1080_s20, 3 }
   0xc   : > { %s1161_s28 = scalar_select %p135_p7, %s1068_s17, %s137_s24  }
   0xd   : > { %p192_p10 = pnand %p794_p6, %p191_p9 }
   0xe   : > { %p230_p11 = scmp.lt.s32.totalorder (!%p192_p10), %s1072_s18, 1  ;;  %s227_s21 = sand.u32 (!%p192_p10), 1, %s1064_s16  }
   0xf   : > { %195 = sbr.rel (%p192_p10) target bundleno = 141 (0x8d), region = 32  ;;  %s228_s22 = scalar_lea.vmem (!%p192_p10), [#allocation2], %s227_s21 }
  0x10   : > { %s683_s24 = sshll.u32 (!%p192_p10), %s228_s22, 4  ;;  %s833_s26 = sshll.u32 (!%p192_p10), %s1072_s18, 4  ;;  %s684_s24 = int_to_ptr.vmem [resolvable:$true] %s683_s24 }
  0x11   : > { %s681_s5 = scalar_lea.hbm (!%p192_p10), %s1486_s4, %s833_s26  ;;  %s666_s6 = scalar_lea.sflag (!%p192_p10), [#allocation3], %s227_s21 }
  0x12   : > { %s1082_s8 = smov (!%p192_p10), [#allocation2]  }
  0x13   : > { %s1008_s9 = sshll.u32 (!%p192_p10), %s1082_s8, 4  ;;  %s1009_s9 = int_to_ptr.vmem [resolvable:$false] %s1008_s9 }
  0x14   : > { %s1165_s29 = scalar_select %p230_p11, %s1072_s18, 1  ;;  %v799_v39 = vld [vmem:[%s1483_s1] ss:$0 sm:$0xff]  ;;  %vm584_vm0 = vcmask 130048   ;;  %vm551_vm1 = vcmask 125952   ;;  %vm654_vm2 = vcmask 122880  }
  0x15   : > { %s1010_s10 = scalar_lea.vmem %s1009_s9, 32  ;;  %p1011_p1 = scmp.lt.s32.totalorder %s684_s24, %s1009_s9 }
  0x16   : > { %s836_s30 = sshll.u32 %s1165_s29, 7 }
  0x17   : > { %s1173_s7 = scalar_lea.vmem %s1482_s0, %s836_s30  ;;  %s1268_s14 = scalar_lea.vmem %s1485_s3, %s836_s30 }
  0x18   : > { %v871_v0 = vld [vmem:[%s1173_s7] sm:$0xff]   ;;  %v934_v1 = vld [vmem:[%s1173_s7 + $0x8] sm:$0xff]   ;;  %v935_v2 = vld [vmem:[%s1173_s7 + $0x10] sm:$0xff]  }
  0x19   : > { %v936_v3 = vld [vmem:[%s1173_s7 + $0x18] sm:$0xff]   ;;  %v937_v4 = vld [vmem:[%s1173_s7 + $0x20] sm:$0xff]   ;;  %v938_v5 = vld [vmem:[%s1173_s7 + $0x28] sm:$0xff]   ;;  %v872_v6 = vunpack.c.l.bf16 %v871_v0  ;;  %v873_v7 = vunpack.c.h.bf16 %v871_v0  ;;  %v876_v8 = vunpack.c.l.bf16 %v934_v1  ;;  %v877_v11 = vunpack.c.h.bf16 %v934_v1 }
  0x1a   : > { %v939_v9 = vld [vmem:[%s1173_s7 + $0x30] sm:$0xff]   ;;  %v940_v10 = vld [vmem:[%s1173_s7 + $0x38] sm:$0xff]   ;;  %v880_v12 = vunpack.c.l.bf16 %v935_v2  ;;  %v881_v13 = vunpack.c.h.bf16 %v935_v2  ;;  %v884_v14 = vunpack.c.l.bf16 %v936_v3  ;;  %v941_v15 = vld [vmem:[%s1173_s7 + $0x40] sm:$0xff]   ;;  %v885_v17 = vunpack.c.h.bf16 %v936_v3 }
  0x1b   : > { %v942_v16 = vld [vmem:[%s1173_s7 + $0x48] sm:$0xff]   ;;  %v888_v18 = vunpack.c.l.bf16 %v937_v4  ;;  %v889_v19 = vunpack.c.h.bf16 %v937_v4  ;;  %v892_v20 = vunpack.c.l.bf16 %v938_v5  ;;  %v943_v21 = vld [vmem:[%s1173_s7 + $0x50] sm:$0xff]   ;;  %v944_v22 = vld [vmem:[%s1173_s7 + $0x58] sm:$0xff]   ;;  %v893_v23 = vunpack.c.h.bf16 %v938_v5 }
  0x1c   : > { %v896_v24 = vunpack.c.l.bf16 %v939_v9  ;;  %v897_v25 = vunpack.c.h.bf16 %v939_v9  ;;  %v900_v26 = vunpack.c.l.bf16 %v940_v10  ;;  %v945_v27 = vld [vmem:[%s1173_s7 + $0x60] sm:$0xff]   ;;  %v946_v28 = vld [vmem:[%s1173_s7 + $0x68] sm:$0xff]   ;;  %v901_v29 = vunpack.c.h.bf16 %v940_v10  ;;  %v947_v33 = vld [vmem:[%s1173_s7 + $0x70] sm:$0xff]  }
  0x1d   : > { %v904_v30 = vunpack.c.l.bf16 %v941_v15  ;;  %v905_v31 = vunpack.c.h.bf16 %v941_v15  ;;  %v908_v32 = vunpack.c.l.bf16 %v942_v16  ;;  %v948_v34 = vld [vmem:[%s1173_s7 + $0x78] sm:$0xff]   ;;  %v909_v35 = vunpack.c.h.bf16 %v942_v16  ;;  %s1004_s7 = scalar_lea.vmem %s684_s24, 16 }
  0x1e   : > { %v912_v36 = vunpack.c.l.bf16 %v943_v21  ;;  %v913_v37 = vunpack.c.h.bf16 %v943_v21  ;;  %v916_v38 = vunpack.c.l.bf16 %v944_v22  ;;  %v917_v40 = vunpack.c.h.bf16 %v944_v22  ;;  %p1005_p12 = scmp.ne.s32.totalorder %s684_s24, %s1004_s7  ;;  %p1012_p2 = scmp.lt.s32.totalorder %s1010_s10, %s1004_s7 }
  0x1f   : > { %v920_v41 = vunpack.c.l.bf16 %v945_v27  ;;  %v921_v42 = vunpack.c.h.bf16 %v945_v27  ;;  %v924_v43 = vunpack.c.l.bf16 %v946_v28  ;;  %v925_v44 = vunpack.c.h.bf16 %v946_v28 }
  0x20   : > { %v928_v45 = vunpack.c.l.bf16 %v947_v33  ;;  %v929_v46 = vunpack.c.h.bf16 %v947_v33  ;;  %v932_v47 = vunpack.c.l.bf16 %v948_v34  ;;  %v933_v48 = vunpack.c.h.bf16 %v948_v34  ;;  %p1006_p13 = pnand %p1005_p12, %p1148_p4  ;;  %p1013_p3 = por %p1012_p2, %p1011_p1 }
  0x21   : > { %v320_v49 = vmul.f32 %v872_v6, %v799_v39  ;;  %v321_v50 = vmul.f32 %v873_v7, %v799_v39  ;;  %v322_v51 = vmul.f32 %v876_v8, %v799_v39  ;;  %v323_v52 = vmul.f32 %v877_v11, %v799_v39  ;;  %v800_v8 = vld [vmem:[%s1484_s2] ss:$0 sm:$0xff] }
  0x22   : > { %v324_v53 = vmul.f32 %v880_v12, %v799_v39  ;;  %v325_v54 = vmul.f32 %v881_v13, %v799_v39  ;;  %v326_v55 = vmul.f32 %v884_v14, %v799_v39  ;;  %v327_v56 = vmul.f32 %v885_v17, %v799_v39  ;;  %p1007_p0 = pneg %p1006_p13 }
  0x23   : > { %v328_v57 = vmul.f32 %v888_v18, %v799_v39  ;;  %v329_v58 = vmul.f32 %v889_v19, %v799_v39  ;;  %v330_v59 = vmul.f32 %v892_v20, %v799_v39  ;;  %v331_v60 = vmul.f32 %v893_v23, %v799_v39 }
  0x24   : > { %v332_v61 = vmul.f32 %v896_v24, %v799_v39  ;;  %v333_v62 = vmul.f32 %v897_v25, %v799_v39  ;;  %v334_v63 = vmul.f32 %v900_v26, %v799_v39  ;;  %v335_v0 = vmul.f32 %v901_v29, %v799_v39  ;;  %p1014_p5 = pnand %p1013_p3, %p1007_p0 }
  0x25   : > { %v336_v1 = vmul.f32 %v904_v30, %v799_v39  ;;  %v337_v2 = vmul.f32 %v905_v31, %v799_v39  ;;  %v338_v3 = vmul.f32 %v908_v32, %v799_v39  ;;  %v339_v4 = vmul.f32 %v909_v35, %v799_v39 }
  0x26   : > { %v340_v5 = vmul.f32 %v912_v36, %v799_v39  ;;  %v341_v6 = vmul.f32 %v913_v37, %v799_v39  ;;  %v342_v7 = vmul.f32 %v916_v38, %v799_v39  ;;  %v343_v9 = vmul.f32 %v917_v40, %v799_v39 }
  0x27   : > { %v344_v10 = vmul.f32 %v920_v41, %v799_v39  ;;  %v345_v11 = vmul.f32 %v921_v42, %v799_v39  ;;  %v346_v12 = vmul.f32 %v924_v43, %v799_v39  ;;  %v347_v13 = vmul.f32 %v925_v44, %v799_v39 }
  0x28   : > { %v348_v14 = vmul.f32 %v928_v45, %v799_v39  ;;  %v349_v15 = vmul.f32 %v929_v46, %v799_v39  ;;  %v350_v16 = vmul.f32 %v932_v47, %v799_v39  ;;  %v351_v17 = vmul.f32 %v933_v48, %v799_v39 }
  0x29   : > { %v359_v18 = vadd.f32 %v800_v8, %v320_v49  ;;  %v360_v19 = vadd.f32 %v800_v8, %v321_v50  ;;  %v361_v20 = vadd.f32 %v800_v8, %v322_v51  ;;  %v362_v21 = vadd.f32 %v800_v8, %v323_v52 }
  0x2a   : > { %v363_v22 = vadd.f32 %v800_v8, %v324_v53  ;;  %v364_v23 = vadd.f32 %v800_v8, %v325_v54  ;;  %v365_v24 = vadd.f32 %v800_v8, %v326_v55  ;;  %v366_v25 = vadd.f32 %v800_v8, %v327_v56 }
  0x2b   : > { %v367_v26 = vadd.f32 %v800_v8, %v328_v57  ;;  %v368_v27 = vadd.f32 %v800_v8, %v329_v58  ;;  %v369_v28 = vadd.f32 %v800_v8, %v330_v59  ;;  %v370_v29 = vadd.f32 %v800_v8, %v331_v60 }
  0x2c   : > { %v371_v30 = vadd.f32 %v800_v8, %v332_v61  ;;  %v372_v31 = vadd.f32 %v800_v8, %v333_v62  ;;  %v373_v32 = vadd.f32 %v800_v8, %v334_v63  ;;  %v374_v33 = vadd.f32 %v800_v8, %v335_v0 }
  0x2d   : > { %v375_v34 = vadd.f32 %v800_v8, %v336_v1  ;;  %v376_v35 = vadd.f32 %v800_v8, %v337_v2  ;;  %v377_v36 = vadd.f32 %v800_v8, %v338_v3  ;;  %v378_v37 = vadd.f32 %v800_v8, %v339_v4 }
  0x2e   : > { %v379_v38 = vadd.f32 %v800_v8, %v340_v5  ;;  %v380_v39 = vadd.f32 %v800_v8, %v341_v6  ;;  %v381_v40 = vadd.f32 %v800_v8, %v342_v7  ;;  %v382_v41 = vadd.f32 %v800_v8, %v343_v9 }
  0x2f   : > { %v383_v42 = vadd.f32 %v800_v8, %v344_v10  ;;  %v384_v43 = vadd.f32 %v800_v8, %v345_v11  ;;  %v385_v44 = vadd.f32 %v800_v8, %v346_v12  ;;  %v386_v45 = vadd.f32 %v800_v8, %v347_v13 }
  0x30   : > { %v1197_v46 = vmax.f32 %v359_v18, 0.0  ;;  %v1199_v47 = vmax.f32 %v360_v19, 0.0  ;;  %v1201_v48 = vmax.f32 %v361_v20, 0.0  ;;  %v387_v49 = vadd.f32 %v800_v8, %v348_v14 }
  0x31   : > { %v388_v50 = vadd.f32 %v800_v8, %v349_v15  ;;  %v389_v51 = vadd.f32 %v800_v8, %v350_v16  ;;  %v390_v52 = vadd.f32 %v800_v8, %v351_v17  ;;  %v394_v53 = vmax.f32 %v362_v21, 0.0 }
  0x32   : > { %v395_v54 = vmax.f32 %v363_v22, 0.0  ;;  %v396_v55 = vmax.f32 %v364_v23, 0.0  ;;  %v397_v56 = vmax.f32 %v365_v24, 0.0  ;;  %v1203_v57 = vmax.f32 %v366_v25, 0.0 }
  0x33   : > { %v1205_v58 = vmax.f32 %v367_v26, 0.0  ;;  %v1207_v59 = vmax.f32 %v368_v27, 0.0  ;;  %v1209_v60 = vmax.f32 %v369_v28, 0.0  ;;  %v1211_v61 = vmax.f32 %v370_v29, 0.0 }
  0x34   : > { %v585_v62 = vsel %vm584_vm0, %v1197_v46, 0.0  ;;  %v586_v63 = vsel %vm584_vm0, %v1199_v47, 0.0  ;;  %v588_v0 = vsel %vm584_vm0, %v1201_v48, 0.0  ;;  %v1219_v1 = vmax.f32 %v371_v30, 0.0 }
  0x35   : > { %v1221_v2 = vmax.f32 %v372_v31, 0.0  ;;  %v1223_v3 = vmax.f32 %v373_v32, 0.0  ;;  %v587_v4 = vadd.f32 %v586_v63, %v585_v62  ;;  %v1225_v5 = vmax.f32 %v374_v33, 0.0 }
  0x36   : > { %v1227_v6 = vmax.f32 %v375_v34, 0.0  ;;  %v1229_v7 = vmax.f32 %v376_v35, 0.0  ;;  %v590_v8 = vsel %vm584_vm0, %v394_v53, 0.0  ;;  %v1232_v9 = vmax.f32 %v377_v36, 0.0 }
  0x37   : > { %v1234_v10 = vmax.f32 %v378_v37, 0.0  ;;  %v1236_v11 = vmax.f32 %v379_v38, 0.0  ;;  %v589_v12 = vadd.f32 %v588_v0, %v587_v4  ;;  %v1238_v13 = vmax.f32 %v380_v39, 0.0 }
  0x38   : > { %v1240_v14 = vmax.f32 %v381_v40, 0.0  ;;  %v1242_v15 = vmax.f32 %v382_v41, 0.0  ;;  %v592_v16 = vsel %vm584_vm0, %v395_v54, 0.0  ;;  %v1245_v17 = vmax.f32 %v383_v42, 0.0 }
  0x39   : > { %v1247_v18 = vmax.f32 %v384_v43, 0.0  ;;  %v1249_v19 = vmax.f32 %v385_v44, 0.0  ;;  %v591_v20 = vadd.f32 %v590_v8, %v589_v12  ;;  %v1251_v21 = vmax.f32 %v386_v45, 0.0 }
  0x3a   : > { %v1253_v22 = vmax.f32 %v387_v49, 0.0  ;;  %v1255_v23 = vmax.f32 %v388_v50, 0.0  ;;  %v594_v24 = vsel %vm584_vm0, %v396_v55, 0.0  ;;  %v1258_v25 = vmax.f32 %v389_v51, 0.0 }
  0x3b   : > { %v1260_v26 = vmax.f32 %v390_v52, 0.0  ;;  %v593_v27 = vadd.f32 %v592_v16, %v591_v20  ;;  %v596_v28 = vsel %vm584_vm0, %v397_v56, 0.0  ;;  %v598_v29 = vsel %vm584_vm0, %v1203_v57, 0.0 }
  0x3c   : > { %v600_v30 = vsel %vm584_vm0, %v1205_v58, 0.0  ;;  %v602_v31 = vsel %vm584_vm0, %v1207_v59, 0.0  ;;  %v1278_v32 = vsel %vm584_vm0, %v1209_v60, 0.0  ;;  %v838_v34 = vpack.c.bf16 %v1197_v46, %v1197_v46 }
  0x3d   : > { %v595_v33 = vadd.f32 %v594_v24, %v593_v27  ;;  %v839_v35 = vpack.c.bf16 %v1199_v47, %v1199_v47  ;;  %v840_v36 = vpack.c.bf16 %v1201_v48, %v1201_v48  ;;  %v841_v37 = vpack.c.bf16 %v394_v53, %v394_v53 }
  0x3e   : > { %v842_v38 = vpack.c.bf16 %v395_v54, %v395_v54  ;;  %v843_v39 = vpack.c.bf16 %v396_v55, %v396_v55  ;;  %v844_v40 = vpack.c.bf16 %v397_v56, %v397_v56  ;;  %552 = vst.msk [vmem:[%s1268_s14] sm:$0xf] %vm551_vm1, %v838_v34  ;;  %v845_v42 = vpack.c.bf16 %v1203_v57, %v1203_v57 }
  0x3f   : > { %v597_v41 = vadd.f32 %v596_v28, %v595_v33  ;;  %553 = vst.msk [vmem:[%s1268_s14 + $0x4] sm:$0xf] %vm551_vm1, %v839_v35  ;;  %554 = vst.msk [vmem:[%s1268_s14 + $0x8] sm:$0xf] %vm551_vm1, %v840_v36  ;;  %v846_v43 = vpack.c.bf16 %v1205_v58, %v1205_v58  ;;  %v847_v44 = vpack.c.bf16 %v1207_v59, %v1207_v59  ;;  %v606_v24 = vsel %vm584_vm0, %v1211_v61, 0.0 }
  0x40   : > { %555 = vst.msk [vmem:[%s1268_s14 + $0xc] sm:$0xf] %vm551_vm1, %v841_v37  ;;  %556 = vst.msk [vmem:[%s1268_s14 + $0x10] sm:$0xf] %vm551_vm1, %v842_v38  ;;  %v848_v45 = vpack.c.bf16 %v1209_v60, %v1209_v60  ;;  %v849_v46 = vpack.c.bf16 %v1211_v61, %v1211_v61  ;;  %v850_v47 = vpack.c.bf16 %v1219_v1, %v1219_v1  ;;  %v608_v61 = vsel %vm584_vm0, %v1219_v1, 0.0 }
  0x41   : > { %557 = vst.msk [vmem:[%s1268_s14 + $0x14] sm:$0xf] %vm551_vm1, %v843_v39  ;;  %558 = vst.msk [vmem:[%s1268_s14 + $0x18] sm:$0xf] %vm551_vm1, %v844_v40  ;;  %v851_v48 = vpack.c.bf16 %v1221_v2, %v1221_v2  ;;  %v599_v49 = vadd.f32 %v598_v29, %v597_v41  ;;  %v852_v50 = vpack.c.bf16 %v1223_v3, %v1223_v3  ;;  %v612_v33 = vsel %vm584_vm0, %v1223_v3, 0.0 }
  0x42   : > { %559 = vst.msk [vmem:[%s1268_s14 + $0x1c] sm:$0xf] %vm551_vm1, %v845_v42  ;;  %560 = vst.msk [vmem:[%s1268_s14 + $0x20] sm:$0xf] %vm551_vm1, %v846_v43  ;;  %v853_v51 = vpack.c.bf16 %v1225_v5, %v1225_v5  ;;  %v854_v52 = vpack.c.bf16 %v1227_v6, %v1227_v6  ;;  %v855_v53 = vpack.c.bf16 %v1229_v7, %v1229_v7  ;;  %v614_v34 = vsel %vm584_vm0, %v1225_v5, 0.0 }
  0x43   : > { %561 = vst.msk [vmem:[%s1268_s14 + $0x24] sm:$0xf] %vm551_vm1, %v847_v44  ;;  %562 = vst.msk [vmem:[%s1268_s14 + $0x28] sm:$0xf] %vm551_vm1, %v848_v45  ;;  %v856_v54 = vpack.c.bf16 %v1232_v9, %v1232_v9  ;;  %v857_v55 = vpack.c.bf16 %v1234_v10, %v1234_v10  ;;  %v858_v56 = vpack.c.bf16 %v1236_v11, %v1236_v11  ;;  %v616_v36 = vsel %vm584_vm0, %v1227_v6, 0.0 }
  0x44   : > { %563 = vst.msk [vmem:[%s1268_s14 + $0x2c] sm:$0xf] %vm551_vm1, %v849_v46  ;;  %564 = vst.msk [vmem:[%s1268_s14 + $0x30] sm:$0xf] %vm551_vm1, %v850_v47  ;;  %v601_v57 = vadd.f32 %v600_v30, %v599_v49  ;;  %v859_v58 = vpack.c.bf16 %v1238_v13, %v1238_v13  ;;  %v860_v59 = vpack.c.bf16 %v1240_v14, %v1240_v14  ;;  %v610_v30 = vsel %vm584_vm0, %v1221_v2, 0.0 }
  0x45   : > { %565 = vst.msk [vmem:[%s1268_s14 + $0x34] sm:$0xf] %vm551_vm1, %v851_v48  ;;  %566 = vst.msk [vmem:[%s1268_s14 + $0x38] sm:$0xf] %vm551_vm1, %v852_v50  ;;  %v861_v60 = vpack.c.bf16 %v1242_v15, %v1242_v15  ;;  %v862_v62 = vpack.c.bf16 %v1245_v17, %v1245_v17  ;;  %v863_v63 = vpack.c.bf16 %v1247_v18, %v1247_v18  ;;  %v618_v1 = vsel %vm584_vm0, %v1229_v7, 0.0 }
  0x46   : > { %567 = vst.msk [vmem:[%s1268_s14 + $0x3c] sm:$0xf] %vm551_vm1, %v853_v51  ;;  %568 = vst.msk [vmem:[%s1268_s14 + $0x40] sm:$0xf] %vm551_vm1, %v854_v52  ;;  %v864_v0 = vpack.c.bf16 %v1249_v19, %v1249_v19  ;;  %v865_v4 = vpack.c.bf16 %v1251_v21, %v1251_v21  ;;  %v603_v8 = vadd.f32 %v602_v31, %v601_v57  ;;  %v620_v2 = vsel %vm584_vm0, %v1232_v9, 0.0 }
  0x47   : > { %569 = vst.msk [vmem:[%s1268_s14 + $0x44] sm:$0xf] %vm551_vm1, %v855_v53  ;;  %570 = vst.msk [vmem:[%s1268_s14 + $0x48] sm:$0xf] %vm551_vm1, %v856_v54  ;;  %v866_v12 = vpack.c.bf16 %v1253_v22, %v1253_v22  ;;  %v867_v16 = vpack.c.bf16 %v1255_v23, %v1255_v23  ;;  %v868_v20 = vpack.c.bf16 %v1258_v25, %v1258_v25  ;;  %v622_v3 = vsel %vm584_vm0, %v1234_v10, 0.0 }
  0x48   : > { %571 = vst.msk [vmem:[%s1268_s14 + $0x4c] sm:$0xf] %vm551_vm1, %v857_v55  ;;  %572 = vst.msk [vmem:[%s1268_s14 + $0x50] sm:$0xf] %vm551_vm1, %v858_v56  ;;  %v869_v27 = vpack.c.bf16 %v1260_v26, %v1260_v26  ;;  %v605_v28 = vadd.f32 %v1278_v32, %v603_v8  ;;  %v624_v5 = vsel %vm584_vm0, %v1236_v11, 0.0  ;;  %v626_v6 = vsel %vm584_vm0, %v1238_v13, 0.0 }
  0x49   : > { %573 = vst.msk [vmem:[%s1268_s14 + $0x54] sm:$0xf] %vm551_vm1, %v859_v58  ;;  %574 = vst.msk [vmem:[%s1268_s14 + $0x58] sm:$0xf] %vm551_vm1, %v860_v59  ;;  %v628_v7 = vsel %vm584_vm0, %v1240_v14, 0.0  ;;  %v630_v9 = vsel %vm584_vm0, %v1242_v15, 0.0 }
  0x4a   : > { %575 = vst.msk [vmem:[%s1268_s14 + $0x5c] sm:$0xf] %vm551_vm1, %v861_v60  ;;  %576 = vst.msk [vmem:[%s1268_s14 + $0x60] sm:$0xf] %vm551_vm1, %v862_v62  ;;  %v607_v29 = vadd.f32 %v606_v24, %v605_v28  ;;  %v632_v10 = vsel %vm584_vm0, %v1245_v17, 0.0  ;;  %v634_v11 = vsel %vm584_vm0, %v1247_v18, 0.0 }
  0x4b   : > { %577 = vst.msk [vmem:[%s1268_s14 + $0x64] sm:$0xf] %vm551_vm1, %v863_v63  ;;  %578 = vst.msk [vmem:[%s1268_s14 + $0x68] sm:$0xf] %vm551_vm1, %v864_v0  ;;  %v636_v13 = vsel %vm584_vm0, %v1249_v19, 0.0  ;;  %v638_v14 = vsel %vm584_vm0, %v1251_v21, 0.0 }
  0x4c   : > { %579 = vst.msk [vmem:[%s1268_s14 + $0x6c] sm:$0xf] %vm551_vm1, %v865_v4  ;;  %580 = vst.msk [vmem:[%s1268_s14 + $0x70] sm:$0xf] %vm551_vm1, %v866_v12  ;;  %v609_v31 = vadd.f32 %v608_v61, %v607_v29  ;;  %v640_v15 = vsel %vm584_vm0, %v1253_v22, 0.0  ;;  %v642_v17 = vsel %vm584_vm0, %v1255_v23, 0.0 }
  0x4d   : > { %581 = vst.msk [vmem:[%s1268_s14 + $0x74] sm:$0xf] %vm551_vm1, %v867_v16  ;;  %582 = vst.msk [vmem:[%s1268_s14 + $0x78] sm:$0xf] %vm551_vm1, %v868_v20  ;;  %v644_v18 = vsel %vm584_vm0, %v1258_v25, 0.0  ;;  %v646_v19 = vsel %vm584_vm0, %v1260_v26, 0.0 }
  0x4e   : > { %583 = vst.msk [vmem:[%s1268_s14 + $0x7c] sm:$0xf] %vm551_vm1, %v869_v27  ;;  %v611_v32 = vadd.f32 %v610_v30, %v609_v31 }
  0x50   : > { %v613_v35 = vadd.f32 %v612_v33, %v611_v32 }
  0x52   : > { %v615_v37 = vadd.f32 %v614_v34, %v613_v35 }
  0x54   : > { %v617_v38 = vadd.f32 %v616_v36, %v615_v37 }
  0x56   : > { %v619_v39 = vadd.f32 %v618_v1, %v617_v38 }
  0x58   : > { %v621_v40 = vadd.f32 %v620_v2, %v619_v39 }
  0x5a   : > { %v623_v41 = vadd.f32 %v622_v3, %v621_v40 }
  0x5c   : > { %v625_v42 = vadd.f32 %v624_v5, %v623_v41 }
  0x5e   : > { %v627_v43 = vadd.f32 %v626_v6, %v625_v42 }
  0x60   : > { %v629_v44 = vadd.f32 %v628_v7, %v627_v43 }
  0x62   : > { %v631_v45 = vadd.f32 %v630_v9, %v629_v44 }
  0x64   : > { %v633_v46 = vadd.f32 %v632_v10, %v631_v45 }
  0x66   : > { %v635_v47 = vadd.f32 %v634_v11, %v633_v46 }
  0x68   : > { %v637_v48 = vadd.f32 %v636_v13, %v635_v47 }
  0x6a   : > { %v639_v49 = vadd.f32 %v638_v14, %v637_v48 }
  0x6c   : > { %v641_v50 = vadd.f32 %v640_v15, %v639_v49 }
  0x6e   : > { %v643_v51 = vadd.f32 %v642_v17, %v641_v50 }
  0x70   : > { %v645_v52 = vadd.f32 %v644_v18, %v643_v51 }
  0x72   : > { %v647_v53 = vadd.f32 %v646_v19, %v645_v52 }
  0x74   : > { %v648_v21 = vrot.slane %v647_v53, 4 }
  0x76   : > { %v649_v54 = vadd.f32 %v648_v21, %v647_v53 }
  0x78   : > { %v650_v22 = vrot.slane %v649_v54, 2 }
  0x7a   : > { %v651_v55 = vadd.f32 %v650_v22, %v649_v54 }
  0x7c   : > { %v652_v23 = vrot.slane %v651_v55, 1 }
  0x7e   : > { %v653_v56 = vadd.f32 %v652_v23, %v651_v55 }
  0x80   : > { %655 = vst.msk [vmem:[%s228_s22] sm:$0x1] %vm654_vm2, %v653_v56 }
  0x81   : > { %1017 = shalt.err (!%p1014_p5)
}
  0x82   : > { %s1018_s18 = scalar_lea.hbm %s681_s5, 16  ;;  %s1022_s13 = scalar_lea.hbm %s1486_s4, 32 }
  0x83   : > { %p1019_p6 = scmp.ne.s32.totalorder %s681_s5, %s1018_s18  ;;  %p1023_p10 = scmp.lt.s32.totalorder %s681_s5, %s1486_s4 }
  0x84   : > { %p1024_p11 = scmp.lt.s32.totalorder %s1022_s13, %s1018_s18 }
  0x85   : > { %p1020_p7 = pnand %p1019_p6, %p1148_p4 }
  0x86   : > { %p1025_p12 = por %p1024_p11, %p1023_p10 }
  0x87   : > { %p1021_p9 = pneg %p1020_p7 }
  0x89   : > { %p1026_p13 = pnand %p1025_p12, %p1021_p9 }
  0x8b   : > { %1029 = shalt.err (!%p1026_p13)
}
  0x8c   : > { %949 = dma.vmem_to_hbm [thread:$0]  (%p1148_p4), %s684_s24, 16, %s681_s5, %s666_s6  }
  0x8d PF: > { %p955_p0 = scmp.ge.s32.totalorder %s1080_s20, 2  ;;  %s707_s22 = sand.u32 1, %s1060_s15  }
  0x8e   : > { %s708_s26 = scalar_lea.sflag [#allocation3], %s707_s22 }
  0x8f   : > { %p952_p1 = pnand %p955_p0, %p1155_p8 }
  0x91   : > { %p953_p2 = pneg %p952_p1 }
  0x93   : > { %1055 = dma.done.wait (%p953_p2), %s708_s26, 16  }
  0x94   : > { %1057 = vsyncadd (%p953_p2), %s708_s26, 4294967280  ;;  %s18_s20 = sadd.s32 1, %s1080_s20   ;;  %s1489_s15 = smov %s1064_s16 }
  0x95   : > { %p15_p3 = scmp.ge.s32.totalorder %s18_s20, 4   ;;  %s1490_s16 = smov %s1068_s17 }
  0x96   : > { %s1491_s17 = smov %s1161_s28  ;;  %s1492_s18 = smov %s1076_s19 }
  0x97   : > { %s1493_s19 = smov %s1495_s23  ;;  %17 = sbr.rel (!%p15_p3) target bundleno = 4 (0x4), region = 79 }
  0x9c   :  { %712 = vsyncpa [#allocation3], 1 }
  0x9d   :  { %714 = vsyncpa [#allocation3 + $0x1], 1 }

// kernel: decoder_forward.8
= control target key start
LH: loop header
LB: loop body
LE: loop exit
PB: predicated region body
PF: predicated region fallthrough
CT: control target
= control target key end

     0   :  { %s1014_s15 = smov 0   ;;  %s1016_s16 = smov 0   ;;  %s1252_s0 = inlined_call_operand.vmem [shape: bf16[2,256,64], index: 0, kind: input, shape index: {}]   ;;  %s1253_s1 = inlined_call_operand.vmem [shape: f32[1,64], index: 1, kind: input, shape index: {}]   ;;  %s1254_s2 = inlined_call_operand.vmem [shape: f32[1,64], index: 2, kind: input, shape index: {}]   ;;  %s1255_s3 = inlined_call_operand.vmem [shape: bf16[2,256,64], index: 3, kind: output, shape index: {0}]   ;;  %s1256_s4 = inlined_call_operand.vmem [shape: f32[2,1,1,64], index: 4, kind: output, shape index: {1}]  }
   0x1   :  { %s1018_s17 = smov 0  }
   0x2 LB: > { %s27_s18 = sadd.s32 1, %s983_s16  ;;  %p787_p0 = scmp.ge.s32.totalorder %s987_s17, 1  ;;  %s987_s17 = sphi %s1018_s17, %s15_s17   ;;  %s983_s16 = sphi %s1016_s16, %s1258_s16   ;;  %s979_s15 = sphi %s1014_s15, %s1257_s15  }
   0x3   : > { %p29_p1 = scmp.ge.s32.totalorder %s27_s18, 2  ;;  %p188_p2 = scmp.lt.s32.totalorder %s987_s17, 3 }
   0x5   : > { %s1260_s18 = smov (%p29_p1, %s27_s18), 0  ;;  %p189_p3 = pnand %p787_p0, %p188_p2 }
   0x6   : > { %p229_p4 = scmp.lt.s32.totalorder (!%p189_p3), %s979_s15, 1 }
   0x7   : > { %192 = sbr.rel (%p189_p3) target bundleno = 100 (0x64), region = 32 }
   0xc   : > { %s1262_s15 = smov (!%p229_p4, %s979_s15), 1  ;;  %v1045_v0 = vld [vmem:[%s1253_s1] ss:$0 sm:$0xff]  ;;  %vm589_vm0 = vcmask 523264   ;;  %vm556_vm1 = vcmask 519168   ;;  %vm659_vm2 = vcmask 516096  }
   0xd   : > { %s828_s19 = sshll.u32 %s1262_s15, 7  ;;  %v1054_v9 = vld [vmem:[%s1254_s2] ss:$0 sm:$0xff]  ;;  %s253_s6 = scalar_lea.vmem %s1256_s4, %s1262_s15 }
   0xe   : > { %s1040_s22 = scalar_lea.vmem %s1252_s0, %s828_s19  ;;  %s1077_s29 = scalar_lea.vmem %s1255_s3, %s828_s19 }
   0xf   : > { %v863_v1 = vld [vmem:[%s1040_s22] sm:$0xff]   ;;  %v926_v2 = vld [vmem:[%s1040_s22 + $0x8] sm:$0xff]   ;;  %v927_v3 = vld [vmem:[%s1040_s22 + $0x10] sm:$0xff]  }
  0x10   : > { %v864_v4 = vunpack.c.l.bf16 %v863_v1  ;;  %v865_v5 = vunpack.c.h.bf16 %v863_v1  ;;  %v868_v6 = vunpack.c.l.bf16 %v926_v2  ;;  %v869_v7 = vunpack.c.h.bf16 %v926_v2  ;;  %v928_v8 = vld [vmem:[%s1040_s22 + $0x18] sm:$0xff]   ;;  %v929_v45 = vld [vmem:[%s1040_s22 + $0x20] sm:$0xff]   ;;  %v930_v50 = vld [vmem:[%s1040_s22 + $0x28] sm:$0xff]  }
  0x11   : > { %v872_v10 = vunpack.c.l.bf16 %v927_v3  ;;  %v873_v11 = vunpack.c.h.bf16 %v927_v3  ;;  %v876_v12 = vunpack.c.l.bf16 %v928_v8  ;;  %v877_v13 = vunpack.c.h.bf16 %v928_v8  ;;  %v931_v51 = vld [vmem:[%s1040_s22 + $0x30] sm:$0xff]   ;;  %v1097_v56 = vld [vmem:[%s1040_s22 + $0x38] sm:$0xff]  }
  0x12   : > { %v325_v14 = vmul.f32 %v864_v4, %v1045_v0  ;;  %v326_v15 = vmul.f32 %v865_v5, %v1045_v0  ;;  %v327_v16 = vmul.f32 %v868_v6, %v1045_v0  ;;  %v328_v17 = vmul.f32 %v869_v7, %v1045_v0 }
  0x13   : > { %v329_v18 = vmul.f32 %v872_v10, %v1045_v0  ;;  %v330_v19 = vmul.f32 %v873_v11, %v1045_v0  ;;  %v331_v20 = vmul.f32 %v876_v12, %v1045_v0  ;;  %v332_v21 = vmul.f32 %v877_v13, %v1045_v0 }
  0x14   : > { %v364_v22 = vadd.f32 %v1054_v9, %v325_v14  ;;  %v365_v23 = vadd.f32 %v1054_v9, %v326_v15  ;;  %v366_v24 = vadd.f32 %v1054_v9, %v327_v16  ;;  %v367_v25 = vadd.f32 %v1054_v9, %v328_v17 }
  0x15   : > { %v368_v26 = vadd.f32 %v1054_v9, %v329_v18  ;;  %v369_v27 = vadd.f32 %v1054_v9, %v330_v19  ;;  %v370_v28 = vadd.f32 %v1054_v9, %v331_v20  ;;  %v371_v29 = vadd.f32 %v1054_v9, %v332_v21 }
  0x16   : > { %v396_v30 = vmax.f32 %v364_v22, 0.0  ;;  %v397_v31 = vmax.f32 %v365_v23, 0.0  ;;  %v398_v32 = vmax.f32 %v366_v24, 0.0  ;;  %v399_v33 = vmax.f32 %v367_v25, 0.0 }
  0x17   : > { %v400_v34 = vmax.f32 %v368_v26, 0.0  ;;  %v401_v35 = vmax.f32 %v369_v27, 0.0  ;;  %v402_v36 = vmax.f32 %v370_v28, 0.0  ;;  %v403_v49 = vmax.f32 %v371_v29, 0.0 }
  0x18   : > { %v830_v37 = vpack.c.bf16 %v396_v30, %v396_v30  ;;  %v590_v38 = vsel %vm589_vm0, %v396_v30, 0.0  ;;  %v831_v39 = vpack.c.bf16 %v397_v31, %v397_v31  ;;  %v591_v40 = vsel %vm589_vm0, %v397_v31, 0.0  ;;  %v933_v31 = vld [vmem:[%s1040_s22 + $0x40] sm:$0xff]  }
  0x19   : > { %v592_v41 = vadd.f32 %v591_v40, %v590_v38  ;;  %v832_v42 = vpack.c.bf16 %v398_v32, %v398_v32  ;;  %v593_v43 = vsel %vm589_vm0, %v398_v32, 0.0  ;;  %v833_v44 = vpack.c.bf16 %v399_v33, %v399_v33 }
  0x1a   : > { %557 = vst.msk [vmem:[%s1077_s29] sm:$0xf] %vm556_vm1, %v830_v37  ;;  %558 = vst.msk [vmem:[%s1077_s29 + $0x4] sm:$0xf] %vm556_vm1, %v831_v39  ;;  %v595_v46 = vsel %vm589_vm0, %v399_v33, 0.0  ;;  %v834_v47 = vpack.c.bf16 %v400_v34, %v400_v34  ;;  %v835_v48 = vpack.c.bf16 %v401_v35, %v401_v35  ;;  %v597_v53 = vsel %vm589_vm0, %v400_v34, 0.0 }
  0x1b   : > { %559 = vst.msk [vmem:[%s1077_s29 + $0x8] sm:$0xf] %vm556_vm1, %v832_v42  ;;  %v594_v52 = vadd.f32 %v593_v43, %v592_v41  ;;  %560 = vst.msk [vmem:[%s1077_s29 + $0xc] sm:$0xf] %vm556_vm1, %v833_v44  ;;  %v599_v54 = vsel %vm589_vm0, %v401_v35, 0.0  ;;  %v836_v55 = vpack.c.bf16 %v402_v36, %v402_v36  ;;  %v601_v57 = vsel %vm589_vm0, %v402_v36, 0.0 }
  0x1c   : > { %561 = vst.msk [vmem:[%s1077_s29 + $0x10] sm:$0xf] %vm556_vm1, %v834_v47  ;;  %562 = vst.msk [vmem:[%s1077_s29 + $0x14] sm:$0xf] %vm556_vm1, %v835_v48  ;;  %v837_v58 = vpack.c.bf16 %v403_v49, %v403_v49  ;;  %v880_v59 = vunpack.c.l.bf16 %v929_v45  ;;  %v881_v60 = vunpack.c.h.bf16 %v929_v45  ;;  %v884_v62 = vunpack.c.l.bf16 %v930_v50  ;;  %v934_v35 = vld [vmem:[%s1040_s22 + $0x48] sm:$0xff]   ;;  %v935_v48 = vld [vmem:[%s1040_s22 + $0x50] sm:$0xff]  }
  0x1d   : > { %v596_v61 = vadd.f32 %v595_v46, %v594_v52  ;;  %563 = vst.msk [vmem:[%s1077_s29 + $0x18] sm:$0xf] %vm556_vm1, %v836_v55  ;;  %v885_v63 = vunpack.c.h.bf16 %v930_v50  ;;  %v888_v1 = vunpack.c.l.bf16 %v931_v51  ;;  %v889_v4 = vunpack.c.h.bf16 %v931_v51 }
  0x1e   : > { %564 = vst.msk [vmem:[%s1077_s29 + $0x1c] sm:$0xf] %vm556_vm1, %v837_v58  ;;  %v333_v2 = vmul.f32 %v880_v59, %v1045_v0  ;;  %v334_v3 = vmul.f32 %v881_v60, %v1045_v0  ;;  %v892_v5 = vunpack.c.l.bf16 %v1097_v56  ;;  %v335_v7 = vmul.f32 %v884_v62, %v1045_v0 }
  0x1f   : > { %v598_v6 = vadd.f32 %v597_v53, %v596_v61  ;;  %v336_v8 = vmul.f32 %v885_v63, %v1045_v0  ;;  %v337_v10 = vmul.f32 %v888_v1, %v1045_v0  ;;  %v338_v13 = vmul.f32 %v889_v4, %v1045_v0 }
  0x20   : > { %v372_v11 = vadd.f32 %v1054_v9, %v333_v2  ;;  %v373_v12 = vadd.f32 %v1054_v9, %v334_v3  ;;  %v339_v14 = vmul.f32 %v892_v5, %v1045_v0  ;;  %v374_v16 = vadd.f32 %v1054_v9, %v335_v7 }
  0x21   : > { %v600_v15 = vadd.f32 %v599_v54, %v598_v6  ;;  %v375_v17 = vadd.f32 %v1054_v9, %v336_v8  ;;  %v376_v18 = vadd.f32 %v1054_v9, %v337_v10  ;;  %v603_v19 = vsel %vm589_vm0, %v403_v49, 0.0 }
  0x22   : > { %v404_v20 = vmax.f32 %v372_v11, 0.0  ;;  %v405_v21 = vmax.f32 %v373_v12, 0.0  ;;  %v377_v22 = vadd.f32 %v1054_v9, %v338_v13  ;;  %v406_v24 = vmax.f32 %v374_v16, 0.0 }
  0x23   : > { %v602_v23 = vadd.f32 %v601_v57, %v600_v15  ;;  %v407_v25 = vmax.f32 %v375_v17, 0.0  ;;  %v378_v26 = vadd.f32 %v1054_v9, %v339_v14  ;;  %v408_v30 = vmax.f32 %v376_v18, 0.0  ;;  %v936_v15 = vld [vmem:[%s1040_s22 + $0x58] sm:$0xff]  }
  0x24   : > { %v838_v27 = vpack.c.bf16 %v404_v20, %v404_v20  ;;  %v605_v28 = vsel %vm589_vm0, %v404_v20, 0.0  ;;  %v839_v29 = vpack.c.bf16 %v405_v21, %v405_v21  ;;  %v840_v33 = vpack.c.bf16 %v406_v24, %v406_v24 }
  0x25   : > { %v604_v32 = vadd.f32 %v603_v19, %v602_v23  ;;  %v841_v34 = vpack.c.bf16 %v407_v25, %v407_v25  ;;  %v607_v36 = vsel %vm589_vm0, %v405_v21, 0.0  ;;  %v609_v37 = vsel %vm589_vm0, %v406_v24, 0.0  ;;  %v937_v19 = vld [vmem:[%s1040_s22 + $0x60] sm:$0xff]  }
  0x26   : > { %565 = vst.msk [vmem:[%s1077_s29 + $0x20] sm:$0xf] %vm556_vm1, %v838_v27  ;;  %566 = vst.msk [vmem:[%s1077_s29 + $0x24] sm:$0xf] %vm556_vm1, %v839_v29  ;;  %v842_v38 = vpack.c.bf16 %v408_v30, %v408_v30  ;;  %v409_v39 = vmax.f32 %v377_v22, 0.0  ;;  %v410_v41 = vmax.f32 %v378_v26, 0.0  ;;  %v893_v42 = vunpack.c.h.bf16 %v1097_v56 }
  0x27   : > { %v606_v40 = vadd.f32 %v605_v28, %v604_v32  ;;  %567 = vst.msk [vmem:[%s1077_s29 + $0x28] sm:$0xf] %vm556_vm1, %v840_v33  ;;  %568 = vst.msk [vmem:[%s1077_s29 + $0x2c] sm:$0xf] %vm556_vm1, %v841_v34  ;;  %v896_v43 = vunpack.c.l.bf16 %v933_v31  ;;  %v611_v44 = vsel %vm589_vm0, %v407_v25, 0.0  ;;  %v897_v46 = vunpack.c.h.bf16 %v933_v31  ;;  %v938_v32 = vld [vmem:[%s1040_s22 + $0x68] sm:$0xff]  }
  0x28   : > { %569 = vst.msk [vmem:[%s1077_s29 + $0x30] sm:$0xf] %vm556_vm1, %v842_v38  ;;  %v843_v45 = vpack.c.bf16 %v409_v39, %v409_v39  ;;  %v900_v47 = vunpack.c.l.bf16 %v934_v35  ;;  %v613_v50 = vsel %vm589_vm0, %v408_v30, 0.0  ;;  %v844_v51 = vpack.c.bf16 %v410_v41, %v410_v41 }
  0x29   : > { %v608_v49 = vadd.f32 %v607_v36, %v606_v40  ;;  %v340_v52 = vmul.f32 %v893_v42, %v1045_v0  ;;  %v341_v53 = vmul.f32 %v896_v43, %v1045_v0  ;;  %v342_v54 = vmul.f32 %v897_v46, %v1045_v0 }
  0x2a   : > { %570 = vst.msk [vmem:[%s1077_s29 + $0x34] sm:$0xf] %vm556_vm1, %v843_v45  ;;  %v343_v55 = vmul.f32 %v900_v47, %v1045_v0  ;;  %v901_v56 = vunpack.c.h.bf16 %v934_v35  ;;  %571 = vst.msk [vmem:[%s1077_s29 + $0x38] sm:$0xf] %vm556_vm1, %v844_v51  ;;  %v904_v59 = vunpack.c.l.bf16 %v935_v48  ;;  %v905_v60 = vunpack.c.h.bf16 %v935_v48 }
  0x2b   : > { %v610_v57 = vadd.f32 %v609_v37, %v608_v49  ;;  %v379_v58 = vadd.f32 %v1054_v9, %v340_v52  ;;  %v380_v61 = vadd.f32 %v1054_v9, %v341_v53  ;;  %v381_v62 = vadd.f32 %v1054_v9, %v342_v54 }
  0x2c   : > { %v382_v63 = vadd.f32 %v1054_v9, %v343_v55  ;;  %v344_v1 = vmul.f32 %v901_v56, %v1045_v0  ;;  %v615_v3 = vsel %vm589_vm0, %v409_v39, 0.0  ;;  %v345_v5 = vmul.f32 %v904_v59, %v1045_v0 }
  0x2d   : > { %v612_v2 = vadd.f32 %v611_v44, %v610_v57  ;;  %v411_v4 = vmax.f32 %v379_v58, 0.0  ;;  %v412_v6 = vmax.f32 %v380_v61, 0.0  ;;  %v413_v7 = vmax.f32 %v381_v62, 0.0  ;;  %v940_v62 = vld [vmem:[%s1040_s22 + $0x78] sm:$0xff]  }
  0x2e   : > { %v383_v8 = vadd.f32 %v1054_v9, %v344_v1  ;;  %v346_v10 = vmul.f32 %v905_v60, %v1045_v0  ;;  %v414_v13 = vmax.f32 %v382_v63, 0.0  ;;  %v384_v14 = vadd.f32 %v1054_v9, %v345_v5 }
  0x2f   : > { %v614_v11 = vadd.f32 %v613_v50, %v612_v2  ;;  %v845_v12 = vpack.c.bf16 %v411_v4, %v411_v4  ;;  %v617_v16 = vsel %vm589_vm0, %v410_v41, 0.0  ;;  %v846_v17 = vpack.c.bf16 %v412_v6, %v412_v6  ;;  %v939_v41 = vld [vmem:[%s1040_s22 + $0x70] sm:$0xff]  }
  0x30   : > { %v847_v18 = vpack.c.bf16 %v413_v7, %v413_v7  ;;  %v619_v21 = vsel %vm589_vm0, %v411_v4, 0.0  ;;  %v848_v22 = vpack.c.bf16 %v414_v13, %v414_v13  ;;  %v415_v23 = vmax.f32 %v383_v8, 0.0 }
  0x31   : > { %v616_v20 = vadd.f32 %v615_v3, %v614_v11  ;;  %572 = vst.msk [vmem:[%s1077_s29 + $0x3c] sm:$0xf] %vm556_vm1, %v845_v12  ;;  %573 = vst.msk [vmem:[%s1077_s29 + $0x40] sm:$0xf] %vm556_vm1, %v846_v17  ;;  %v416_v24 = vmax.f32 %v384_v14, 0.0  ;;  %v385_v25 = vadd.f32 %v1054_v9, %v346_v10  ;;  %v908_v26 = vunpack.c.l.bf16 %v936_v15 }
  0x32   : > { %574 = vst.msk [vmem:[%s1077_s29 + $0x44] sm:$0xf] %vm556_vm1, %v847_v18  ;;  %v909_v27 = vunpack.c.h.bf16 %v936_v15  ;;  %v621_v29 = vsel %vm589_vm0, %v412_v6, 0.0  ;;  %575 = vst.msk [vmem:[%s1077_s29 + $0x48] sm:$0xf] %vm556_vm1, %v848_v22  ;;  %v849_v30 = vpack.c.bf16 %v415_v23, %v415_v23  ;;  %v912_v31 = vunpack.c.l.bf16 %v937_v19 }
  0x33   : > { %v618_v28 = vadd.f32 %v617_v16, %v616_v20  ;;  %v623_v33 = vsel %vm589_vm0, %v413_v7, 0.0  ;;  %v850_v34 = vpack.c.bf16 %v416_v24, %v416_v24  ;;  %v417_v35 = vmax.f32 %v385_v25, 0.0 }
  0x34   : > { %v347_v36 = vmul.f32 %v908_v26, %v1045_v0  ;;  %576 = vst.msk [vmem:[%s1077_s29 + $0x4c] sm:$0xf] %vm556_vm1, %v849_v30  ;;  %v348_v38 = vmul.f32 %v909_v27, %v1045_v0  ;;  %v349_v39 = vmul.f32 %v912_v31, %v1045_v0  ;;  %v913_v40 = vunpack.c.h.bf16 %v937_v19 }
  0x35   : > { %v620_v37 = vadd.f32 %v619_v21, %v618_v28  ;;  %v625_v42 = vsel %vm589_vm0, %v414_v13, 0.0  ;;  %577 = vst.msk [vmem:[%s1077_s29 + $0x50] sm:$0xf] %vm556_vm1, %v850_v34  ;;  %v851_v43 = vpack.c.bf16 %v417_v35, %v417_v35  ;;  %v916_v45 = vunpack.c.l.bf16 %v938_v32 }
  0x36   : > { %v386_v44 = vadd.f32 %v1054_v9, %v347_v36  ;;  %v387_v47 = vadd.f32 %v1054_v9, %v348_v38  ;;  %v388_v48 = vadd.f32 %v1054_v9, %v349_v39  ;;  %v350_v49 = vmul.f32 %v913_v40, %v1045_v0 }
  0x37   : > { %v622_v46 = vadd.f32 %v621_v29, %v620_v37  ;;  %578 = vst.msk [vmem:[%s1077_s29 + $0x54] sm:$0xf] %vm556_vm1, %v851_v43  ;;  %v351_v51 = vmul.f32 %v916_v45, %v1045_v0  ;;  %v917_v52 = vunpack.c.h.bf16 %v938_v32  ;;  %v920_v53 = vunpack.c.l.bf16 %v939_v41 }
  0x38   : > { %v418_v50 = vmax.f32 %v386_v44, 0.0  ;;  %v419_v55 = vmax.f32 %v387_v47, 0.0  ;;  %v420_v56 = vmax.f32 %v388_v48, 0.0  ;;  %v389_v57 = vadd.f32 %v1054_v9, %v350_v49 }
  0x39   : > { %v624_v54 = vadd.f32 %v623_v33, %v622_v46  ;;  %v627_v58 = vsel %vm589_vm0, %v415_v23, 0.0  ;;  %v390_v60 = vadd.f32 %v1054_v9, %v351_v51  ;;  %v352_v61 = vmul.f32 %v917_v52, %v1045_v0 }
  0x3a   : > { %v852_v59 = vpack.c.bf16 %v418_v50, %v418_v50  ;;  %v853_v1 = vpack.c.bf16 %v419_v55, %v419_v55  ;;  %v854_v2 = vpack.c.bf16 %v420_v56, %v420_v56  ;;  %v629_v3 = vsel %vm589_vm0, %v416_v24, 0.0 }
  0x3b   : > { %v626_v63 = vadd.f32 %v625_v42, %v624_v54  ;;  %v421_v4 = vmax.f32 %v389_v57, 0.0  ;;  %v422_v5 = vmax.f32 %v390_v60, 0.0  ;;  %v391_v6 = vadd.f32 %v1054_v9, %v352_v61 }
  0x3c   : > { %579 = vst.msk [vmem:[%s1077_s29 + $0x58] sm:$0xf] %vm556_vm1, %v852_v59  ;;  %580 = vst.msk [vmem:[%s1077_s29 + $0x5c] sm:$0xf] %vm556_vm1, %v853_v1  ;;  %v353_v8 = vmul.f32 %v920_v53, %v1045_v0  ;;  %v921_v10 = vunpack.c.h.bf16 %v939_v41  ;;  %v924_v11 = vunpack.c.l.bf16 %v940_v62  ;;  %v631_v12 = vsel %vm589_vm0, %v417_v35, 0.0 }
  0x3d   : > { %v628_v7 = vadd.f32 %v627_v58, %v626_v63  ;;  %581 = vst.msk [vmem:[%s1077_s29 + $0x60] sm:$0xf] %vm556_vm1, %v854_v2  ;;  %v855_v13 = vpack.c.bf16 %v421_v4, %v421_v4  ;;  %v856_v14 = vpack.c.bf16 %v422_v5, %v422_v5  ;;  %v423_v16 = vmax.f32 %v391_v6, 0.0 }
  0x3e   : > { %v392_v17 = vadd.f32 %v1054_v9, %v353_v8  ;;  %v354_v18 = vmul.f32 %v921_v10, %v1045_v0  ;;  %v633_v19 = vsel %vm589_vm0, %v418_v50, 0.0  ;;  %v355_v20 = vmul.f32 %v924_v11, %v1045_v0 }
  0x3f   : > { %v630_v15 = vadd.f32 %v629_v3, %v628_v7  ;;  %582 = vst.msk [vmem:[%s1077_s29 + $0x64] sm:$0xf] %vm556_vm1, %v855_v13  ;;  %583 = vst.msk [vmem:[%s1077_s29 + $0x68] sm:$0xf] %vm556_vm1, %v856_v14  ;;  %v925_v21 = vunpack.c.h.bf16 %v940_v62  ;;  %v857_v23 = vpack.c.bf16 %v423_v16, %v423_v16  ;;  %v635_v25 = vsel %vm589_vm0, %v419_v55, 0.0 }
  0x40   : > { %v424_v24 = vmax.f32 %v392_v17, 0.0  ;;  %v393_v26 = vadd.f32 %v1054_v9, %v354_v18  ;;  %v394_v27 = vadd.f32 %v1054_v9, %v355_v20  ;;  %v637_v31 = vsel %vm589_vm0, %v420_v56, 0.0 }
  0x41   : > { %v632_v22 = vadd.f32 %v631_v12, %v630_v15  ;;  %v356_v28 = vmul.f32 %v925_v21, %v1045_v0  ;;  %584 = vst.msk [vmem:[%s1077_s29 + $0x6c] sm:$0xf] %vm556_vm1, %v857_v23  ;;  %v639_v36 = vsel %vm589_vm0, %v421_v4, 0.0  ;;  %v641_v40 = vsel %vm589_vm0, %v422_v5, 0.0 }
  0x42   : > { %v858_v30 = vpack.c.bf16 %v424_v24, %v424_v24  ;;  %v425_v32 = vmax.f32 %v393_v26, 0.0  ;;  %v426_v33 = vmax.f32 %v394_v27, 0.0  ;;  %v643_v43 = vsel %vm589_vm0, %v423_v16, 0.0 }
  0x43   : > { %v634_v29 = vadd.f32 %v633_v19, %v632_v22  ;;  %v395_v34 = vadd.f32 %v1054_v9, %v356_v28  ;;  %v645_v44 = vsel %vm589_vm0, %v424_v24, 0.0 }
  0x44   : > { %585 = vst.msk [vmem:[%s1077_s29 + $0x70] sm:$0xf] %vm556_vm1, %v858_v30  ;;  %v859_v37 = vpack.c.bf16 %v425_v32, %v425_v32  ;;  %v860_v0 = vpack.c.bf16 %v426_v33, %v426_v33  ;;  %v647_v46 = vsel %vm589_vm0, %v425_v32, 0.0  ;;  %v649_v48 = vsel %vm589_vm0, %v426_v33, 0.0 }
  0x45   : > { %v636_v35 = vadd.f32 %v635_v25, %v634_v29  ;;  %v427_v39 = vmax.f32 %v395_v34, 0.0 }
  0x46   : > { %586 = vst.msk [vmem:[%s1077_s29 + $0x74] sm:$0xf] %vm556_vm1, %v859_v37  ;;  %587 = vst.msk [vmem:[%s1077_s29 + $0x78] sm:$0xf] %vm556_vm1, %v860_v0 }
  0x47   : > { %v638_v38 = vadd.f32 %v637_v31, %v636_v35  ;;  %v861_v42 = vpack.c.bf16 %v427_v39, %v427_v39  ;;  %v651_v50 = vsel %vm589_vm0, %v427_v39, 0.0 }
  0x49   : > { %v640_v41 = vadd.f32 %v639_v36, %v638_v38  ;;  %588 = vst.msk [vmem:[%s1077_s29 + $0x7c] sm:$0xf] %vm556_vm1, %v861_v42 }
  0x4b   : > { %v642_v9 = vadd.f32 %v641_v40, %v640_v41 }
  0x4d   : > { %v644_v45 = vadd.f32 %v643_v43, %v642_v9 }
  0x4f   : > { %v646_v47 = vadd.f32 %v645_v44, %v644_v45 }
  0x51   : > { %v648_v49 = vadd.f32 %v647_v46, %v646_v47 }
  0x53   : > { %v650_v51 = vadd.f32 %v649_v48, %v648_v49 }
  0x55   : > { %v652_v52 = vadd.f32 %v651_v50, %v650_v51 }
  0x57   : > { %v653_v53 = vrot.slane %v652_v52, 4 }
  0x59   : > { %v654_v54 = vadd.f32 %v653_v53, %v652_v52 }
  0x5b   : > { %v655_v55 = vrot.slane %v654_v54, 2 }
  0x5d   : > { %v656_v56 = vadd.f32 %v655_v55, %v654_v54 }
  0x5f   : > { %v657_v57 = vrot.slane %v656_v56, 1 }
  0x61   : > { %v658_v58 = vadd.f32 %v657_v57, %v656_v56 }
  0x63   : > { %660 = vst.msk [vmem:[%s253_s6] sm:$0x1] %vm659_vm2, %v658_v58 }
  0x64 PF: > { %s15_s17 = sadd.s32 1, %s987_s17   ;;  %s1257_s15 = smov %s983_s16 }
  0x65   : > { %p12_p5 = scmp.ge.s32.totalorder %s15_s17, 4   ;;  %s1258_s16 = smov %s1260_s18 }
  0x67   :  { %14 = sbr.rel (!%p12_p5) target bundleno = 2 (0x2), region = 74 }

// kernel: decoder_forward.7
= control target key start
LH: loop header
LB: loop body
LE: loop exit
PB: predicated region body
PF: predicated region fallthrough
CT: control target
= control target key end

     0   :  { %s1433_s12 = smov 0   ;;  %s1435_s13 = smov 0   ;;  %s1801_s0 = inlined_call_operand.vmem [shape: bf16[2,256,144], index: 0, kind: input, shape index: {}]   ;;  %s1802_s1 = inlined_call_operand.vmem [shape: bf16[144,64], index: 1, kind: input, shape index: {}]   ;;  %s1803_s2 = inlined_call_operand.vmem [shape: bf16[2,256,64], index: 2, kind: output, shape index: {0}]   ;;  %s1804_s3 = inlined_call_operand.vmem [shape: f32[2,1,1,128], index: 3, kind: output, shape index: {1}]  }
   0x1   :  { %s1437_s14 = smov 0  }
   0x2 LB: > { %s26_s15 = sadd.s32 1, %s1405_s13  ;;  %p1156_p0 = scmp.ge.s32.totalorder %s1409_s14, 1  ;;  %s1409_s14 = sphi %s1437_s14, %s14_s14   ;;  %s1405_s13 = sphi %s1435_s13, %s1806_s13   ;;  %s1401_s12 = sphi %s1433_s12, %s1805_s12  }
   0x3   : > { %p28_p1 = scmp.ge.s32.totalorder %s26_s15, 2  ;;  %p164_p2 = scmp.lt.s32.totalorder %s1409_s14, 3 }
   0x5   : > { %s1808_s15 = smov (%p28_p1, %s26_s15), 0  ;;  %p165_p3 = pnand %p1156_p0, %p164_p2 }
   0x6   : > { %p204_p4 = scmp.lt.s32.totalorder (!%p165_p3), %s1401_s12, 1  ;;  %s1412_s19 = smov (!%p165_p3), 64  }
   0x7   : > { %168 = sbr.rel (%p165_p3) target bundleno = 468 (0x1d4), region = 28 }
   0xc   : > { %v1330_v0 = vld [vmem:[%s1802_s1 + $0x38] sm:$0xff]   ;;  %v1411_v1 = vmov 0   ;;  %v1331_v2 = vld [vmem:[%s1802_s1 + $0x30] sm:$0xff]   ;;  %s1810_s12 = smov (!%p204_p4, %s1401_s12), 1  ;;  %v1332_v3 = vld [vmem:[%s1802_s1 + $0x28] sm:$0xff]   ;;  %vm479_vm0 = vcmask 130048  }
   0xd   : > { %528 = vmatprep.subr.bf16.mxu0 %v1411_v1  ;;  %1286 = vmatprep.subr.bf16.mxu1 %v1411_v1  ;;  %s1252_s20 = sshll.u32 %s1810_s12, 8  ;;  %v1333_v4 = vld [vmem:[%s1802_s1 + $0x20] sm:$0xff]   ;;  %v1334_v6 = vld [vmem:[%s1802_s1 + $0x18] sm:$0xff]   ;;  %v1335_v8 = vld [vmem:[%s1802_s1 + $0x10] sm:$0xff]   ;;  %s1253_s11 = sshll.u32 %s1810_s12, 7  ;;  %vm817_vm1 = vcmask 519168  }
   0xe   : > { %529 = vmatpush1.bf16.msra.mxu0 %v1330_v0  ;;  %1295 = vmatpush1.bf16.msra.mxu1 %v1330_v0  ;;  %s1466_s25 = scalar_lea.vmem %s1801_s0, %s1252_s20  ;;  %v1336_v9 = vld [vmem:[%s1802_s1 + $0x8] sm:$0xff]   ;;  %v1337_v10 = vld [vmem:[%s1802_s1] sm:$0xff]   ;;  %s1538_s18 = scalar_lea.vmem %s1803_s2, %s1253_s11  ;;  %vm850_vm2 = vcmask 523264  }
   0xf   : > { %530 = vmatprep.subr.bf16.mxu0 %v1411_v1  ;;  %1287 = vmatprep.subr.bf16.mxu1 %v1411_v1  ;;  %v1341_v5 = vld [vmem:[%s1466_s25 + $0x4] ss:$8 sps:$4 sm:$0xff]   ;;  %v1339_v12 = vld [vmem:[%s1466_s25] ss:$8 sps:$4 sm:$0xff]   ;;  %v1342_v14 = vld [vmem:[%s1466_s25 + $0x14] ss:$8 sps:$4 sm:$0xff]   ;;  %s229_s22 = scalar_lea.vmem %s1804_s3, %s1810_s12 }
  0x10   : > { %1202 = vmatprep.mubr.msk.bf16.mxu0 %vm479_vm0, %v1341_v5  ;;  %v1353_v7 = vld [vmem:[%s1466_s25 + $0x84] ss:$8 sps:$4 sm:$0xff]   ;;  %v1351_v13 = vld [vmem:[%s1466_s25 + $0x80] ss:$8 sps:$4 sm:$0xff]   ;;  %v1357_v15 = vld [vmem:[%s1466_s25 + $0x94] ss:$8 sps:$4 sm:$0xff]  }
  0x11   : > { %1210 = vmatprep.mubr.msk.bf16.mxu1 %vm479_vm0, %v1353_v7  ;;  %v1338_v11 = vld [vmem:[%s1802_s1 + $0x40] sm:$0xff]   ;;  %v1344_v16 = vld [vmem:[%s1466_s25 + $0x10] ss:$8 sps:$4 sm:$0xff]   ;;  %v1348_v22 = vld [vmem:[%s1466_s25 + $0x34] ss:$8 sps:$4 sm:$0xff]  }
  0x12   : > { %531 = vmatpush1.bf16.msra.mxu0 %v1331_v2  ;;  %1296 = vmatpush1.bf16.msra.mxu1 %v1331_v2  ;;  %v1359_v17 = vld [vmem:[%s1466_s25 + $0x90] ss:$8 sps:$4 sm:$0xff]   ;;  %v1345_v18 = vld [vmem:[%s1466_s25 + $0x24] ss:$8 sps:$4 sm:$0xff]   ;;  %v1347_v20 = vld [vmem:[%s1466_s25 + $0x20] ss:$8 sps:$4 sm:$0xff]  }
  0x13   : > { %532 = vmatprep.subr.bf16.mxu0 %v1411_v1  ;;  %1288 = vmatprep.subr.bf16.mxu1 %v1411_v1  ;;  %v1363_v19 = vld [vmem:[%s1466_s25 + $0xa4] ss:$8 sps:$4 sm:$0xff]   ;;  %v1365_v21 = vld [vmem:[%s1466_s25 + $0xa0] ss:$8 sps:$4 sm:$0xff]   ;;  %v1369_v23 = vld [vmem:[%s1466_s25 + $0xb4] ss:$8 sps:$4 sm:$0xff]  }
  0x14   : > { %v1350_v24 = vld [vmem:[%s1466_s25 + $0x30] ss:$8 sps:$4 sm:$0xff]   ;;  %v1354_v26 = vld [vmem:[%s1466_s25 + $0x44] ss:$8 sps:$4 sm:$0xff]   ;;  %v1356_v28 = vld [vmem:[%s1466_s25 + $0x40] ss:$8 sps:$4 sm:$0xff]  }
  0x15   : > { %v1371_v25 = vld [vmem:[%s1466_s25 + $0xb0] ss:$8 sps:$4 sm:$0xff]   ;;  %v1375_v27 = vld [vmem:[%s1466_s25 + $0xc4] ss:$8 sps:$4 sm:$0xff]   ;;  %v1377_v29 = vld [vmem:[%s1466_s25 + $0xc0] ss:$8 sps:$4 sm:$0xff]  }
  0x16   : > { %533 = vmatpush1.bf16.msra.mxu0 %v1332_v3  ;;  %1297 = vmatpush1.bf16.msra.mxu1 %v1332_v3  ;;  %v1360_v30 = vld [vmem:[%s1466_s25 + $0x54] ss:$8 sps:$4 sm:$0xff]   ;;  %v1362_v32 = vld [vmem:[%s1466_s25 + $0x50] ss:$8 sps:$4 sm:$0xff]   ;;  %v1366_v34 = vld [vmem:[%s1466_s25 + $0x64] ss:$8 sps:$4 sm:$0xff]  }
  0x17   : > { %534 = vmatprep.subr.bf16.mxu0 %v1411_v1  ;;  %1289 = vmatprep.subr.bf16.mxu1 %v1411_v1  ;;  %v1378_v31 = vld [vmem:[%s1466_s25 + $0xd4] ss:$8 sps:$4 sm:$0xff]   ;;  %v1380_v33 = vld [vmem:[%s1466_s25 + $0xd0] ss:$8 sps:$4 sm:$0xff]   ;;  %v1381_v35 = vld [vmem:[%s1466_s25 + $0xe4] ss:$8 sps:$4 sm:$0xff]  }
  0x18   : > { %v1368_v36 = vld [vmem:[%s1466_s25 + $0x60] ss:$8 sps:$4 sm:$0xff]   ;;  %v1372_v38 = vld [vmem:[%s1466_s25 + $0x74] ss:$8 sps:$4 sm:$0xff]   ;;  %v1374_v40 = vld [vmem:[%s1466_s25 + $0x70] ss:$8 sps:$4 sm:$0xff]  }
  0x19   : > { %v1383_v37 = vld [vmem:[%s1466_s25 + $0xe0] ss:$8 sps:$4 sm:$0xff]   ;;  %v1384_v39 = vld [vmem:[%s1466_s25 + $0xf4] ss:$8 sps:$4 sm:$0xff]   ;;  %v1386_v41 = vld [vmem:[%s1466_s25 + $0xf0] ss:$8 sps:$4 sm:$0xff]  }
  0x1a   : > { %535 = vmatpush1.bf16.msra.mxu0 %v1333_v4  ;;  %1298 = vmatpush1.bf16.msra.mxu1 %v1333_v4 }
  0x1b   : > { %536 = vmatprep.subr.bf16.mxu0 %v1411_v1  ;;  %1290 = vmatprep.subr.bf16.mxu1 %v1411_v1 }
  0x1e   : > { %537 = vmatpush1.bf16.msra.mxu0 %v1334_v6  ;;  %1299 = vmatpush1.bf16.msra.mxu1 %v1334_v6 }
  0x1f   : > { %538 = vmatprep.subr.bf16.mxu0 %v1411_v1  ;;  %1291 = vmatprep.subr.bf16.mxu1 %v1411_v1 }
  0x22   : > { %539 = vmatpush1.bf16.msra.mxu0 %v1335_v8  ;;  %1300 = vmatpush1.bf16.msra.mxu1 %v1335_v8 }
  0x23   : > { %540 = vmatprep.subr.bf16.mxu0 %v1411_v1  ;;  %1292 = vmatprep.subr.bf16.mxu1 %v1411_v1 }
  0x26   : > { %541 = vmatpush1.bf16.msra.mxu0 %v1336_v9  ;;  %1301 = vmatpush1.bf16.msra.mxu1 %v1336_v9 }
  0x27   : > { %542 = vmatprep.subr.bf16.mxu0 %v1411_v1  ;;  %1293 = vmatprep.subr.bf16.mxu1 %v1411_v1 }
  0x2a   : > { %543 = vmatpush1.bf16.msra.mxu0 %v1337_v10  ;;  %1302 = vmatpush1.bf16.msra.mxu1 %v1337_v10 }
  0x2b   : > { %558 = vmatprep.subr.bf16.mxu0 %v1411_v1  ;;  %1294 = vmatprep.subr.bf16.mxu1 %v1411_v1 }
  0x2e   : > { %559 = vmatpush2.bf16.msra.mxu0 %v1338_v11  ;;  %1303 = vmatpush2.bf16.msra.mxu1 %v1338_v11 }
  0x31   : > { %561 = vmatmul.mubr.bf16.vlgmr.msra.gmra.mxu0 %v1339_v12  ;;  %625 = vmatmul.mubr.bf16.vlgmr.msra.gmra.mxu1 %v1351_v13 }
  0x32   : > { %1203 = vmatprep.mubr.msk.bf16.mxu0 %vm479_vm0, %v1342_v14  ;;  %1211 = vmatprep.mubr.msk.bf16.mxu1 %vm479_vm0, %v1357_v15 }
  0x39   : > { %569 = vmatmul.mubr.bf16.gmra.mxu0 %v1344_v16  ;;  %633 = vmatmul.mubr.bf16.gmra.mxu1 %v1359_v17 }
  0x3a   : > { %1204 = vmatprep.mubr.msk.bf16.mxu0 %vm479_vm0, %v1345_v18  ;;  %1212 = vmatprep.mubr.msk.bf16.mxu1 %vm479_vm0, %v1363_v19 }
  0x41   : > { %577 = vmatmul.mubr.bf16.gmra.mxu0 %v1347_v20  ;;  %641 = vmatmul.mubr.bf16.gmra.mxu1 %v1365_v21 }
  0x42   : > { %1205 = vmatprep.mubr.msk.bf16.mxu0 %vm479_vm0, %v1348_v22  ;;  %1213 = vmatprep.mubr.msk.bf16.mxu1 %vm479_vm0, %v1369_v23 }
  0x49   : > { %585 = vmatmul.mubr.bf16.gmra.mxu0 %v1350_v24  ;;  %649 = vmatmul.mubr.bf16.gmra.mxu1 %v1371_v25 }
  0x4a   : > { %1206 = vmatprep.mubr.msk.bf16.mxu0 %vm479_vm0, %v1354_v26  ;;  %1214 = vmatprep.mubr.msk.bf16.mxu1 %vm479_vm0, %v1375_v27 }
  0x51   : > { %593 = vmatmul.mubr.bf16.gmra.mxu0 %v1356_v28  ;;  %657 = vmatmul.mubr.bf16.gmra.mxu1 %v1377_v29 }
  0x52   : > { %1207 = vmatprep.mubr.msk.bf16.mxu0 %vm479_vm0, %v1360_v30  ;;  %1215 = vmatprep.mubr.msk.bf16.mxu1 %vm479_vm0, %v1378_v31 }
  0x59   : > { %601 = vmatmul.mubr.bf16.gmra.mxu0 %v1362_v32  ;;  %665 = vmatmul.mubr.bf16.gmra.mxu1 %v1380_v33 }
  0x5a   : > { %1208 = vmatprep.mubr.msk.bf16.mxu0 %vm479_vm0, %v1366_v34  ;;  %1216 = vmatprep.mubr.msk.bf16.mxu1 %vm479_vm0, %v1381_v35 }
  0x61   : > { %609 = vmatmul.mubr.bf16.gmra.mxu0 %v1368_v36  ;;  %673 = vmatmul.mubr.bf16.gmra.mxu1 %v1383_v37 }
  0x62   : > { %1209 = vmatprep.mubr.msk.bf16.mxu0 %vm479_vm0, %v1372_v38  ;;  %1217 = vmatprep.mubr.msk.bf16.mxu1 %vm479_vm0, %v1384_v39 }
  0x69   : > { %617 = vmatmul.mubr.bf16.gmra.mxu0 %v1374_v40  ;;  %681 = vmatmul.mubr.bf16.gmra.mxu1 %v1386_v41 }
  0xf1   : > { %v1540_v42 = vpop.f32.mrf.mxu0  ;;  %v1542_v43 = vpop.f32.mrf.mxu1 }
  0xf2   : > { %v1254_v44 = vpack.c.bf16 %v1540_v42, %v1540_v42  ;;  %v1270_v45 = vpack.c.bf16 %v1542_v43, %v1542_v43  ;;  %v851_v50 = vsel %vm850_vm2, %v1540_v42, 0.0 }
  0xf3   : > { %v564_v46 = vpop.f32.mrf.mxu0  ;;  %v628_v47 = vpop.f32.mrf.mxu1 }
  0xf4   : > { %818 = vst.msk [vmem:[%s1538_s18] sm:$0xf] %vm817_vm1, %v1254_v44  ;;  %834 = vst.msk [vmem:[%s1538_s18 + $0x40] sm:$0xf] %vm817_vm1, %v1270_v45  ;;  %v920_v44 = vmul.f32 %v1540_v42, %v1540_v42 }
  0xf5   : > { %v565_v48 = vpop.f32.mrf.mxu0  ;;  %v1552_v49 = vpop.f32.mrf.mxu1 }
  0xf6   : > { %v1255_v51 = vpack.c.bf16 %v565_v48, %v565_v48  ;;  %v852_v52 = vsel %vm850_vm2, %v565_v48, 0.0  ;;  %v1271_v53 = vpack.c.bf16 %v1552_v49, %v1552_v49  ;;  %v921_v35 = vmul.f32 %v565_v48, %v565_v48 }
  0xf7   : > { %v853_v54 = vadd.f32 %v852_v52, %v851_v50  ;;  %v567_v55 = vpop.f32.mrf.mxu0  ;;  %v631_v56 = vpop.f32.mrf.mxu1 }
  0xf8   : > { %819 = vst.msk [vmem:[%s1538_s18 + $0x4] sm:$0xf] %vm817_vm1, %v1255_v51  ;;  %835 = vst.msk [vmem:[%s1538_s18 + $0x44] sm:$0xf] %vm817_vm1, %v1271_v53  ;;  %v953_v50 = vsel %vm850_vm2, %v921_v35, 0.0  ;;  %v952_v56 = vsel %vm850_vm2, %v920_v44, 0.0 }
  0xf9   : > { %v570_v57 = vpop.f32.mrf.mxu0  ;;  %v1563_v58 = vpop.f32.mrf.mxu1 }
  0xfa   : > { %v1256_v59 = vpack.c.bf16 %v570_v57, %v570_v57  ;;  %v854_v60 = vsel %vm850_vm2, %v570_v57, 0.0  ;;  %v1272_v61 = vpack.c.bf16 %v1563_v58, %v1563_v58  ;;  %v922_v45 = vmul.f32 %v570_v57, %v570_v57 }
  0xfb   : > { %v855_v62 = vadd.f32 %v854_v60, %v853_v54  ;;  %v572_v63 = vpop.f32.mrf.mxu0  ;;  %v636_v0 = vpop.f32.mrf.mxu1  ;;  %v954_v60 = vadd.f32 %v953_v50, %v952_v56 }
  0xfc   : > { %820 = vst.msk [vmem:[%s1538_s18 + $0x8] sm:$0xf] %vm817_vm1, %v1256_v59  ;;  %836 = vst.msk [vmem:[%s1538_s18 + $0x48] sm:$0xf] %vm817_vm1, %v1272_v61  ;;  %v955_v57 = vsel %vm850_vm2, %v922_v45, 0.0 }
  0xfd   : > { %v573_v1 = vpop.f32.mrf.mxu0  ;;  %v1572_v2 = vpop.f32.mrf.mxu1 }
  0xfe   : > { %v1257_v3 = vpack.c.bf16 %v573_v1, %v573_v1  ;;  %v856_v4 = vsel %vm850_vm2, %v573_v1, 0.0  ;;  %v1273_v5 = vpack.c.bf16 %v1572_v2, %v1572_v2  ;;  %v923_v46 = vmul.f32 %v573_v1, %v573_v1 }
  0xff   : > { %v857_v6 = vadd.f32 %v856_v4, %v855_v62  ;;  %v575_v7 = vpop.f32.mrf.mxu0  ;;  %v639_v8 = vpop.f32.mrf.mxu1 }
 0x100   : > { %821 = vst.msk [vmem:[%s1538_s18 + $0xc] sm:$0xf] %vm817_vm1, %v1257_v3  ;;  %837 = vst.msk [vmem:[%s1538_s18 + $0x4c] sm:$0xf] %vm817_vm1, %v1273_v5  ;;  %v957_v61 = vsel %vm850_vm2, %v923_v46, 0.0  ;;  %v956_v5 = vadd.f32 %v955_v57, %v954_v60 }
 0x101   : > { %v578_v9 = vpop.f32.mrf.mxu0  ;;  %v1581_v10 = vpop.f32.mrf.mxu1 }
 0x102   : > { %v1258_v11 = vpack.c.bf16 %v578_v9, %v578_v9  ;;  %v858_v12 = vsel %vm850_vm2, %v578_v9, 0.0  ;;  %v1274_v13 = vpack.c.bf16 %v1581_v10, %v1581_v10  ;;  %v924_v59 = vmul.f32 %v578_v9, %v578_v9 }
 0x103   : > { %v859_v14 = vadd.f32 %v858_v12, %v857_v6  ;;  %v580_v15 = vpop.f32.mrf.mxu0  ;;  %v644_v16 = vpop.f32.mrf.mxu1  ;;  %v958_v12 = vadd.f32 %v957_v61, %v956_v5 }
 0x104   : > { %822 = vst.msk [vmem:[%s1538_s18 + $0x10] sm:$0xf] %vm817_vm1, %v1258_v11  ;;  %838 = vst.msk [vmem:[%s1538_s18 + $0x50] sm:$0xf] %vm817_vm1, %v1274_v13  ;;  %v959_v9 = vsel %vm850_vm2, %v924_v59, 0.0 }
 0x105   : > { %v581_v17 = vpop.f32.mrf.mxu0  ;;  %v1590_v18 = vpop.f32.mrf.mxu1 }
 0x106   : > { %v1259_v19 = vpack.c.bf16 %v581_v17, %v581_v17  ;;  %v860_v20 = vsel %vm850_vm2, %v581_v17, 0.0  ;;  %v1275_v21 = vpack.c.bf16 %v1590_v18, %v1590_v18  ;;  %v925_v0 = vmul.f32 %v581_v17, %v581_v17 }
 0x107   : > { %v861_v22 = vadd.f32 %v860_v20, %v859_v14  ;;  %v583_v23 = vpop.f32.mrf.mxu0  ;;  %v647_v24 = vpop.f32.mrf.mxu1 }
 0x108   : > { %823 = vst.msk [vmem:[%s1538_s18 + $0x14] sm:$0xf] %vm817_vm1, %v1259_v19  ;;  %839 = vst.msk [vmem:[%s1538_s18 + $0x54] sm:$0xf] %vm817_vm1, %v1275_v21  ;;  %v961_v16 = vsel %vm850_vm2, %v925_v0, 0.0  ;;  %v960_v21 = vadd.f32 %v959_v9, %v958_v12 }
 0x109   : > { %v586_v25 = vpop.f32.mrf.mxu0  ;;  %v1599_v26 = vpop.f32.mrf.mxu1 }
 0x10a   : > { %v1260_v27 = vpack.c.bf16 %v586_v25, %v586_v25  ;;  %v862_v28 = vsel %vm850_vm2, %v586_v25, 0.0  ;;  %v1276_v29 = vpack.c.bf16 %v1599_v26, %v1599_v26  ;;  %v926_v11 = vmul.f32 %v586_v25, %v586_v25 }
 0x10b   : > { %v863_v30 = vadd.f32 %v862_v28, %v861_v22  ;;  %v588_v31 = vpop.f32.mrf.mxu0  ;;  %v652_v32 = vpop.f32.mrf.mxu1  ;;  %v962_v28 = vadd.f32 %v961_v16, %v960_v21 }
 0x10c   : > { %824 = vst.msk [vmem:[%s1538_s18 + $0x18] sm:$0xf] %vm817_vm1, %v1260_v27  ;;  %840 = vst.msk [vmem:[%s1538_s18 + $0x58] sm:$0xf] %vm817_vm1, %v1276_v29  ;;  %v963_v25 = vsel %vm850_vm2, %v926_v11, 0.0 }
 0x10d   : > { %v589_v33 = vpop.f32.mrf.mxu0  ;;  %v1608_v34 = vpop.f32.mrf.mxu1 }
 0x10e   : > { %v1261_v36 = vpack.c.bf16 %v589_v33, %v589_v33  ;;  %v864_v37 = vsel %vm850_vm2, %v589_v33, 0.0  ;;  %v1277_v38 = vpack.c.bf16 %v1608_v34, %v1608_v34  ;;  %v927_v13 = vmul.f32 %v589_v33, %v589_v33 }
 0x10f   : > { %v865_v39 = vadd.f32 %v864_v37, %v863_v30  ;;  %v591_v40 = vpop.f32.mrf.mxu0  ;;  %v655_v41 = vpop.f32.mrf.mxu1  ;;  %v964_v37 = vadd.f32 %v963_v25, %v962_v28 }
 0x110   : > { %825 = vst.msk [vmem:[%s1538_s18 + $0x1c] sm:$0xf] %vm817_vm1, %v1261_v36  ;;  %841 = vst.msk [vmem:[%s1538_s18 + $0x5c] sm:$0xf] %vm817_vm1, %v1277_v38  ;;  %v965_v29 = vsel %vm850_vm2, %v927_v13, 0.0 }
 0x111   : > { %v594_v47 = vpop.f32.mrf.mxu0  ;;  %v1619_v48 = vpop.f32.mrf.mxu1  ;;  %v966_v45 = vadd.f32 %v965_v29, %v964_v37  ;;  %v936_v29 = vmul.f32 %v1542_v43, %v1542_v43 }
 0x112   : > { %v1262_v51 = vpack.c.bf16 %v594_v47, %v594_v47  ;;  %v866_v52 = vsel %vm850_vm2, %v594_v47, 0.0  ;;  %v1278_v53 = vpack.c.bf16 %v1619_v48, %v1619_v48  ;;  %v928_v27 = vmul.f32 %v594_v47, %v594_v47 }
 0x113   : > { %v867_v42 = vadd.f32 %v866_v52, %v865_v39  ;;  %v596_v54 = vpop.f32.mrf.mxu0  ;;  %v660_v55 = vpop.f32.mrf.mxu1 }
 0x114   : > { %826 = vst.msk [vmem:[%s1538_s18 + $0x20] sm:$0xf] %vm817_vm1, %v1262_v51  ;;  %842 = vst.msk [vmem:[%s1538_s18 + $0x60] sm:$0xf] %vm817_vm1, %v1278_v53  ;;  %v967_v41 = vsel %vm850_vm2, %v928_v27, 0.0 }
 0x115   : > { %v597_v62 = vpop.f32.mrf.mxu0  ;;  %v1632_v63 = vpop.f32.mrf.mxu1  ;;  %v968_v54 = vadd.f32 %v967_v41, %v966_v45  ;;  %v882_v45 = vsel %vm850_vm2, %v1542_v43, 0.0 }
 0x116   : > { %v1263_v1 = vpack.c.bf16 %v597_v62, %v597_v62  ;;  %v868_v3 = vsel %vm850_vm2, %v597_v62, 0.0  ;;  %v1279_v4 = vpack.c.bf16 %v1632_v63, %v1632_v63  ;;  %v929_v32 = vmul.f32 %v597_v62, %v597_v62 }
 0x117   : > { %v869_v6 = vadd.f32 %v868_v3, %v867_v42  ;;  %v599_v7 = vpop.f32.mrf.mxu0  ;;  %v663_v8 = vpop.f32.mrf.mxu1 }
 0x118   : > { %827 = vst.msk [vmem:[%s1538_s18 + $0x24] sm:$0xf] %vm817_vm1, %v1263_v1  ;;  %843 = vst.msk [vmem:[%s1538_s18 + $0x64] sm:$0xf] %vm817_vm1, %v1279_v4  ;;  %v969_v51 = vsel %vm850_vm2, %v929_v32, 0.0 }
 0x119   : > { %v602_v14 = vpop.f32.mrf.mxu0  ;;  %v1642_v15 = vpop.f32.mrf.mxu1  ;;  %v970_v61 = vadd.f32 %v969_v51, %v968_v54  ;;  %v938_v54 = vmul.f32 %v1563_v58, %v1563_v58 }
 0x11a   : > { %v1264_v17 = vpack.c.bf16 %v602_v14, %v602_v14  ;;  %v870_v19 = vsel %vm850_vm2, %v602_v14, 0.0  ;;  %v1280_v20 = vpack.c.bf16 %v1642_v15, %v1642_v15  ;;  %v930_v44 = vmul.f32 %v602_v14, %v602_v14 }
 0x11b   : > { %v871_v22 = vadd.f32 %v870_v19, %v869_v6  ;;  %v604_v23 = vpop.f32.mrf.mxu0  ;;  %v668_v24 = vpop.f32.mrf.mxu1 }
 0x11c   : > { %828 = vst.msk [vmem:[%s1538_s18 + $0x28] sm:$0xf] %vm817_vm1, %v1264_v17  ;;  %844 = vst.msk [vmem:[%s1538_s18 + $0x68] sm:$0xf] %vm817_vm1, %v1280_v20  ;;  %v971_v59 = vsel %vm850_vm2, %v930_v44, 0.0 }
 0x11d   : > { %v605_v30 = vpop.f32.mrf.mxu0  ;;  %v1654_v31 = vpop.f32.mrf.mxu1  ;;  %v972_v7 = vadd.f32 %v971_v59, %v970_v61  ;;  %v939_v59 = vmul.f32 %v1572_v2, %v1572_v2 }
 0x11e   : > { %v1265_v33 = vpack.c.bf16 %v605_v30, %v605_v30  ;;  %v872_v35 = vsel %vm850_vm2, %v605_v30, 0.0  ;;  %v1281_v36 = vpack.c.bf16 %v1654_v31, %v1654_v31  ;;  %v931_v46 = vmul.f32 %v605_v30, %v605_v30 }
 0x11f   : > { %v873_v38 = vadd.f32 %v872_v35, %v871_v22  ;;  %v607_v39 = vpop.f32.mrf.mxu0  ;;  %v671_v40 = vpop.f32.mrf.mxu1 }
 0x120   : > { %829 = vst.msk [vmem:[%s1538_s18 + $0x2c] sm:$0xf] %vm817_vm1, %v1265_v33  ;;  %845 = vst.msk [vmem:[%s1538_s18 + $0x6c] sm:$0xf] %vm817_vm1, %v1281_v36  ;;  %v973_v62 = vsel %vm850_vm2, %v931_v46, 0.0  ;;  %v937_v46 = vmul.f32 %v1552_v49, %v1552_v49 }
 0x121   : > { %v610_v47 = vpop.f32.mrf.mxu0  ;;  %v1664_v50 = vpop.f32.mrf.mxu1  ;;  %v974_v13 = vadd.f32 %v973_v62, %v972_v7  ;;  %v987_v62 = vsel %vm850_vm2, %v938_v54, 0.0 }
 0x122   : > { %v1266_v52 = vpack.c.bf16 %v610_v47, %v610_v47  ;;  %v874_v53 = vsel %vm850_vm2, %v610_v47, 0.0  ;;  %v1282_v42 = vpack.c.bf16 %v1664_v50, %v1664_v50  ;;  %v932_v60 = vmul.f32 %v610_v47, %v610_v47 }
 0x123   : > { %v875_v55 = vadd.f32 %v874_v53, %v873_v38  ;;  %v612_v56 = vpop.f32.mrf.mxu0  ;;  %v676_v57 = vpop.f32.mrf.mxu1  ;;  %v983_v53 = vsel %vm850_vm2, %v936_v29, 0.0 }
 0x124   : > { %830 = vst.msk [vmem:[%s1538_s18 + $0x30] sm:$0xf] %vm817_vm1, %v1266_v52  ;;  %846 = vst.msk [vmem:[%s1538_s18 + $0x70] sm:$0xf] %vm817_vm1, %v1282_v42  ;;  %v975_v12 = vsel %vm850_vm2, %v932_v60, 0.0  ;;  %v884_v42 = vsel %vm850_vm2, %v1552_v49, 0.0 }
 0x125   : > { %v613_v0 = vpop.f32.mrf.mxu0  ;;  %v1676_v1 = vpop.f32.mrf.mxu1  ;;  %v976_v23 = vadd.f32 %v975_v12, %v974_v13  ;;  %v985_v56 = vsel %vm850_vm2, %v937_v46, 0.0  ;;  %v886_v57 = vsel %vm850_vm2, %v1563_v58, 0.0  ;;  %v888_v49 = vsel %vm850_vm2, %v1572_v2, 0.0 }
 0x126   : > { %v1267_v3 = vpack.c.bf16 %v613_v0, %v613_v0  ;;  %v876_v4 = vsel %vm850_vm2, %v613_v0, 0.0  ;;  %v933_v5 = vmul.f32 %v613_v0, %v613_v0  ;;  %v1283_v6 = vpack.c.bf16 %v1676_v1, %v1676_v1 }
 0x127   : > { %v877_v8 = vadd.f32 %v876_v4, %v875_v55  ;;  %v615_v9 = vpop.f32.mrf.mxu0  ;;  %v679_v11 = vpop.f32.mrf.mxu1  ;;  %v940_v0 = vmul.f32 %v1581_v10, %v1581_v10  ;;  %v890_v58 = vsel %vm850_vm2, %v1581_v10, 0.0  ;;  %v892_v2 = vsel %vm850_vm2, %v1590_v18, 0.0 }
 0x128   : > { %831 = vst.msk [vmem:[%s1538_s18 + $0x34] sm:$0xf] %vm817_vm1, %v1267_v3  ;;  %847 = vst.msk [vmem:[%s1538_s18 + $0x74] sm:$0xf] %vm817_vm1, %v1283_v6  ;;  %v977_v14 = vsel %vm850_vm2, %v933_v5, 0.0  ;;  %v989_v5 = vsel %vm850_vm2, %v939_v59, 0.0  ;;  %v941_v6 = vmul.f32 %v1590_v18, %v1590_v18  ;;  %v942_v11 = vmul.f32 %v1599_v26, %v1599_v26 }
 0x129   : > { %v618_v16 = vpop.f32.mrf.mxu0  ;;  %v1687_v17 = vpop.f32.mrf.mxu1  ;;  %v978_v30 = vadd.f32 %v977_v14, %v976_v23  ;;  %v991_v9 = vsel %vm850_vm2, %v940_v0, 0.0  ;;  %v894_v10 = vsel %vm850_vm2, %v1599_v26, 0.0  ;;  %v896_v18 = vsel %vm850_vm2, %v1608_v34, 0.0 }
 0x12a   : > { %v1268_v19 = vpack.c.bf16 %v618_v16, %v618_v16  ;;  %v878_v20 = vsel %vm850_vm2, %v618_v16, 0.0  ;;  %v934_v21 = vmul.f32 %v618_v16, %v618_v16  ;;  %v1284_v22 = vpack.c.bf16 %v1687_v17, %v1687_v17 }
 0x12b   : > { %v879_v24 = vadd.f32 %v878_v20, %v877_v8  ;;  %v620_v25 = vpop.f32.mrf.mxu0  ;;  %v684_v27 = vpop.f32.mrf.mxu1  ;;  %v993_v14 = vsel %vm850_vm2, %v941_v6, 0.0  ;;  %v943_v16 = vmul.f32 %v1608_v34, %v1608_v34  ;;  %v898_v26 = vsel %vm850_vm2, %v1619_v48, 0.0 }
 0x12c   : > { %832 = vst.msk [vmem:[%s1538_s18 + $0x38] sm:$0xf] %vm817_vm1, %v1268_v19  ;;  %v979_v28 = vsel %vm850_vm2, %v934_v21, 0.0  ;;  %848 = vst.msk [vmem:[%s1538_s18 + $0x78] sm:$0xf] %vm817_vm1, %v1284_v22  ;;  %v995_v21 = vsel %vm850_vm2, %v942_v11, 0.0  ;;  %v944_v22 = vmul.f32 %v1619_v48, %v1619_v48  ;;  %v945_v27 = vmul.f32 %v1632_v63, %v1632_v63 }
 0x12d   : > { %v621_v32 = vpop.f32.mrf.mxu0  ;;  %v1699_v33 = vpop.f32.mrf.mxu1  ;;  %v980_v39 = vadd.f32 %v979_v28, %v978_v30  ;;  %v997_v25 = vsel %vm850_vm2, %v943_v16, 0.0  ;;  %v900_v34 = vsel %vm850_vm2, %v1632_v63, 0.0  ;;  %v902_v48 = vsel %vm850_vm2, %v1642_v15, 0.0 }
 0x12e   : > { %v1269_v35 = vpack.c.bf16 %v621_v32, %v621_v32  ;;  %v880_v36 = vsel %vm850_vm2, %v621_v32, 0.0  ;;  %v935_v37 = vmul.f32 %v621_v32, %v621_v32  ;;  %v1285_v38 = vpack.c.bf16 %v1699_v33, %v1699_v33 }
 0x12f   : > { %v881_v40 = vadd.f32 %v880_v36, %v879_v24  ;;  %v623_v41 = vpop.f32.mrf.mxu0  ;;  %v687_v44 = vpop.f32.mrf.mxu1  ;;  %v999_v30 = vsel %vm850_vm2, %v944_v22, 0.0  ;;  %v946_v32 = vmul.f32 %v1642_v15, %v1642_v15  ;;  %v904_v63 = vsel %vm850_vm2, %v1654_v31, 0.0 }
 0x130   : > { %833 = vst.msk [vmem:[%s1538_s18 + $0x3c] sm:$0xf] %vm817_vm1, %v1269_v35  ;;  %v981_v47 = vsel %vm850_vm2, %v935_v37, 0.0  ;;  %849 = vst.msk [vmem:[%s1538_s18 + $0x7c] sm:$0xf] %vm817_vm1, %v1285_v38  ;;  %v1001_v37 = vsel %vm850_vm2, %v945_v27, 0.0  ;;  %v947_v38 = vmul.f32 %v1654_v31, %v1654_v31  ;;  %v948_v44 = vmul.f32 %v1664_v50, %v1664_v50 }
 0x131   : > { %v883_v51 = vadd.f32 %v882_v45, %v881_v40  ;;  %v982_v52 = vadd.f32 %v981_v47, %v980_v39  ;;  %v1003_v41 = vsel %vm850_vm2, %v946_v32, 0.0  ;;  %v906_v15 = vsel %vm850_vm2, %v1664_v50, 0.0 }
 0x132   : > { %v1005_v47 = vsel %vm850_vm2, %v947_v38, 0.0  ;;  %v908_v31 = vsel %vm850_vm2, %v1676_v1, 0.0  ;;  %v950_v54 = vmul.f32 %v1687_v17, %v1687_v17  ;;  %v910_v50 = vsel %vm850_vm2, %v1687_v17, 0.0 }
 0x133   : > { %v885_v43 = vadd.f32 %v884_v42, %v883_v51  ;;  %v984_v55 = vadd.f32 %v983_v53, %v982_v52  ;;  %v949_v51 = vmul.f32 %v1676_v1, %v1676_v1  ;;  %v1007_v42 = vsel %vm850_vm2, %v948_v44, 0.0 }
 0x134   : > { %v912_v1 = vsel %vm850_vm2, %v1699_v33, 0.0 }
 0x135   : > { %v887_v60 = vadd.f32 %v886_v57, %v885_v43  ;;  %v986_v61 = vadd.f32 %v985_v56, %v984_v55  ;;  %v1009_v56 = vsel %vm850_vm2, %v949_v51, 0.0  ;;  %v951_v57 = vmul.f32 %v1699_v33, %v1699_v33 }
 0x137   : > { %v889_v3 = vadd.f32 %v888_v49, %v887_v60  ;;  %v988_v4 = vadd.f32 %v987_v62, %v986_v61  ;;  %v1011_v61 = vsel %vm850_vm2, %v950_v54, 0.0  ;;  %v1013_v0 = vsel %vm850_vm2, %v951_v57, 0.0 }
 0x139   : > { %v990_v7 = vadd.f32 %v989_v5, %v988_v4  ;;  %v891_v8 = vadd.f32 %v890_v58, %v889_v3 }
 0x13b   : > { %v893_v12 = vadd.f32 %v892_v2, %v891_v8  ;;  %v992_v13 = vadd.f32 %v991_v9, %v990_v7 }
 0x13d   : > { %v895_v19 = vadd.f32 %v894_v10, %v893_v12  ;;  %v994_v20 = vadd.f32 %v993_v14, %v992_v13 }
 0x13f   : > { %v897_v23 = vadd.f32 %v896_v18, %v895_v19  ;;  %v996_v24 = vadd.f32 %v995_v21, %v994_v20 }
 0x141   : > { %v899_v28 = vadd.f32 %v898_v26, %v897_v23  ;;  %v998_v29 = vadd.f32 %v997_v25, %v996_v24 }
 0x143   : > { %v901_v35 = vadd.f32 %v900_v34, %v899_v28  ;;  %v1000_v36 = vadd.f32 %v999_v30, %v998_v29 }
 0x145   : > { %v1002_v39 = vadd.f32 %v1001_v37, %v1000_v36  ;;  %v903_v40 = vadd.f32 %v902_v48, %v901_v35 }
 0x147   : > { %v1004_v45 = vadd.f32 %v1003_v41, %v1002_v39  ;;  %v905_v46 = vadd.f32 %v904_v63, %v903_v40 }
 0x149   : > { %v1006_v52 = vadd.f32 %v1005_v47, %v1004_v45  ;;  %v907_v53 = vadd.f32 %v906_v15, %v905_v46 }
 0x14b   : > { %v1008_v43 = vadd.f32 %v1007_v42, %v1006_v52  ;;  %v909_v55 = vadd.f32 %v908_v31, %v907_v53 }
 0x14d   : > { %v1010_v59 = vadd.f32 %v1009_v56, %v1008_v43  ;;  %v911_v60 = vadd.f32 %v910_v50, %v909_v55 }
 0x14f   : > { %v1012_v62 = vadd.f32 %v1011_v61, %v1010_v59  ;;  %v913_v49 = vadd.f32 %v912_v1, %v911_v60 }
 0x151   : > { %v1014_v3 = vadd.f32 %v1013_v0, %v1012_v62  ;;  %v914_v8 = vrot.slane %v913_v49, 4 }
 0x153   : > { %v1015_v4 = vrot.slane %v1014_v3, 4  ;;  %v915_v9 = vadd.f32 %v914_v8, %v913_v49 }
 0x155   : > { %v1016_v5 = vadd.f32 %v1015_v4, %v1014_v3  ;;  %v916_v2 = vrot.slane %v915_v9, 2 }
 0x157   : > { %v1017_v58 = vrot.slane %v1016_v5, 2  ;;  %v917_v11 = vadd.f32 %v916_v2, %v915_v9 }
 0x159   : > { %v1018_v17 = vadd.f32 %v1017_v58, %v1016_v5  ;;  %v918_v12 = vrot.slane %v917_v11, 1 }
 0x15b   : > { %v1019_v6 = vrot.slane %v1018_v17, 1  ;;  %v919_v33 = vadd.f32 %v918_v12, %v917_v11 }
 0x15d   : > { %v1020_v7 = vadd.f32 %v1019_v6, %v1018_v17 }
 0x15f   : > { %1022 = vrot.lane.b32.xlu0 %v1020_v7, %s1412_s19 }
 0x1d1   : > { %v1023_v13 = vpop.permute.xlu0 %1022 }
 0x1d2   : > { %v1025_v14 = vsel %vm850_vm2, %v919_v33, %v1023_v13 }
 0x1d3   : > { %1026 = vst [vmem:[%s229_s22] sm:$0x1] %v1025_v14 }
 0x1d4 PF: > { %s14_s14 = sadd.s32 1, %s1409_s14   ;;  %s1805_s12 = smov %s1405_s13 }
 0x1d5   : > { %p11_p5 = scmp.ge.s32.totalorder %s14_s14, 4   ;;  %s1806_s13 = smov %s1808_s15 }
 0x1d7   :  { %13 = sbr.rel (!%p11_p5) target bundleno = 2 (0x2), region = 70 }

// kernel: decoder_forward.9
= control target key start
LH: loop header
LB: loop body
LE: loop exit
PB: predicated region body
PF: predicated region fallthrough
CT: control target
= control target key end

     0   :  { %8 = vsyncpa [#allocation3], 0  ;;  %s1732_s0 = inlined_call_operand.vmem [shape: bf16[2,256,64], index: 0, kind: input, shape index: {}]   ;;  %s1733_s1 = inlined_call_operand.vmem [shape: f32[2,1,64], index: 1, kind: input, shape index: {}]   ;;  %s1734_s2 = inlined_call_operand.vmem [shape: f32[1,64], index: 2, kind: input, shape index: {}]   ;;  %s1735_s3 = inlined_call_operand.hbm [shape: f32[2,256,64], index: 3, kind: output, shape index: {}]  }
   0x1   :  { %10 = vsyncpa [#allocation3 + $0x1], 0  ;;  %s1227_s12 = smov 0   ;;  %s1229_s13 = smov 0  }
   0x2   :  { %s1231_s14 = smov 0   ;;  %s1233_s15 = smov 0  }
   0x3   :  { %s1235_s16 = smov 0   ;;  %s1237_s17 = smov 0  }
   0x4 LB: > { %s813_s18 = sadd.s32 4294967295, %s1202_s17   ;;  %s814_s19 = sadd.s32 4294967294, %s1202_s17   ;;  %s1202_s17 = sphi %s1237_s17, %s16_s17   ;;  %s1198_s16 = sphi %s1235_s16, %s1746_s16   ;;  %s1194_s15 = sphi %s1233_s15, %s1745_s15   ;;  %s1190_s14 = sphi %s1231_s14, %s1744_s14   ;;  %s1186_s13 = sphi %s1229_s13, %s1743_s13   ;;  %s1182_s12 = sphi %s1227_s12, %s1742_s12  }
   0x5   : > { %s28_s20 = sadd.s32 1, %s1198_s16  ;;  %s112_s21 = sadd.s32 1, %s1190_s14 }
   0x6   : > { %p30_p0 = scmp.ge.s32.totalorder %s28_s20, 2  ;;  %p122_p1 = scmp.ne.s32.totalorder %s1190_s14, %s1186_s13 }
   0x7   : > { %p123_p2 = scmp.eq.s32.totalorder %s813_s18, 1  ;;  %p128_p3 = scmp.ne.s32.totalorder %s1186_s13, %s1182_s12 }
   0x8   : > { %s1748_s20 = smov (%p30_p0, %s28_s20), 0  ;;  %p129_p5 = scmp.eq.s32.totalorder %s814_s19, 1 }
   0x9   : > { %p1267_p4 = por %p123_p2, %p122_p1  ;;  %s107_s23 = ssub.s32 %s1198_s16, %s1748_s20 }
   0xa   : > { %p817_p6 = scmp.ge.s32.totalorder %s1202_s17, 1  ;;  %p110_p7 = scmp.eq.s32.totalorder %s107_s23, 0 }
   0xb   : > { %p1274_p8 = por %p129_p5, %p128_p3  ;;  %p169_p9 = scmp.lt.s32.totalorder %s1202_s17, 3 }
   0xc   : > { %s1280_s25 = scalar_select %p110_p7, %s1190_s14, %s112_s21  }
   0xd   : > { %p170_p10 = pnand %p817_p6, %p169_p9 }
   0xe   : > { %p201_p11 = scmp.lt.s32.totalorder (!%p170_p10), %s1194_s15, 1  ;;  %s197_s9 = sand.u32 (!%p170_p10), 1, %s1186_s13  }
   0xf   : > { %173 = sbr.rel (%p170_p10) target bundleno = 281 (0x119), region = 32  ;;  %s818_s10 = sshll.u32 (!%p170_p10), %s197_s9, 8 }
  0x10   : > { %s1520_s11 = scalar_lea.vmem (!%p170_p10), [#allocation2], %s818_s10  ;;  %s861_s18 = sshll.u32 (!%p170_p10), %s1194_s15, 12 }
  0x11   : > { %s725_s19 = sshll.u32 (!%p170_p10), %s1520_s11, 4  ;;  %s1204_s28 = smov (!%p170_p10), [#allocation2]   ;;  %s1677_s19 = int_to_ptr.vmem [resolvable:$true] %s725_s19 }
  0x12   : > { %s1130_s29 = sshll.u32 (!%p170_p10), %s1204_s28, 4  ;;  %s1131_s29 = int_to_ptr.vmem [resolvable:$false] %s1130_s29 }
  0x13   : > { %p1133_p1 = scmp.lt.s32.totalorder (!%p170_p10), %s1677_s19, %s1131_s29 }
  0x14   : > { %s1284_s26 = scalar_select %p201_p11, %s1194_s15, 1  ;;  %v1295_v0 = vld [vmem:[%s1734_s2] ss:$0 sm:$0xff]  ;;  %vm317_vm0 = vcmask 523264  }
  0x15   : > { %s1687_s15 = scalar_lea.sflag [#allocation3], %s197_s9 }
  0x16   : > { %s860_s27 = sshll.u32 %s1284_s26, 7  ;;  %s212_s8 = scalar_lea.vmem %s1733_s1, %s1284_s26 }
  0x17   : > { %s1290_s30 = scalar_lea.vmem %s1732_s0, %s860_s27  ;;  %s1675_s26 = scalar_lea.hbm %s1735_s3, %s861_s18 }
  0x18   : > { %v1298_v1 = vld [vmem:[%s1290_s30 + $0x8] sm:$0xff]   ;;  %v1301_v2 = vld [vmem:[%s1290_s30] sm:$0xff]   ;;  %v1304_v3 = vld [vmem:[%s1290_s30 + $0x10] sm:$0xff]   ;;  %s1126_s27 = scalar_lea.vmem %s1677_s19, 4096 }
  0x19   : > { %v868_v4 = vunpack.c.l.bf16 %v1298_v1  ;;  %v864_v5 = vunpack.c.l.bf16 %v1301_v2  ;;  %v869_v6 = vunpack.c.h.bf16 %v1298_v1  ;;  %v865_v7 = vunpack.c.h.bf16 %v1301_v2  ;;  %v1325_v14 = vld [vmem:[%s1290_s30 + $0x18] sm:$0xff]   ;;  %v1340_v23 = vld [vmem:[%s1290_s30 + $0x20] sm:$0xff]   ;;  %v1353_v30 = vld [vmem:[%s1290_s30 + $0x28] sm:$0xff]   ;;  %p1127_p12 = scmp.ne.s32.totalorder %s1677_s19, %s1126_s27 }
  0x1a   : > { %v873_v8 = vunpack.c.h.bf16 %v1304_v3  ;;  %v872_v9 = vunpack.c.l.bf16 %v1304_v3  ;;  %v877_v17 = vunpack.c.h.bf16 %v1325_v14  ;;  %v876_v18 = vunpack.c.l.bf16 %v1325_v14  ;;  %v1366_v37 = vld [vmem:[%s1290_s30 + $0x30] sm:$0xff]   ;;  %v1379_v44 = vld [vmem:[%s1290_s30 + $0x38] sm:$0xff]   ;;  %v1392_v51 = vld [vmem:[%s1290_s30 + $0x40] sm:$0xff]  }
  0x1b   : > { %v287_v10 = vmul.f32 %v868_v4, %v1295_v0  ;;  %v285_v11 = vmul.f32 %v864_v5, %v1295_v0  ;;  %v288_v12 = vmul.f32 %v869_v6, %v1295_v0  ;;  %v286_v13 = vmul.f32 %v865_v7, %v1295_v0  ;;  %v1405_v58 = vld [vmem:[%s1290_s30 + $0x48] sm:$0xff]   ;;  %p1128_p13 = pnand %p1127_p12, %p1267_p4 }
  0x1c   : > { %v290_v21 = vmul.f32 %v873_v8, %v1295_v0  ;;  %v289_v22 = vmul.f32 %v872_v9, %v1295_v0  ;;  %v292_v24 = vmul.f32 %v877_v17, %v1295_v0  ;;  %v291_v25 = vmul.f32 %v876_v18, %v1295_v0 }
  0x1d   : > { %v324_v15 = vsel %vm317_vm0, %v287_v10, 0.0  ;;  %v318_v16 = vsel %vm317_vm0, %v285_v11, 0.0  ;;  %v327_v19 = vsel %vm317_vm0, %v288_v12, 0.0  ;;  %v321_v20 = vsel %vm317_vm0, %v286_v13, 0.0  ;;  %v1418_v11 = vld [vmem:[%s1290_s30 + $0x50] sm:$0xff]   ;;  %p1129_p0 = pneg %p1128_p13 }
  0x1e   : > { %325 = vadd.xlane.f32.xlu1 %v324_v15  ;;  %319 = vadd.xlane.f32.xlu0 %v318_v16  ;;  %v333_v26 = vsel %vm317_vm0, %v290_v21, 0.0  ;;  %v330_v27 = vsel %vm317_vm0, %v289_v22, 0.0  ;;  %v881_v28 = vunpack.c.h.bf16 %v1340_v23  ;;  %v880_v29 = vunpack.c.l.bf16 %v1340_v23  ;;  %v1431_v21 = vld [vmem:[%s1290_s30 + $0x58] sm:$0xff]  }
  0x1f   : > { %v339_v31 = vsel %vm317_vm0, %v292_v24, 0.0  ;;  %v336_v32 = vsel %vm317_vm0, %v291_v25, 0.0  ;;  %v885_v35 = vunpack.c.h.bf16 %v1353_v30  ;;  %v884_v36 = vunpack.c.l.bf16 %v1353_v30 }
  0x20   : > { %v294_v33 = vmul.f32 %v881_v28, %v1295_v0  ;;  %v293_v34 = vmul.f32 %v880_v29, %v1295_v0  ;;  %v889_v38 = vunpack.c.h.bf16 %v1366_v37  ;;  %v888_v39 = vunpack.c.l.bf16 %v1366_v37 }
  0x21   : > { %v296_v42 = vmul.f32 %v885_v35, %v1295_v0  ;;  %v295_v43 = vmul.f32 %v884_v36, %v1295_v0  ;;  %v893_v45 = vunpack.c.h.bf16 %v1379_v44  ;;  %v892_v46 = vunpack.c.l.bf16 %v1379_v44 }
  0x22   : > { %328 = vadd.xlane.f32.xlu1 %v327_v19  ;;  %322 = vadd.xlane.f32.xlu0 %v321_v20  ;;  %v345_v40 = vsel %vm317_vm0, %v294_v33, 0.0  ;;  %v342_v41 = vsel %vm317_vm0, %v293_v34, 0.0  ;;  %v298_v49 = vmul.f32 %v889_v38, %v1295_v0  ;;  %v297_v50 = vmul.f32 %v888_v39, %v1295_v0 }
  0x23   : > { %v351_v47 = vsel %vm317_vm0, %v296_v42, 0.0  ;;  %v348_v48 = vsel %vm317_vm0, %v295_v43, 0.0  ;;  %v300_v52 = vmul.f32 %v893_v45, %v1295_v0  ;;  %v897_v53 = vunpack.c.h.bf16 %v1392_v51 }
  0x24   : > { %v357_v54 = vsel %vm317_vm0, %v298_v49, 0.0  ;;  %v354_v55 = vsel %vm317_vm0, %v297_v50, 0.0  ;;  %v299_v56 = vmul.f32 %v892_v46, %v1295_v0  ;;  %v896_v57 = vunpack.c.l.bf16 %v1392_v51 }
  0x25   : > { %v363_v59 = vsel %vm317_vm0, %v300_v52, 0.0  ;;  %v302_v60 = vmul.f32 %v897_v53, %v1295_v0  ;;  %v901_v63 = vunpack.c.h.bf16 %v1405_v58  ;;  %v900_v10 = vunpack.c.l.bf16 %v1405_v58 }
  0x26   : > { %334 = vadd.xlane.f32.xlu1 %v333_v26  ;;  %331 = vadd.xlane.f32.xlu0 %v330_v27  ;;  %v360_v61 = vsel %vm317_vm0, %v299_v56, 0.0  ;;  %v301_v62 = vmul.f32 %v896_v57, %v1295_v0  ;;  %v905_v12 = vunpack.c.h.bf16 %v1418_v11  ;;  %v904_v13 = vunpack.c.l.bf16 %v1418_v11  ;;  %v1470_v56 = vld [vmem:[%s1290_s30 + $0x70] sm:$0xff]  }
  0x27   : > { %v369_v15 = vsel %vm317_vm0, %v302_v60, 0.0  ;;  %v304_v19 = vmul.f32 %v901_v63, %v1295_v0  ;;  %v303_v20 = vmul.f32 %v900_v10, %v1295_v0  ;;  %v909_v24 = vunpack.c.h.bf16 %v1431_v21 }
  0x28   : > { %v366_v16 = vsel %vm317_vm0, %v301_v62, 0.0  ;;  %v306_v22 = vmul.f32 %v905_v12, %v1295_v0  ;;  %v305_v27 = vmul.f32 %v904_v13, %v1295_v0  ;;  %v920_v60 = vunpack.c.l.bf16 %v1470_v56 }
  0x29   : > { %v375_v25 = vsel %vm317_vm0, %v304_v19, 0.0  ;;  %v372_v26 = vsel %vm317_vm0, %v303_v20, 0.0  ;;  %v308_v33 = vmul.f32 %v909_v24, %v1295_v0  ;;  %v1483_v19 = vld [vmem:[%s1290_s30 + $0x78] sm:$0xff]  }
  0x2a   : > { %340 = vadd.xlane.f32.xlu1 %v339_v31  ;;  %337 = vadd.xlane.f32.xlu0 %v336_v32  ;;  %v908_v31 = vunpack.c.l.bf16 %v1431_v21  ;;  %v1444_v32 = vld [vmem:[%s1290_s30 + $0x60] sm:$0xff]  }
  0x2b   : > { %v913_v34 = vunpack.c.h.bf16 %v1444_v32  ;;  %v912_v43 = vunpack.c.l.bf16 %v1444_v32 }
  0x2c   : > { %v307_v42 = vmul.f32 %v908_v31, %v1295_v0 }
  0x2d   : > { %v310_v49 = vmul.f32 %v913_v34, %v1295_v0  ;;  %v309_v52 = vmul.f32 %v912_v43, %v1295_v0 }
  0x2e   : > { %346 = vadd.xlane.f32.xlu1 %v345_v40  ;;  %343 = vadd.xlane.f32.xlu0 %v342_v41  ;;  %v381_v40 = vsel %vm317_vm0, %v306_v22, 0.0  ;;  %v378_v41 = vsel %vm317_vm0, %v305_v27, 0.0  ;;  %v384_v50 = vsel %vm317_vm0, %v307_v42, 0.0  ;;  %v1737_v22 = vunpack.c.h.bf16 %v1483_v19 }
  0x2f   : > { %v390_v62 = vsel %vm317_vm0, %v309_v52, 0.0  ;;  %v313_v27 = vmul.f32 %v920_v60, %v1295_v0 }
  0x30   : > { %v316_v42 = vmul.f32 %v1737_v22, %v1295_v0 }
  0x32   : > { %352 = vadd.xlane.f32.xlu1 %v351_v47  ;;  %349 = vadd.xlane.f32.xlu0 %v348_v48  ;;  %v1457_v47 = vld [vmem:[%s1290_s30 + $0x68] sm:$0xff]   ;;  %v387_v48 = vsel %vm317_vm0, %v308_v33, 0.0  ;;  %v1736_v33 = vunpack.c.l.bf16 %v1483_v19  ;;  %s1132_s30 = scalar_lea.vmem %s1131_s29, 8192 }
  0x33   : > { %p1134_p2 = scmp.lt.s32.totalorder %s1132_s30, %s1126_s27 }
  0x35   : > { %p1135_p3 = por %p1134_p2, %p1133_p1 }
  0x36   : > { %358 = vadd.xlane.f32.xlu1 %v357_v54  ;;  %355 = vadd.xlane.f32.xlu0 %v354_v55  ;;  %v917_v54 = vunpack.c.h.bf16 %v1457_v47  ;;  %v916_v55 = vunpack.c.l.bf16 %v1457_v47 }
  0x37   : > { %p1136_p5 = pnand %p1135_p3, %p1129_p0 }
  0x3a   : > { %364 = vadd.xlane.f32.xlu1 %v363_v59  ;;  %361 = vadd.xlane.f32.xlu0 %v360_v61  ;;  %v921_v59 = vunpack.c.h.bf16 %v1470_v56  ;;  %v393_v61 = vsel %vm317_vm0, %v310_v49, 0.0  ;;  %v411_v49 = vsel %vm317_vm0, %v316_v42, 0.0  ;;  %v1741_v56 = vunpack.c.l.bf16 %v1483_v19 }
  0x3c   : > { %v314_v20 = vmul.f32 %v921_v59, %v1295_v0 }
  0x3e   : > { %370 = vadd.xlane.f32.xlu1 %v369_v15  ;;  %367 = vadd.xlane.f32.xlu0 %v366_v16  ;;  %v312_v15 = vmul.f32 %v917_v54, %v1295_v0  ;;  %v311_v16 = vmul.f32 %v916_v55, %v1295_v0 }
  0x42   : > { %376 = vadd.xlane.f32.xlu1 %v375_v25  ;;  %373 = vadd.xlane.f32.xlu0 %v372_v26  ;;  %v399_v25 = vsel %vm317_vm0, %v312_v15, 0.0  ;;  %v396_v26 = vsel %vm317_vm0, %v311_v16, 0.0 }
  0x46   : > { %382 = vadd.xlane.f32.xlu1 %v381_v40  ;;  %379 = vadd.xlane.f32.xlu0 %v378_v41  ;;  %v405_v40 = vsel %vm317_vm0, %v314_v20, 0.0  ;;  %v402_v41 = vsel %vm317_vm0, %v313_v27, 0.0 }
  0x4a   : > { %388 = vadd.xlane.f32.xlu1 %v387_v48  ;;  %385 = vadd.xlane.f32.xlu0 %v384_v50  ;;  %v315_v48 = vmul.f32 %v1736_v33, %v1295_v0 }
  0x4c   : > { %v408_v50 = vsel %vm317_vm0, %v315_v48, 0.0 }
  0x4e   : > { %394 = vadd.xlane.f32.xlu1 %v393_v61  ;;  %391 = vadd.xlane.f32.xlu0 %v390_v62 }
  0x52   : > { %400 = vadd.xlane.f32.xlu1 %v399_v25  ;;  %397 = vadd.xlane.f32.xlu0 %v396_v26 }
  0x56   : > { %406 = vadd.xlane.f32.xlu1 %v405_v40  ;;  %403 = vadd.xlane.f32.xlu0 %v402_v41 }
  0x5a   : > { %412 = vadd.xlane.f32.xlu1 %v411_v49  ;;  %409 = vadd.xlane.f32.xlu0 %v408_v50 }
  0xa7   : > { %v326_v52 = vpop.xlane.xlu1 %325  ;;  %v320_v61 = vpop.xlane.xlu0 %319 }
  0xa8   : > { %v824_v62 = vmul.f32 -1.442695, %v326_v52  ;;  %v822_v15 = vmul.f32 -1.442695, %v320_v61 }
  0xaa   : > { %998 = vpow2.f32 %v824_v62 }
  0xab   : > { %1000 = vpow2.f32 %v822_v15  ;;  %v329_v16 = vpop.xlane.xlu1 %328  ;;  %v323_v20 = vpop.xlane.xlu0 %322 }
  0xac   : > { %v825_v25 = vmul.f32 -1.442695, %v329_v16  ;;  %v823_v26 = vmul.f32 -1.442695, %v323_v20 }
  0xae   : > { %1002 = vpow2.f32 %v825_v25 }
  0xaf   : > { %1004 = vpow2.f32 %v823_v26  ;;  %v335_v0 = vpop.xlane.xlu1 %334  ;;  %v332_v27 = vpop.xlane.xlu0 %331 }
  0xb0   : > { %v827_v40 = vmul.f32 -1.442695, %v335_v0  ;;  %v826_v41 = vmul.f32 -1.442695, %v332_v27 }
  0xb2   : > { %1006 = vpow2.f32 %v827_v40 }
  0xb3   : > { %1008 = vpow2.f32 %v826_v41  ;;  %v341_v42 = vpop.xlane.xlu1 %340  ;;  %v338_v48 = vpop.xlane.xlu0 %337 }
  0xb4   : > { %v829_v49 = vmul.f32 -1.442695, %v341_v42  ;;  %v828_v50 = vmul.f32 -1.442695, %v338_v48 }
  0xb6   : > { %1010 = vpow2.f32 %v829_v49 }
  0xb7   : > { %v999_v52 = vpop.eup %998  ;;  %1012 = vpow2.f32 %v828_v50  ;;  %v347_v61 = vpop.xlane.xlu1 %346 }
  0xb8   : > { %v344_v62 = vpop.xlane.xlu0 %343  ;;  %v1001_v15 = vpop.eup %1000  ;;  %v512_v16 = vadd.f32 1.0, %v999_v52  ;;  %v831_v20 = vmul.f32 -1.442695, %v347_v61 }
  0xb9   : > { %v510_v25 = vadd.f32 1.0, %v1001_v15  ;;  %v830_v26 = vmul.f32 -1.442695, %v344_v62 }
  0xba   : > { %1014 = vrcp.f32 %v512_v16 }
  0xbb   : > { %v1003_v33 = vpop.eup %1002  ;;  %1016 = vrcp.f32 %v510_v25  ;;  %v353_v0 = vpop.xlane.xlu1 %352 }
  0xbc   : > { %v350_v27 = vpop.xlane.xlu0 %349  ;;  %v1005_v40 = vpop.eup %1004  ;;  %v513_v41 = vadd.f32 1.0, %v1003_v33  ;;  %1018 = vpow2.f32 %v831_v20  ;;  %v833_v42 = vmul.f32 -1.442695, %v353_v0 }
  0xbd   : > { %v511_v48 = vadd.f32 1.0, %v1005_v40  ;;  %1020 = vpow2.f32 %v830_v26  ;;  %v832_v49 = vmul.f32 -1.442695, %v350_v27 }
  0xbe   : > { %1022 = vrcp.f32 %v513_v41  ;;  %v1510_v41 = vld [vmem:[%s212_s8] ss:$0 sm:$0xff] }
  0xbf   : > { %v1007_v50 = vpop.eup %1006  ;;  %1024 = vrcp.f32 %v511_v48  ;;  %v359_v52 = vpop.xlane.xlu1 %358 }
  0xc0   : > { %v356_v61 = vpop.xlane.xlu0 %355  ;;  %v1009_v62 = vpop.eup %1008  ;;  %v515_v15 = vadd.f32 1.0, %v1007_v50  ;;  %1026 = vpow2.f32 %v833_v42  ;;  %v835_v16 = vmul.f32 -1.442695, %v359_v52 }
  0xc1   : > { %v514_v25 = vadd.f32 1.0, %v1009_v62  ;;  %1028 = vpow2.f32 %v832_v49  ;;  %v834_v22 = vmul.f32 -1.442695, %v356_v61 }
  0xc2   : > { %1030 = vrcp.f32 %v515_v15 }
  0xc3   : > { %v1011_v33 = vpop.eup %1010  ;;  %1032 = vrcp.f32 %v514_v25  ;;  %v365_v20 = vpop.xlane.xlu1 %364 }
  0xc4   : > { %v362_v26 = vpop.xlane.xlu0 %361  ;;  %v1013_v0 = vpop.eup %1012  ;;  %v517_v27 = vadd.f32 1.0, %v1011_v33  ;;  %1034 = vpow2.f32 %v835_v16  ;;  %v837_v40 = vmul.f32 -1.442695, %v365_v20 }
  0xc5   : > { %v516_v42 = vadd.f32 1.0, %v1013_v0  ;;  %1036 = vpow2.f32 %v834_v22  ;;  %v836_v48 = vmul.f32 -1.442695, %v362_v26 }
  0xc6   : > { %1038 = vrcp.f32 %v517_v27 }
  0xc7   : > { %v1015_v49 = vpop.eup %1014  ;;  %1040 = vrcp.f32 %v516_v42  ;;  %v371_v50 = vpop.xlane.xlu1 %370 }
  0xc8   : > { %v368_v52 = vpop.xlane.xlu0 %367  ;;  %v1017_v61 = vpop.eup %1016  ;;  %v615_v62 = vadd.f32 %v1015_v49, %v1510_v41  ;;  %1042 = vpow2.f32 %v837_v40  ;;  %v839_v15 = vmul.f32 -1.442695, %v371_v50 }
  0xc9   : > { %v838_v25 = vmul.f32 -1.442695, %v368_v52  ;;  %v1019_v16 = vpop.eup %1018  ;;  %v613_v33 = vadd.f32 %v1017_v61, %v1510_v41  ;;  %1044 = vpow2.f32 %v836_v48 }
  0xca   : > { %v1021_v20 = vpop.eup %1020  ;;  %v647_v22 = vmul.f32 %v868_v4, %v615_v62  ;;  %v519_v26 = vadd.f32 1.0, %v1019_v16  ;;  %1046 = vpow2.f32 %v839_v15 }
  0xcb   : > { %v1023_v0 = vpop.eup %1022  ;;  %v645_v27 = vmul.f32 %v864_v5, %v613_v33  ;;  %v518_v42 = vadd.f32 1.0, %v1021_v20  ;;  %1048 = vpow2.f32 %v838_v25  ;;  %v377_v49 = vpop.xlane.xlu1 %376 }
  0xcc   : > { %v374_v40 = vpop.xlane.xlu0 %373  ;;  %v1025_v50 = vpop.eup %1024  ;;  %679 = vst.msk [vmem:[%s1520_s11 + $0x10] sm:$0xff] %vm317_vm0, %v647_v22  ;;  %v616_v48 = vadd.f32 %v1023_v0, %v1510_v41  ;;  %1050 = vrcp.f32 %v519_v26  ;;  %v841_v4 = vmul.f32 -1.442695, %v377_v49 }
  0xcd   : > { %v840_v52 = vmul.f32 -1.442695, %v374_v40  ;;  %v1027_v61 = vpop.eup %1026  ;;  %677 = vst.msk [vmem:[%s1520_s11] sm:$0xff] %vm317_vm0, %v645_v27  ;;  %v614_v5 = vadd.f32 %v1025_v50, %v1510_v41  ;;  %1052 = vrcp.f32 %v518_v42 }
  0xce   : > { %v1029_v62 = vpop.eup %1028  ;;  %v648_v15 = vmul.f32 %v869_v6, %v616_v48  ;;  %v521_v25 = vadd.f32 1.0, %v1027_v61  ;;  %1054 = vpow2.f32 %v841_v4 }
  0xcf   : > { %v1031_v16 = vpop.eup %1030  ;;  %v646_v33 = vmul.f32 %v865_v7, %v614_v5  ;;  %v520_v20 = vadd.f32 1.0, %v1029_v62  ;;  %1056 = vpow2.f32 %v840_v52  ;;  %v383_v22 = vpop.xlane.xlu1 %382 }
  0xd0   : > { %v380_v26 = vpop.xlane.xlu0 %379  ;;  %v1033_v0 = vpop.eup %1032  ;;  %680 = vst.msk [vmem:[%s1520_s11 + $0x18] sm:$0xff] %vm317_vm0, %v648_v15  ;;  %v618_v27 = vadd.f32 %v1031_v16, %v1510_v41  ;;  %1058 = vrcp.f32 %v521_v25  ;;  %v843_v42 = vmul.f32 -1.442695, %v383_v22 }
  0xd1   : > { %v842_v1 = vmul.f32 -1.442695, %v380_v26  ;;  %v1035_v6 = vpop.eup %1034  ;;  %678 = vst.msk [vmem:[%s1520_s11 + $0x8] sm:$0xff] %vm317_vm0, %v646_v33  ;;  %v617_v49 = vadd.f32 %v1033_v0, %v1510_v41  ;;  %1060 = vrcp.f32 %v520_v20 }
  0xd2   : > { %v1037_v2 = vpop.eup %1036  ;;  %v650_v7 = vmul.f32 %v873_v8, %v618_v27  ;;  %v523_v40 = vadd.f32 1.0, %v1035_v6  ;;  %1062 = vpow2.f32 %v843_v42 }
  0xd3   : > { %v1039_v50 = vpop.eup %1038  ;;  %v649_v48 = vmul.f32 %v872_v9, %v617_v49  ;;  %v522_v4 = vadd.f32 1.0, %v1037_v2  ;;  %1064 = vpow2.f32 %v842_v1  ;;  %v389_v52 = vpop.xlane.xlu1 %388 }
  0xd4   : > { %v386_v61 = vpop.xlane.xlu0 %385  ;;  %v1041_v5 = vpop.eup %1040  ;;  %682 = vst.msk [vmem:[%s1520_s11 + $0x28] sm:$0xff] %vm317_vm0, %v650_v7  ;;  %v620_v62 = vadd.f32 %v1039_v50, %v1510_v41  ;;  %1066 = vrcp.f32 %v523_v40  ;;  %v845_v15 = vmul.f32 -1.442695, %v389_v52 }
  0xd5   : > { %v844_v25 = vmul.f32 -1.442695, %v386_v61  ;;  %v1043_v8 = vpop.eup %1042  ;;  %681 = vst.msk [vmem:[%s1520_s11 + $0x20] sm:$0xff] %vm317_vm0, %v649_v48  ;;  %v619_v16 = vadd.f32 %v1041_v5, %v1510_v41  ;;  %1068 = vrcp.f32 %v522_v4 }
  0xd6   : > { %v1045_v3 = vpop.eup %1044  ;;  %v652_v9 = vmul.f32 %v877_v17, %v620_v62  ;;  %v525_v33 = vadd.f32 1.0, %v1043_v8  ;;  %1070 = vpow2.f32 %v845_v15 }
  0xd7   : > { %v1047_v20 = vpop.eup %1046  ;;  %v651_v22 = vmul.f32 %v876_v18, %v619_v16  ;;  %v524_v26 = vadd.f32 1.0, %v1045_v3  ;;  %1072 = vpow2.f32 %v844_v25  ;;  %v395_v0 = vpop.xlane.xlu1 %394 }
  0xd8   : > { %v392_v27 = vpop.xlane.xlu0 %391  ;;  %v1049_v42 = vpop.eup %1048  ;;  %684 = vst.msk [vmem:[%s1520_s11 + $0x38] sm:$0xff] %vm317_vm0, %v652_v9  ;;  %1074 = vrcp.f32 %v525_v33  ;;  %v527_v1 = vadd.f32 1.0, %v1047_v20  ;;  %v847_v6 = vmul.f32 -1.442695, %v395_v0 }
  0xd9   : > { %v1051_v49 = vpop.eup %1050  ;;  %683 = vst.msk [vmem:[%s1520_s11 + $0x30] sm:$0xff] %vm317_vm0, %v651_v22  ;;  %1076 = vrcp.f32 %v524_v26  ;;  %v526_v17 = vadd.f32 1.0, %v1049_v42  ;;  %v846_v2 = vmul.f32 -1.442695, %v392_v27 }
  0xda   : > { %v1053_v7 = vpop.eup %1052  ;;  %v622_v14 = vadd.f32 %v1051_v49, %v1510_v41  ;;  %1078 = vrcp.f32 %v527_v1 }
  0xdb   : > { %v1055_v18 = vpop.eup %1054  ;;  %v621_v40 = vadd.f32 %v1053_v7, %v1510_v41  ;;  %1080 = vrcp.f32 %v526_v17  ;;  %v401_v50 = vpop.xlane.xlu1 %400 }
  0xdc   : > { %v398_v48 = vpop.xlane.xlu0 %397  ;;  %v1057_v4 = vpop.eup %1056  ;;  %v654_v52 = vmul.f32 %v881_v28, %v622_v14  ;;  %v529_v61 = vadd.f32 1.0, %v1055_v18  ;;  %1082 = vpow2.f32 %v847_v6  ;;  %v849_v5 = vmul.f32 -1.442695, %v401_v50 }
  0xdd   : > { %v1059_v62 = vpop.eup %1058  ;;  %v653_v15 = vmul.f32 %v880_v29, %v621_v40  ;;  %v528_v25 = vadd.f32 1.0, %v1057_v4  ;;  %1084 = vpow2.f32 %v846_v2  ;;  %v848_v8 = vmul.f32 -1.442695, %v398_v48 }
  0xde   : > { %v1061_v16 = vpop.eup %1060  ;;  %686 = vst.msk [vmem:[%s1520_s11 + $0x48] sm:$0xff] %vm317_vm0, %v654_v52  ;;  %v624_v3 = vadd.f32 %v1059_v62, %v1510_v41  ;;  %1086 = vrcp.f32 %v529_v61 }
  0xdf   : > { %v1063_v9 = vpop.eup %1062  ;;  %685 = vst.msk [vmem:[%s1520_s11 + $0x40] sm:$0xff] %vm317_vm0, %v653_v15  ;;  %v623_v28 = vadd.f32 %v1061_v16, %v1510_v41  ;;  %1088 = vrcp.f32 %v528_v25  ;;  %v407_v33 = vpop.xlane.xlu1 %406 }
  0xe0   : > { %v404_v20 = vpop.xlane.xlu0 %403  ;;  %v1065_v23 = vpop.eup %1064  ;;  %v656_v29 = vmul.f32 %v885_v35, %v624_v3  ;;  %v531_v22 = vadd.f32 1.0, %v1063_v9  ;;  %1090 = vpow2.f32 %v849_v5  ;;  %v851_v26 = vmul.f32 -1.442695, %v407_v33 }
  0xe1   : > { %v1067_v0 = vpop.eup %1066  ;;  %v655_v27 = vmul.f32 %v884_v36, %v623_v28  ;;  %v530_v42 = vadd.f32 1.0, %v1065_v23  ;;  %1092 = vpow2.f32 %v848_v8  ;;  %v850_v1 = vmul.f32 -1.442695, %v404_v20 }
  0xe2   : > { %v1069_v6 = vpop.eup %1068  ;;  %688 = vst.msk [vmem:[%s1520_s11 + $0x58] sm:$0xff] %vm317_vm0, %v656_v29  ;;  %v626_v49 = vadd.f32 %v1067_v0, %v1510_v41  ;;  %1094 = vrcp.f32 %v531_v22 }
  0xe3   : > { %v1071_v17 = vpop.eup %1070  ;;  %687 = vst.msk [vmem:[%s1520_s11 + $0x50] sm:$0xff] %vm317_vm0, %v655_v27  ;;  %v625_v35 = vadd.f32 %v1069_v6, %v1510_v41  ;;  %1096 = vrcp.f32 %v530_v42  ;;  %v413_v2 = vpop.xlane.xlu1 %412 }
  0xe4   : > { %v410_v7 = vpop.xlane.xlu0 %409  ;;  %v1073_v30 = vpop.eup %1072  ;;  %v658_v36 = vmul.f32 %v889_v38, %v626_v49  ;;  %v533_v14 = vadd.f32 1.0, %v1071_v17  ;;  %1098 = vpow2.f32 %v851_v26  ;;  %v853_v18 = vmul.f32 -1.442695, %v413_v2 }
  0xe5   : > { %v1075_v40 = vpop.eup %1074  ;;  %v657_v50 = vmul.f32 %v888_v39, %v625_v35  ;;  %v532_v48 = vadd.f32 1.0, %v1073_v30  ;;  %1100 = vpow2.f32 %v850_v1  ;;  %v852_v4 = vmul.f32 -1.442695, %v410_v7 }
  0xe6   : > { %v1077_v52 = vpop.eup %1076  ;;  %690 = vst.msk [vmem:[%s1520_s11 + $0x68] sm:$0xff] %vm317_vm0, %v658_v36  ;;  %v628_v61 = vadd.f32 %v1075_v40, %v1510_v41  ;;  %1102 = vrcp.f32 %v533_v14 }
  0xe7   : > { %v1079_v5 = vpop.eup %1078  ;;  %689 = vst.msk [vmem:[%s1520_s11 + $0x60] sm:$0xff] %vm317_vm0, %v657_v50  ;;  %v627_v38 = vadd.f32 %v1077_v52, %v1510_v41  ;;  %1104 = vrcp.f32 %v532_v48 }
  0xe8   : > { %v1081_v62 = vpop.eup %1080  ;;  %v660_v37 = vmul.f32 %v893_v45, %v628_v61  ;;  %v630_v39 = vadd.f32 %v1079_v5, %v1510_v41  ;;  %1106 = vpow2.f32 %v853_v18 }
  0xe9   : > { %v1083_v15 = vpop.eup %1082  ;;  %v659_v25 = vmul.f32 %v892_v46, %v627_v38  ;;  %v629_v8 = vadd.f32 %v1081_v62, %v1510_v41  ;;  %1108 = vpow2.f32 %v852_v4 }
  0xea   : > { %v1085_v16 = vpop.eup %1084  ;;  %692 = vst.msk [vmem:[%s1520_s11 + $0x78] sm:$0xff] %vm317_vm0, %v660_v37  ;;  %v662_v3 = vmul.f32 %v897_v53, %v630_v39  ;;  %v535_v9 = vadd.f32 1.0, %v1083_v15 }
  0xeb   : > { %v1087_v45 = vpop.eup %1086  ;;  %691 = vst.msk [vmem:[%s1520_s11 + $0x70] sm:$0xff] %vm317_vm0, %v659_v25  ;;  %v661_v28 = vmul.f32 %v896_v57, %v629_v8  ;;  %v534_v33 = vadd.f32 1.0, %v1085_v16  ;;  %v1740_v25 = vunpack.c.h.bf16 %v1483_v19 }
  0xec   : > { %v1089_v44 = vpop.eup %1088  ;;  %694 = vst.msk [vmem:[%s1520_s11 + $0x88] sm:$0xff] %vm317_vm0, %v662_v3  ;;  %v632_v46 = vadd.f32 %v1087_v45, %v1510_v41  ;;  %1110 = vrcp.f32 %v535_v9 }
  0xed   : > { %v1091_v20 = vpop.eup %1090  ;;  %693 = vst.msk [vmem:[%s1520_s11 + $0x80] sm:$0xff] %vm317_vm0, %v661_v28  ;;  %v631_v53 = vadd.f32 %v1089_v44, %v1510_v41  ;;  %1112 = vrcp.f32 %v534_v33 }
  0xee   : > { %v1093_v23 = vpop.eup %1092  ;;  %v664_v51 = vmul.f32 %v901_v63, %v632_v46  ;;  %v537_v57 = vadd.f32 1.0, %v1091_v20 }
  0xef   : > { %v1095_v29 = vpop.eup %1094  ;;  %v663_v22 = vmul.f32 %v900_v10, %v631_v53  ;;  %v536_v26 = vadd.f32 1.0, %v1093_v23 }
  0xf0   : > { %v1097_v0 = vpop.eup %1096  ;;  %696 = vst.msk [vmem:[%s1520_s11 + $0x98] sm:$0xff] %vm317_vm0, %v664_v51  ;;  %v634_v27 = vadd.f32 %v1095_v29, %v1510_v41  ;;  %1114 = vrcp.f32 %v537_v57 }
  0xf1   : > { %v1099_v42 = vpop.eup %1098  ;;  %695 = vst.msk [vmem:[%s1520_s11 + $0x90] sm:$0xff] %vm317_vm0, %v663_v22  ;;  %v633_v1 = vadd.f32 %v1097_v0, %v1510_v41  ;;  %1116 = vrcp.f32 %v536_v26 }
  0xf2   : > { %v1101_v63 = vpop.eup %1100  ;;  %v666_v58 = vmul.f32 %v905_v12, %v634_v27  ;;  %v539_v10 = vadd.f32 1.0, %v1099_v42 }
  0xf3   : > { %v1103_v6 = vpop.eup %1102  ;;  %v665_v49 = vmul.f32 %v904_v13, %v633_v1  ;;  %v538_v17 = vadd.f32 1.0, %v1101_v63 }
  0xf4   : > { %v1105_v35 = vpop.eup %1104  ;;  %698 = vst.msk [vmem:[%s1520_s11 + $0xa8] sm:$0xff] %vm317_vm0, %v666_v58  ;;  %v636_v2 = vadd.f32 %v1103_v6, %v1510_v41  ;;  %1118 = vrcp.f32 %v539_v10 }
  0xf5   : > { %v1107_v7 = vpop.eup %1106  ;;  %697 = vst.msk [vmem:[%s1520_s11 + $0xa0] sm:$0xff] %vm317_vm0, %v665_v49  ;;  %v635_v30 = vadd.f32 %v1105_v35, %v1510_v41  ;;  %1120 = vrcp.f32 %v538_v17 }
  0xf6   : > { %v1109_v12 = vpop.eup %1108  ;;  %v668_v11 = vmul.f32 %v909_v24, %v636_v2  ;;  %v541_v13 = vadd.f32 1.0, %v1107_v7 }
  0xf7   : > { %v667_v36 = vmul.f32 %v908_v31, %v635_v30  ;;  %v540_v14 = vadd.f32 1.0, %v1109_v12 }
  0xf8   : > { %700 = vst.msk [vmem:[%s1520_s11 + $0xb8] sm:$0xff] %vm317_vm0, %v668_v11  ;;  %1122 = vrcp.f32 %v541_v13 }
  0xf9   : > { %v1111_v18 = vpop.eup %1110  ;;  %699 = vst.msk [vmem:[%s1520_s11 + $0xb0] sm:$0xff] %vm317_vm0, %v667_v36  ;;  %1124 = vrcp.f32 %v540_v14 }
  0xfa   : > { %v1113_v40 = vpop.eup %1112  ;;  %v638_v50 = vadd.f32 %v1111_v18, %v1510_v41 }
  0xfb   : > { %v637_v24 = vadd.f32 %v1113_v40, %v1510_v41 }
  0xfc   : > { %v670_v21 = vmul.f32 %v913_v34, %v638_v50 }
  0xfd   : > { %v1115_v31 = vpop.eup %1114  ;;  %v669_v48 = vmul.f32 %v912_v43, %v637_v24 }
  0xfe   : > { %v1117_v4 = vpop.eup %1116  ;;  %702 = vst.msk [vmem:[%s1520_s11 + $0xc8] sm:$0xff] %vm317_vm0, %v670_v21  ;;  %v640_v52 = vadd.f32 %v1115_v31, %v1510_v41 }
  0xff   : > { %701 = vst.msk [vmem:[%s1520_s11 + $0xc0] sm:$0xff] %vm317_vm0, %v669_v48  ;;  %v639_v61 = vadd.f32 %v1117_v4, %v1510_v41 }
 0x100   : > { %v672_v5 = vmul.f32 %v917_v54, %v640_v52 }
 0x101   : > { %v1119_v34 = vpop.eup %1118  ;;  %v671_v32 = vmul.f32 %v916_v55, %v639_v61 }
 0x102   : > { %v1121_v43 = vpop.eup %1120  ;;  %704 = vst.msk [vmem:[%s1520_s11 + $0xd8] sm:$0xff] %vm317_vm0, %v672_v5  ;;  %v642_v38 = vadd.f32 %v1119_v34, %v1510_v41 }
 0x103   : > { %703 = vst.msk [vmem:[%s1520_s11 + $0xd0] sm:$0xff] %vm317_vm0, %v671_v32  ;;  %v641_v62 = vadd.f32 %v1121_v43, %v1510_v41 }
 0x104   : > { %v674_v37 = vmul.f32 %v921_v59, %v642_v38 }
 0x105   : > { %v1123_v54 = vpop.eup %1122  ;;  %v673_v47 = vmul.f32 %v920_v60, %v641_v62 }
 0x106   : > { %v1125_v55 = vpop.eup %1124  ;;  %706 = vst.msk [vmem:[%s1520_s11 + $0xe8] sm:$0xff] %vm317_vm0, %v674_v37  ;;  %v644_v39 = vadd.f32 %v1123_v54, %v1510_v41 }
 0x107   : > { %705 = vst.msk [vmem:[%s1520_s11 + $0xe0] sm:$0xff] %vm317_vm0, %v673_v47  ;;  %v643_v15 = vadd.f32 %v1125_v55, %v1510_v41 }
 0x108   : > { %v676_v59 = vmul.f32 %v1740_v25, %v644_v39 }
 0x109   : > { %v675_v60 = vmul.f32 %v1741_v56, %v643_v15 }
 0x10a   : > { %708 = vst.msk [vmem:[%s1520_s11 + $0xf8] sm:$0xff] %vm317_vm0, %v676_v59 }
 0x10b   : > { %707 = vst.msk [vmem:[%s1520_s11 + $0xf0] sm:$0xff] %vm317_vm0, %v675_v60 }
 0x10c   : > { %1139 = shalt.err (!%p1136_p5)
}
 0x10d   : > { %s1140_s4 = scalar_lea.hbm %s1675_s26, 4096  ;;  %s1144_s7 = scalar_lea.hbm %s1735_s3, 8192 }
 0x10e   : > { %p1141_p6 = scmp.ne.s32.totalorder %s1675_s26, %s1140_s4  ;;  %p1145_p10 = scmp.lt.s32.totalorder %s1675_s26, %s1735_s3 }
 0x10f   : > { %p1146_p11 = scmp.lt.s32.totalorder %s1144_s7, %s1140_s4 }
 0x110   : > { %p1142_p7 = pnand %p1141_p6, %p1267_p4 }
 0x111   : > { %p1147_p12 = por %p1146_p11, %p1145_p10 }
 0x112   : > { %p1143_p9 = pneg %p1142_p7 }
 0x114   : > { %p1148_p13 = pnand %p1147_p12, %p1143_p9 }
 0x116   : > { %1151 = shalt.err (!%p1148_p13)
}
 0x117   : > { %s1205_s10 = smov 128   ;;  %s1206_s11 = smov 8  }
 0x118   : > { %941 = dma.vmem_to_hbm [thread:$0]  (%p1267_p4), %s1677_s19, 4096, %s1675_s26, %s1687_s15, %s1205_s10, %s1205_s10, %s1206_s11  }
 0x119 PF: > { %p947_p0 = scmp.ge.s32.totalorder %s1202_s17, 2  ;;  %s740_s18 = sand.u32 1, %s1182_s12  }
 0x11a   : > { %s741_s21 = scalar_lea.sflag [#allocation3], %s740_s18 }
 0x11b   : > { %p944_p1 = pnand %p947_p0, %p1274_p8 }
 0x11d   : > { %p945_p2 = pneg %p944_p1 }
 0x11f   : > { %1177 = dma.done.wait (%p945_p2), %s741_s21, 4096  }
 0x120   : > { %1179 = vsyncadd (%p945_p2), %s741_s21, 4294963200  ;;  %s16_s17 = sadd.s32 1, %s1202_s17   ;;  %s1742_s12 = smov %s1186_s13 }
 0x121   : > { %p13_p3 = scmp.ge.s32.totalorder %s16_s17, 4   ;;  %s1743_s13 = smov %s1190_s14 }
 0x122   : > { %s1744_s14 = smov %s1280_s25  ;;  %s1745_s15 = smov %s1198_s16 }
 0x123   : > { %s1746_s16 = smov %s1748_s20  ;;  %15 = sbr.rel (!%p13_p3) target bundleno = 4 (0x4), region = 70 }
 0x128   :  { %746 = vsyncpa [#allocation3], 1 }
 0x129   :  { %748 = vsyncpa [#allocation3 + $0x1], 1 }

</bundles_post_ra>
